<compile_context>
chip_gen: v7x
topology: tpu7x:2x2x1
jax: 0.10.0
libtpu: 0.0.40
codegen_flags: <defaults>
</compile_context>

<pallas_src>
import jax
import jax.numpy as jnp
from jax import lax
from jax.experimental import pallas as pl
from jax.experimental.pallas import tpu as pltpu


def _round_up(x, m):
    return (x + m - 1) // m * m


# =============================================================================
# Kernel A (blocks 2-3): fully fused Conv2d(3x3, s=2, p=1) + BN + ReLU.
# =============================================================================
def _conv3x3s2_bn_relu_kernel(x_ref, w_ref, s_ref, b_ref, o_ref):
    """One tile = `th` output rows x full output width x all Cout.

    x_ref: (4, th+1, Wo+1, Cin)  bf16; parity-split, row-haloed input block:
           x_ref[2*a+b, i, j, c] == x_pad[2*(row0+i)+a, 2*j+b, c]
    w_ref: (9, Cin, Cout)        bf16 conv weights, k = kh*3 + kw
    s_ref: (1, Cout)             f32 BN scale  = gamma / sqrt(var + eps)
    b_ref: (1, Cout)             f32 folded bias = (conv_b - mean)*scale + beta
    o_ref: (th, Wo, Cout)        output tile
    """
    th, Wo, Cout = o_ref.shape
    scale = s_ref[...]          # hoisted out of the row loop
    bias = b_ref[...]

    def compute_row(i):
        # On-chip "im2col": 9 shifted (Wo, Cin) slices of the VMEM block,
        # each matmul'd on the MXU and accumulated in f32.
        acc = jnp.zeros((Wo, Cout), jnp.float32)
        for kh in range(3):
            a, dh = kh % 2, kh // 2
            for kw in range(3):
                b, dw = kw % 2, kw // 2
                patch = x_ref[2 * a + b, i + dh, pl.ds(dw, Wo), :]   # (Wo, Cin)
                acc = acc + jnp.dot(patch, w_ref[kh * 3 + kw],
                                    preferred_element_type=jnp.float32)
        # f32 epilogue: BN scale + bias + ReLU, then cast and lane-dense store.
        o_ref[i] = jnp.maximum(acc * scale + bias, 0.0).astype(o_ref.dtype)

    if th <= 8:                         # small row tiles: static unroll
        for i in range(th):
            compute_row(i)
    else:                               # bigger tiles: compact scf.for
        def body(i, carry):
            compute_row(i)
            return carry
        lax.fori_loop(0, th, body, 0)


def _choose_row_tile(Ho, Wo, target_m=2048, max_th=32):
    """Largest th with th | Ho, >=2 row tiles when Ho >= 2, th*Wo <= target."""
    best = 1
    for th in range(1, min(Ho, max_th) + 1):
        if Ho % th != 0:
            continue
        if Ho >= 2 and Ho // th < 2:        # keep >= 2 grid steps (v7x megacore)
            continue
        if th > 1 and th * Wo > target_m:
            continue
        best = th
    return best


def _conv_block_fused(x_nhwc, params, *, out_dtype, target_m=2048, eps=1e-5):
    """Conv3x3/s2/p1 + BN + ReLU with the im2col fused into the kernel."""
    N, H, W, Cin = x_nhwc.shape
    Cout = params["w"].shape[0]
    Ho, Wo = H // 2, W // 2
    th = _choose_row_tile(Ho, Wo, target_m)
    R = Ho // th

    scale = (params["gamma"] / jnp.sqrt(params["var"] + eps)).astype(jnp.float32)
    bias = ((params["b"] - params["mean"]) * scale
            + params["beta"]).astype(jnp.float32)
    scale2 = scale.reshape(1, Cout)
    bias2 = bias.reshape(1, Cout)

    # (Cout, Cin, 3, 3) -> (9, Cin, Cout); k = kh*3 + kw.  Kept unscaled in bf16
    # (BN scale applied in f32 in the epilogue for better accuracy).
    w_all = jnp.transpose(params["w"], (2, 3, 1, 0)).reshape(9, Cin, Cout)
    w_all = w_all.astype(jnp.bfloat16)

    # Blocked, parity-split, row-haloed activation (single XLA pass, ~1x copy
    # instead of the 9x im2col expansion):
    #   xblk[n*R + r, 2*a + b, i, j, c] = x_pad[n, 2*(r*th + i) + a, 2*j + b, c]
    xb = x_nhwc.astype(jnp.bfloat16)
    xp = jnp.pad(xb, ((0, 0), (1, 1), (1, 1), (0, 0)))          # (N, 2Ho+2, 2Wo+2, C)
    xq = xp.reshape(N, Ho + 1, 2, Wo + 1, 2, Cin)
    xq = jnp.transpose(xq, (0, 2, 4, 1, 3, 5))                  # (N, 2, 2, Ho+1, Wo+1, C)
    idx = jnp.arange(R)[:, None] * th + jnp.arange(th + 1)[None, :]   # (R, th+1)
    xblk = jnp.take(xq, idx, axis=3)                            # (N, 2, 2, R, th+1, Wo+1, C)
    xblk = jnp.transpose(xblk, (0, 3, 1, 2, 4, 5, 6))           # (N, R, 2, 2, th+1, Wo+1, C)
    xblk = xblk.reshape(N * R, 4, th + 1, Wo + 1, Cin)

    out_isz = jnp.dtype(out_dtype).itemsize
    cost = pl.CostEstimate(
        flops=2 * N * Ho * Wo * 9 * Cin * Cout,
        transcendentals=0,
        bytes_accessed=(xblk.size * xblk.dtype.itemsize
                        + w_all.size * w_all.dtype.itemsize
                        + 8 * Cout
                        + N * Ho * Wo * Cout * out_isz),
    )

    out = pl.pallas_call(
        _conv3x3s2_bn_relu_kernel,
        out_shape=jax.ShapeDtypeStruct((N, Ho, Wo, Cout), out_dtype),
        grid=(N, R),
        in_specs=[
            # streamed activation block (double-buffered by Pallas)
            pl.BlockSpec((None, 4, th + 1, Wo + 1, Cin),
                         lambda n, r: (n * R + r, 0, 0, 0, 0)),
            # resident operands (constant index maps -> no re-DMA between steps)
            pl.BlockSpec((9, Cin, Cout), lambda n, r: (0, 0, 0)),
            pl.BlockSpec((1, Cout), lambda n, r: (0, 0)),
            pl.BlockSpec((1, Cout), lambda n, r: (0, 0)),
        ],
        out_specs=pl.BlockSpec((None, th, Wo, Cout), lambda n, r: (n, r, 0, 0)),
        compiler_params=pltpu.CompilerParams(
            dimension_semantics=("parallel", "parallel"),   # v7x megacore
            vmem_limit_bytes=32 * 1024 * 1024,              # safe on all gens
        ),
        cost_estimate=cost,
    )(xblk, w_all, scale2, bias2)
    return out


# =============================================================================
# Kernel B (block 1, Cin=3): XLA im2col + fused matmul + BN + ReLU kernel.
# =============================================================================
def _matmul_bn_relu_kernel(p_ref, w_ref, s_ref, b_ref, o_ref):
    # p_ref: (tm, K) bf16 patches, w_ref: (K, Cout) bf16,
    # s_ref/b_ref: (1, Cout) f32, o_ref: (tm, Cout)
    acc = jnp.dot(p_ref[...], w_ref[...], preferred_element_type=jnp.float32)
    o_ref[...] = jnp.maximum(acc * s_ref[...] + b_ref[...], 0.0).astype(o_ref.dtype)


def _pick_m_tile(M, tm):
    tm_eff = min(tm, M)
    if tm_eff < M:
        tm_eff = min(M, _round_up(tm_eff, 8))
    if M > 16 and pl.cdiv(M, tm_eff) < 2:
        # v7x megacore: keep at least two grid steps so both TensorCores work.
        tm_eff = min(M, _round_up(pl.cdiv(M, 2), 8))
    return tm_eff


def _conv_block_im2col(x_nhwc, params, *, out_dtype, tm=4096, eps=1e-5):
    w = params["w"]
    N, H, W, Cin = x_nhwc.shape
    Cout = w.shape[0]
    Ho = (H + 2 - 3) // 2 + 1
    Wo = (W + 2 - 3) // 2 + 1
    K = 9 * Cin
    M = N * Ho * Wo

    scale = (params["gamma"] / jnp.sqrt(params["var"] + eps)).astype(jnp.float32)
    bias = ((params["b"] - params["mean"]) * scale
            + params["beta"]).astype(jnp.float32)
    scale2 = scale.reshape(1, Cout)
    bias2 = bias.reshape(1, Cout)
    w_mat = jnp.transpose(w, (2, 3, 1, 0)).reshape(K, Cout).astype(jnp.bfloat16)

    # im2col in bf16 (K=27 only -> small in absolute bytes for block1).
    xb = x_nhwc.astype(jnp.bfloat16)
    xp = jnp.pad(xb, ((0, 0), (1, 1), (1, 1), (0, 0)))
    cols = [xp[:, kh:kh + 2 * Ho:2, kw:kw + 2 * Wo:2, :]
            for kh in range(3) for kw in range(3)]
    patches = jnp.stack(cols, axis=3).reshape(M, K)

    tm_eff = _pick_m_tile(M, tm)
    grid = (pl.cdiv(M, tm_eff),)

    out_isz = jnp.dtype(out_dtype).itemsize
    cost = pl.CostEstimate(
        flops=2 * M * K * Cout,
        transcendentals=0,
        bytes_accessed=(patches.size * 2 + w_mat.size * 2 + 8 * Cout
                        + M * Cout * out_isz),
    )

    out = pl.pallas_call(
        _matmul_bn_relu_kernel,
        out_shape=jax.ShapeDtypeStruct((M, Cout), out_dtype),
        grid=grid,
        in_specs=[
            pl.BlockSpec((tm_eff, K), lambda i: (i, 0)),   # streamed patches
            pl.BlockSpec((K, Cout), lambda i: (0, 0)),     # resident weight
            pl.BlockSpec((1, Cout), lambda i: (0, 0)),     # resident scale
            pl.BlockSpec((1, Cout), lambda i: (0, 0)),     # resident bias
        ],
        out_specs=pl.BlockSpec((tm_eff, Cout), lambda i: (i, 0)),
        compiler_params=pltpu.CompilerParams(
            dimension_semantics=("parallel",),
            vmem_limit_bytes=32 * 1024 * 1024,
        ),
        cost_estimate=cost,
    )(patches, w_mat, scale2, bias2)
    # No channel padding -> no post-kernel slice (free metadata reshape only).
    return out.reshape(N, Ho, Wo, Cout)


# =============================================================================
# ConvBlock dispatcher + Spatial_path.
# =============================================================================
def conv_block(x_nhwc, params, *, out_dtype=jnp.bfloat16):
    N, H, W, Cin = x_nhwc.shape
    if Cin >= 16 and H % 2 == 0 and W % 2 == 0:
        return _conv_block_fused(x_nhwc, params, out_dtype=out_dtype)
    return _conv_block_im2col(x_nhwc, params, out_dtype=out_dtype)


def init_convblock_params(key, cin, cout):
    kw_, kb_, kg_, kbe_, km_, kv_ = jax.random.split(key, 6)
    fan_in = cin * 3 * 3
    bound = 1.0 / jnp.sqrt(fan_in)
    return {
        "w": jax.random.uniform(kw_, (cout, cin, 3, 3), jnp.float32, -bound, bound),
        "b": jax.random.uniform(kb_, (cout,), jnp.float32, -bound, bound),
        "gamma": 1.0 + 0.1 * jax.random.normal(kg_, (cout,), jnp.float32),
        "beta": 0.1 * jax.random.normal(kbe_, (cout,), jnp.float32),
        "mean": 0.1 * jax.random.normal(km_, (cout,), jnp.float32),
        "var": jnp.abs(1.0 + 0.1 * jax.random.normal(kv_, (cout,), jnp.float32)),
    }


def init_spatial_path_params(key):
    k1, k2, k3 = jax.random.split(key, 3)
    return {
        "block1": init_convblock_params(k1, 3, 64),
        "block2": init_convblock_params(k2, 64, 128),
        "block3": init_convblock_params(k3, 128, 256),
    }


def spatial_path(x_nchw, params):
    """Forward pass of Spatial_path. Input/output are NCHW (PyTorch convention)."""
    x = jnp.transpose(x_nchw, (0, 2, 3, 1))                      # NCHW -> NHWC
    x = conv_block(x, params["block1"], out_dtype=jnp.bfloat16)  # (N, H/2, W/2, 64)
    x = conv_block(x, params["block2"], out_dtype=jnp.bfloat16)  # (N, H/4, W/4, 128)
    x = conv_block(x, params["block3"], out_dtype=jnp.float32)   # (N, H/8, W/8, 256)
    return jnp.transpose(x, (0, 3, 1, 2))                        # NHWC -> NCHW


# ---------------------------------------------------------------------------
# Pure-JAX f32 reference (loose numerical sanity check; MXU inputs are bf16).
# ---------------------------------------------------------------------------
def _conv_block_ref(x_nhwc, params, eps=1e-5):
    w = jnp.transpose(params["w"], (2, 3, 1, 0))                 # HWIO
    y = jax.lax.conv_general_dilated(
        x_nhwc, w, window_strides=(2, 2), padding=((1, 1), (1, 1)),
        dimension_numbers=("NHWC", "HWIO", "NHWC"))
    y = y + params["b"]
    scale = params["gamma"] / jnp.sqrt(params["var"] + eps)
    return jnp.maximum((y - params["mean"]) * scale + params["beta"], 0.0)


def spatial_path_ref(x_nchw, params):
    x = jnp.transpose(x_nchw, (0, 2, 3, 1)).astype(jnp.float32)
    for name in ("block1", "block2", "block3"):
        x = _conv_block_ref(x, params[name])
    return jnp.transpose(x, (0, 3, 1, 2))


if __name__ == "__main__":
    key = jax.random.PRNGKey(0)
    kx, kp = jax.random.split(key)

    # Small input consistent with the module: batch=2, 3 channels, 32x32 spatial.
    x = jax.random.normal(kx, (2, 3, 32, 32), jnp.float32)
    params = init_spatial_path_params(kp)

    out = jax.block_until_ready(jax.jit(spatial_path)(x, params))

    assert out.shape == (2, 256, 4, 4), out.shape
    assert out.dtype == jnp.float32
    assert bool(jnp.all(out >= 0.0))                 # ReLU output

    # Loose tolerance: activations/weights enter the MXU in bf16 (f32 accumulate,
    # f32 BN epilogue).
    ref = jax.block_until_ready(jax.jit(spatial_path_ref)(x, params))
    assert bool(jnp.allclose(out, ref, rtol=1e-1, atol=1e-1)), float(
        jnp.max(jnp.abs(out - ref)))

    print("KERNEL_OK")
</pallas_src>

<mosaic_0001>
module attributes {stable_mosaic.version = 11 : i64} {
  func.func @_matmul_bn_relu_kernel(%arg0: i32, %arg1: memref<256x27xbf16, #tpu.memory_space<vmem>>, %arg2: memref<27x64xbf16, #tpu.memory_space<vmem>>, %arg3: memref<1x64xf32, #tpu.memory_space<vmem>>, %arg4: memref<1x64xf32, #tpu.memory_space<vmem>>, %arg5: memref<256x64xbf16, #tpu.memory_space<vmem>>) attributes {dimension_semantics = [#tpu.dimension_semantics<parallel>], iteration_bounds = array<i64: 2>, scalar_prefetch = 0 : i64, scratch_operands = 0 : i64, tpu.core_type = #tpu.core_type<tc>, window_params = [{transform_indices = @transform_0, window_bounds = array<i64: 256, 27>}, {pipeline_mode = #tpu.pipeline_mode<synchronous>, transform_indices = @transform_1, window_bounds = array<i64: 27, 64>}, {pipeline_mode = #tpu.pipeline_mode<synchronous>, transform_indices = @transform_2, window_bounds = array<i64: 1, 64>}, {pipeline_mode = #tpu.pipeline_mode<synchronous>, transform_indices = @transform_3, window_bounds = array<i64: 1, 64>}, {transform_indices = @transform_4, window_bounds = array<i64: 256, 64>}]} {
    %c0 = arith.constant 0 : index
    %c0_0 = arith.constant 0 : index
    %0 = vector.load %arg1[%c0, %c0_0] : memref<256x27xbf16, #tpu.memory_space<vmem>>, vector<256x27xbf16>
    %c0_1 = arith.constant 0 : index
    %c0_2 = arith.constant 0 : index
    %1 = vector.load %arg2[%c0_1, %c0_2] : memref<27x64xbf16, #tpu.memory_space<vmem>>, vector<27x64xbf16>
    %cst = arith.constant dense<0.000000e+00> : vector<256x64xf32>
    %2 = tpu.matmul %0, %1, %cst {dimension_numbers = #tpu.dot_dimension_numbers<[1], [0], [0], [1], [0, 0, 1, 1], [], []>} : vector<256x27xbf16>, vector<27x64xbf16>, vector<256x64xf32> -> vector<256x64xf32>
    %c0_3 = arith.constant 0 : index
    %c0_4 = arith.constant 0 : index
    %3 = vector.load %arg3[%c0_3, %c0_4] : memref<1x64xf32, #tpu.memory_space<vmem>>, vector<1x64xf32>
    %4 = vector.broadcast %3 : vector<1x64xf32> to vector<256x64xf32>
    %5 = arith.mulf %2, %4 : vector<256x64xf32>
    %c0_5 = arith.constant 0 : index
    %c0_6 = arith.constant 0 : index
    %6 = vector.load %arg4[%c0_5, %c0_6] : memref<1x64xf32, #tpu.memory_space<vmem>>, vector<1x64xf32>
    %7 = vector.broadcast %6 : vector<1x64xf32> to vector<256x64xf32>
    %8 = arith.addf %5, %7 : vector<256x64xf32>
    %cst_7 = arith.constant 0.000000e+00 : f32
    %9 = vector.broadcast %cst_7 : f32 to vector<256x64xf32>
    %10 = arith.maximumf %8, %9 : vector<256x64xf32>
    %11 = arith.truncf %10 : vector<256x64xf32> to vector<256x64xbf16>
    %c0_8 = arith.constant 0 : index
    %c0_9 = arith.constant 0 : index
    %12 = vector.load %arg5[%c0_8, %c0_9] : memref<256x64xbf16, #tpu.memory_space<vmem>>, vector<256x64xbf16>
    tpu.vector_store %arg5[%c0_8, %c0_9], %11 {strides = array<i32>} : memref<256x64xbf16, #tpu.memory_space<vmem>>, vector<256x64xbf16>,
    return
  }
  func.func @transform_0(%arg0: i32) -> (i32, i32) {
    %c0_i32 = arith.constant 0 : i32
    %c0_i32_0 = arith.constant 0 : i32
    return %arg0, %c0_i32 : i32, i32
  }
  func.func @transform_1(%arg0: i32) -> (i32, i32) {
    %c0_i32 = arith.constant 0 : i32
    %c0_i32_0 = arith.constant 0 : i32
    %c0_i32_1 = arith.constant 0 : i32
    return %c0_i32, %c0_i32_0 : i32, i32
  }
  func.func @transform_2(%arg0: i32) -> (i32, i32) {
    %c0_i32 = arith.constant 0 : i32
    %c0_i32_0 = arith.constant 0 : i32
    %c0_i32_1 = arith.constant 0 : i32
    return %c0_i32, %c0_i32_0 : i32, i32
  }
  func.func @transform_3(%arg0: i32) -> (i32, i32) {
    %c0_i32 = arith.constant 0 : i32
    %c0_i32_0 = arith.constant 0 : i32
    %c0_i32_1 = arith.constant 0 : i32
    return %c0_i32, %c0_i32_0 : i32, i32
  }
  func.func @transform_4(%arg0: i32) -> (i32, i32) {
    %c0_i32 = arith.constant 0 : i32
    %c0_i32_0 = arith.constant 0 : i32
    return %arg0, %c0_i32 : i32, i32
  }
}

module attributes {stable_mosaic.version = 11 : i64} {
  func.func @_conv3x3s2_bn_relu_kernel(%arg0: i32, %arg1: i32, %arg2: memref<1x4x5x9x64xbf16, #tpu.memory_space<vmem>>, %arg3: memref<9x64x128xbf16, #tpu.memory_space<vmem>>, %arg4: memref<1x128xf32, #tpu.memory_space<vmem>>, %arg5: memref<1x128xf32, #tpu.memory_space<vmem>>, %arg6: memref<1x4x8x128xbf16, #tpu.memory_space<vmem>>) attributes {dimension_semantics = [#tpu.dimension_semantics<parallel>, #tpu.dimension_semantics<parallel>], iteration_bounds = array<i64: 2, 2>, scalar_prefetch = 0 : i64, scratch_operands = 0 : i64, tpu.core_type = #tpu.core_type<tc>, window_params = [{transform_indices = @transform_0, window_bounds = array<i64: 1, 4, 5, 9, 64>}, {pipeline_mode = #tpu.pipeline_mode<synchronous>, transform_indices = @transform_1, window_bounds = array<i64: 9, 64, 128>}, {pipeline_mode = #tpu.pipeline_mode<synchronous>, transform_indices = @transform_2, window_bounds = array<i64: 1, 128>}, {pipeline_mode = #tpu.pipeline_mode<synchronous>, transform_indices = @transform_3, window_bounds = array<i64: 1, 128>}, {transform_indices = @transform_4, window_bounds = array<i64: 1, 4, 8, 128>}]} {
    %c0 = arith.constant 0 : index
    %c0_0 = arith.constant 0 : index
    %0 = vector.load %arg4[%c0, %c0_0] : memref<1x128xf32, #tpu.memory_space<vmem>>, vector<1x128xf32>
    %c0_1 = arith.constant 0 : index
    %c0_2 = arith.constant 0 : index
    %1 = vector.load %arg5[%c0_1, %c0_2] : memref<1x128xf32, #tpu.memory_space<vmem>>, vector<1x128xf32>
    %cst = arith.constant 0.000000e+00 : f32
    %2 = vector.broadcast %cst : f32 to vector<8x128xf32>
    %c0_3 = arith.constant 0 : index
    %c0_4 = arith.constant 0 : index
    %c0_5 = arith.constant 0 : index
    %c0_6 = arith.constant 0 : index
    %c0_7 = arith.constant 0 : index
    %3 = vector.load %arg2[%c0_3, %c0_4, %c0_5, %c0_6, %c0_7] : memref<1x4x5x9x64xbf16, #tpu.memory_space<vmem>>, vector<1x1x1x8x64xbf16>
    %4 = vector.shape_cast %3 : vector<1x1x1x8x64xbf16> to vector<8x64xbf16>
    %c0_8 = arith.constant 0 : index
    %c0_9 = arith.constant 0 : index
    %c0_10 = arith.constant 0 : index
    %5 = vector.load %arg3[%c0_8, %c0_9, %c0_10] : memref<9x64x128xbf16, #tpu.memory_space<vmem>>, vector<1x64x128xbf16>
    %6 = vector.shape_cast %5 : vector<1x64x128xbf16> to vector<64x128xbf16>
    %cst_11 = arith.constant dense<0.000000e+00> : vector<8x128xf32>
    %7 = tpu.matmul %4, %6, %cst_11 {dimension_numbers = #tpu.dot_dimension_numbers<[1], [0], [0], [1], [0, 0, 1, 1], [], []>} : vector<8x64xbf16>, vector<64x128xbf16>, vector<8x128xf32> -> vector<8x128xf32>
    %8 = arith.addf %2, %7 : vector<8x128xf32>
    %c0_12 = arith.constant 0 : index
    %c1 = arith.constant 1 : index
    %c0_13 = arith.constant 0 : index
    %c0_14 = arith.constant 0 : index
    %c0_15 = arith.constant 0 : index
    %9 = vector.load %arg2[%c0_12, %c1, %c0_13, %c0_14, %c0_15] : memref<1x4x5x9x64xbf16, #tpu.memory_space<vmem>>, vector<1x1x1x8x64xbf16>
    %10 = vector.shape_cast %9 : vector<1x1x1x8x64xbf16> to vector<8x64xbf16>
    %c1_16 = arith.constant 1 : index
    %c0_17 = arith.constant 0 : index
    %c0_18 = arith.constant 0 : index
    %11 = vector.load %arg3[%c1_16, %c0_17, %c0_18] : memref<9x64x128xbf16, #tpu.memory_space<vmem>>, vector<1x64x128xbf16>
    %12 = vector.shape_cast %11 : vector<1x64x128xbf16> to vector<64x128xbf16>
    %cst_19 = arith.constant dense<0.000000e+00> : vector<8x128xf32>
    %13 = tpu.matmul %10, %12, %cst_19 {dimension_numbers = #tpu.dot_dimension_numbers<[1], [0], [0], [1], [0, 0, 1, 1], [], []>} : vector<8x64xbf16>, vector<64x128xbf16>, vector<8x128xf32> -> vector<8x128xf32>
    %14 = arith.addf %8, %13 : vector<8x128xf32>
    %c0_20 = arith.constant 0 : index
    %c0_21 = arith.constant 0 : index
    %c0_22 = arith.constant 0 : index
    %c1_23 = arith.constant 1 : index
    %c0_24 = arith.constant 0 : index
    %15 = vector.load %arg2[%c0_20, %c0_21, %c0_22, %c1_23, %c0_24] : memref<1x4x5x9x64xbf16, #tpu.memory_space<vmem>>, vector<1x1x1x8x64xbf16>
    %16 = vector.shape_cast %15 : vector<1x1x1x8x64xbf16> to vector<8x64xbf16>
    %c2 = arith.constant 2 : index
    %c0_25 = arith.constant 0 : index
    %c0_26 = arith.constant 0 : index
    %17 = vector.load %arg3[%c2, %c0_25, %c0_26] : memref<9x64x128xbf16, #tpu.memory_space<vmem>>, vector<1x64x128xbf16>
    %18 = vector.shape_cast %17 : vector<1x64x128xbf16> to vector<64x128xbf16>
    %cst_27 = arith.constant dense<0.000000e+00> : vector<8x128xf32>
    %19 = tpu.matmul %16, %18, %cst_27 {dimension_numbers = #tpu.dot_dimension_numbers<[1], [0], [0], [1], [0, 0, 1, 1], [], []>} : vector<8x64xbf16>, vector<64x128xbf16>, vector<8x128xf32> -> vector<8x128xf32>
    %20 = arith.addf %14, %19 : vector<8x128xf32>
    %c0_28 = arith.constant 0 : index
    %c2_29 = arith.constant 2 : index
    %c0_30 = arith.constant 0 : index
    %c0_31 = arith.constant 0 : index
    %c0_32 = arith.constant 0 : index
    %21 = vector.load %arg2[%c0_28, %c2_29, %c0_30, %c0_31, %c0_32] : memref<1x4x5x9x64xbf16, #tpu.memory_space<vmem>>, vector<1x1x1x8x64xbf16>
    %22 = vector.shape_cast %21 : vector<1x1x1x8x64xbf16> to vector<8x64xbf16>
    %c3 = arith.constant 3 : index
    %c0_33 = arith.constant 0 : index
    %c0_34 = arith.constant 0 : index
    %23 = vector.load %arg3[%c3, %c0_33, %c0_34] : memref<9x64x128xbf16, #tpu.memory_space<vmem>>, vector<1x64x128xbf16>
    %24 = vector.shape_cast %23 : vector<1x64x128xbf16> to vector<64x128xbf16>
    %cst_35 = arith.constant dense<0.000000e+00> : vector<8x128xf32>
    %25 = tpu.matmul %22, %24, %cst_35 {dimension_numbers = #tpu.dot_dimension_numbers<[1], [0], [0], [1], [0, 0, 1, 1], [], []>} : vector<8x64xbf16>, vector<64x128xbf16>, vector<8x128xf32> -> vector<8x128xf32>
    %26 = arith.addf %20, %25 : vector<8x128xf32>
    %c0_36 = arith.constant 0 : index
    %c3_37 = arith.constant 3 : index
    %c0_38 = arith.constant 0 : index
    %c0_39 = arith.constant 0 : index
    %c0_40 = arith.constant 0 : index
    %27 = vector.load %arg2[%c0_36, %c3_37, %c0_38, %c0_39, %c0_40] : memref<1x4x5x9x64xbf16, #tpu.memory_space<vmem>>, vector<1x1x1x8x64xbf16>
    %28 = vector.shape_cast %27 : vector<1x1x1x8x64xbf16> to vector<8x64xbf16>
    %c4 = arith.constant 4 : index
    %c0_41 = arith.constant 0 : index
    %c0_42 = arith.constant 0 : index
    %29 = vector.load %arg3[%c4, %c0_41, %c0_42] : memref<9x64x128xbf16, #tpu.memory_space<vmem>>, vector<1x64x128xbf16>
    %30 = vector.shape_cast %29 : vector<1x64x128xbf16> to vector<64x128xbf16>
    %cst_43 = arith.constant dense<0.000000e+00> : vector<8x128xf32>
    %31 = tpu.matmul %28, %30, %cst_43 {dimension_numbers = #tpu.dot_dimension_numbers<[1], [0], [0], [1], [0, 0, 1, 1], [], []>} : vector<8x64xbf16>, vector<64x128xbf16>, vector<8x128xf32> -> vector<8x128xf32>
    %32 = arith.addf %26, %31 : vector<8x128xf32>
    %c0_44 = arith.constant 0 : index
    %c2_45 = arith.constant 2 : index
    %c0_46 = arith.constant 0 : index
    %c1_47 = arith.constant 1 : index
    %c0_48 = arith.constant 0 : index
    %33 = vector.load %arg2[%c0_44, %c2_45, %c0_46, %c1_47, %c0_48] : memref<1x4x5x9x64xbf16, #tpu.memory_space<vmem>>, vector<1x1x1x8x64xbf16>
    %34 = vector.shape_cast %33 : vector<1x1x1x8x64xbf16> to vector<8x64xbf16>
    %c5 = arith.constant 5 : index
    %c0_49 = arith.constant 0 : index
    %c0_50 = arith.constant 0 : index
    %35 = vector.load %arg3[%c5, %c0_49, %c0_50] : memref<9x64x128xbf16, #tpu.memory_space<vmem>>, vector<1x64x128xbf16>
    %36 = vector.shape_cast %35 : vector<1x64x128xbf16> to vector<64x128xbf16>
    %cst_51 = arith.constant dense<0.000000e+00> : vector<8x128xf32>
    %37 = tpu.matmul %34, %36, %cst_51 {dimension_numbers = #tpu.dot_dimension_numbers<[1], [0], [0], [1], [0, 0, 1, 1], [], []>} : vector<8x64xbf16>, vector<64x128xbf16>, vector<8x128xf32> -> vector<8x128xf32>
    %38 = arith.addf %32, %37 : vector<8x128xf32>
    %c0_52 = arith.constant 0 : index
    %c0_53 = arith.constant 0 : index
    %c1_54 = arith.constant 1 : index
    %c0_55 = arith.constant 0 : index
    %c0_56 = arith.constant 0 : index
    %39 = vector.load %arg2[%c0_52, %c0_53, %c1_54, %c0_55, %c0_56] : memref<1x4x5x9x64xbf16, #tpu.memory_space<vmem>>, vector<1x1x1x8x64xbf16>
    %40 = vector.shape_cast %39 : vector<1x1x1x8x64xbf16> to vector<8x64xbf16>
    %c6 = arith.constant 6 : index
    %c0_57 = arith.constant 0 : index
    %c0_58 = arith.constant 0 : index
    %41 = vector.load %arg3[%c6, %c0_57, %c0_58] : memref<9x64x128xbf16, #tpu.memory_space<vmem>>, vector<1x64x128xbf16>
    %42 = vector.shape_cast %41 : vector<1x64x128xbf16> to vector<64x128xbf16>
    %cst_59 = arith.constant dense<0.000000e+00> : vector<8x128xf32>
    %43 = tpu.matmul %40, %42, %cst_59 {dimension_numbers = #tpu.dot_dimension_numbers<[1], [0], [0], [1], [0, 0, 1, 1], [], []>} : vector<8x64xbf16>, vector<64x128xbf16>, vector<8x128xf32> -> vector<8x128xf32>
    %44 = arith.addf %38, %43 : vector<8x128xf32>
    %c0_60 = arith.constant 0 : index
    %c1_61 = arith.constant 1 : index
    %c1_62 = arith.constant 1 : index
    %c0_63 = arith.constant 0 : index
    %c0_64 = arith.constant 0 : index
    %45 = vector.load %arg2[%c0_60, %c1_61, %c1_62, %c0_63, %c0_64] : memref<1x4x5x9x64xbf16, #tpu.memory_space<vmem>>, vector<1x1x1x8x64xbf16>
    %46 = vector.shape_cast %45 : vector<1x1x1x8x64xbf16> to vector<8x64xbf16>
    %c7 = arith.constant 7 : index
    %c0_65 = arith.constant 0 : index
    %c0_66 = arith.constant 0 : index
    %47 = vector.load %arg3[%c7, %c0_65, %c0_66] : memref<9x64x128xbf16, #tpu.memory_space<vmem>>, vector<1x64x128xbf16>
    %48 = vector.shape_cast %47 : vector<1x64x128xbf16> to vector<64x128xbf16>
    %cst_67 = arith.constant dense<0.000000e+00> : vector<8x128xf32>
    %49 = tpu.matmul %46, %48, %cst_67 {dimension_numbers = #tpu.dot_dimension_numbers<[1], [0], [0], [1], [0, 0, 1, 1], [], []>} : vector<8x64xbf16>, vector<64x128xbf16>, vector<8x128xf32> -> vector<8x128xf32>
    %50 = arith.addf %44, %49 : vector<8x128xf32>
    %c0_68 = arith.constant 0 : index
    %c0_69 = arith.constant 0 : index
    %c1_70 = arith.constant 1 : index
    %c1_71 = arith.constant 1 : index
    %c0_72 = arith.constant 0 : index
    %51 = vector.load %arg2[%c0_68, %c0_69, %c1_70, %c1_71, %c0_72] : memref<1x4x5x9x64xbf16, #tpu.memory_space<vmem>>, vector<1x1x1x8x64xbf16>
    %52 = vector.shape_cast %51 : vector<1x1x1x8x64xbf16> to vector<8x64xbf16>
    %c8 = arith.constant 8 : index
    %c0_73 = arith.constant 0 : index
    %c0_74 = arith.constant 0 : index
    %53 = vector.load %arg3[%c8, %c0_73, %c0_74] : memref<9x64x128xbf16, #tpu.memory_space<vmem>>, vector<1x64x128xbf16>
    %54 = vector.shape_cast %53 : vector<1x64x128xbf16> to vector<64x128xbf16>
    %cst_75 = arith.constant dense<0.000000e+00> : vector<8x128xf32>
    %55 = tpu.matmul %52, %54, %cst_75 {dimension_numbers = #tpu.dot_dimension_numbers<[1], [0], [0], [1], [0, 0, 1, 1], [], []>} : vector<8x64xbf16>, vector<64x128xbf16>, vector<8x128xf32> -> vector<8x128xf32>
    %56 = arith.addf %50, %55 : vector<8x128xf32>
    %57 = vector.broadcast %0 : vector<1x128xf32> to vector<8x128xf32>
    %58 = arith.mulf %56, %57 : vector<8x128xf32>
    %59 = vector.broadcast %1 : vector<1x128xf32> to vector<8x128xf32>
    %60 = arith.addf %58, %59 : vector<8x128xf32>
    %cst_76 = arith.constant 0.000000e+00 : f32
    %61 = vector.broadcast %cst_76 : f32 to vector<8x128xf32>
    %62 = arith.maximumf %60, %61 : vector<8x128xf32>
    %63 = arith.truncf %62 : vector<8x128xf32> to vector<8x128xbf16>
    %c0_77 = arith.constant 0 : index
    %c0_78 = arith.constant 0 : index
    %c0_79 = arith.constant 0 : index
    %c0_80 = arith.constant 0 : index
    %64 = vector.load %arg6[%c0_77, %c0_78, %c0_79, %c0_80] : memref<1x4x8x128xbf16, #tpu.memory_space<vmem>>, vector<1x1x8x128xbf16>
    %65 = vector.shape_cast %64 : vector<1x1x8x128xbf16> to vector<8x128xbf16>
    %66 = vector.shape_cast %63 : vector<8x128xbf16> to vector<1x1x8x128xbf16>
    tpu.vector_store %arg6[%c0_77, %c0_78, %c0_79, %c0_80], %66 {strides = array<i32>} : memref<1x4x8x128xbf16, #tpu.memory_space<vmem>>, vector<1x1x8x128xbf16>,
    %cst_81 = arith.constant 0.000000e+00 : f32
    %67 = vector.broadcast %cst_81 : f32 to vector<8x128xf32>
    %c0_82 = arith.constant 0 : index
    %c0_83 = arith.constant 0 : index
    %c1_84 = arith.constant 1 : index
    %c0_85 = arith.constant 0 : index
    %c0_86 = arith.constant 0 : index
    %68 = vector.load %arg2[%c0_82, %c0_83, %c1_84, %c0_85, %c0_86] : memref<1x4x5x9x64xbf16, #tpu.memory_space<vmem>>, vector<1x1x1x8x64xbf16>
    %69 = vector.shape_cast %68 : vector<1x1x1x8x64xbf16> to vector<8x64xbf16>
    %c0_87 = arith.constant 0 : index
    %c0_88 = arith.constant 0 : index
    %c0_89 = arith.constant 0 : index
    %70 = vector.load %arg3[%c0_87, %c0_88, %c0_89] : memref<9x64x128xbf16, #tpu.memory_space<vmem>>, vector<1x64x128xbf16>
    %71 = vector.shape_cast %70 : vector<1x64x128xbf16> to vector<64x128xbf16>
    %cst_90 = arith.constant dense<0.000000e+00> : vector<8x128xf32>
    %72 = tpu.matmul %69, %71, %cst_90 {dimension_numbers = #tpu.dot_dimension_numbers<[1], [0], [0], [1], [0, 0, 1, 1], [], []>} : vector<8x64xbf16>, vector<64x128xbf16>, vector<8x128xf32> -> vector<8x128xf32>
    %73 = arith.addf %67, %72 : vector<8x128xf32>
    %c0_91 = arith.constant 0 : index
    %c1_92 = arith.constant 1 : index
    %c1_93 = arith.constant 1 : index
    %c0_94 = arith.constant 0 : index
    %c0_95 = arith.constant 0 : index
    %74 = vector.load %arg2[%c0_91, %c1_92, %c1_93, %c0_94, %c0_95] : memref<1x4x5x9x64xbf16, #tpu.memory_space<vmem>>, vector<1x1x1x8x64xbf16>
    %75 = vector.shape_cast %74 : vector<1x1x1x8x64xbf16> to vector<8x64xbf16>
    %c1_96 = arith.constant 1 : index
    %c0_97 = arith.constant 0 : index
    %c0_98 = arith.constant 0 : index
    %76 = vector.load %arg3[%c1_96, %c0_97, %c0_98] : memref<9x64x128xbf16, #tpu.memory_space<vmem>>, vector<1x64x128xbf16>
    %77 = vector.shape_cast %76 : vector<1x64x128xbf16> to vector<64x128xbf16>
    %cst_99 = arith.constant dense<0.000000e+00> : vector<8x128xf32>
    %78 = tpu.matmul %75, %77, %cst_99 {dimension_numbers = #tpu.dot_dimension_numbers<[1], [0], [0], [1], [0, 0, 1, 1], [], []>} : vector<8x64xbf16>, vector<64x128xbf16>, vector<8x128xf32> -> vector<8x128xf32>
    %79 = arith.addf %73, %78 : vector<8x128xf32>
    %c0_100 = arith.constant 0 : index
    %c0_101 = arith.constant 0 : index
    %c1_102 = arith.constant 1 : index
    %c1_103 = arith.constant 1 : index
    %c0_104 = arith.constant 0 : index
    %80 = vector.load %arg2[%c0_100, %c0_101, %c1_102, %c1_103, %c0_104] : memref<1x4x5x9x64xbf16, #tpu.memory_space<vmem>>, vector<1x1x1x8x64xbf16>
    %81 = vector.shape_cast %80 : vector<1x1x1x8x64xbf16> to vector<8x64xbf16>
    %c2_105 = arith.constant 2 : index
    %c0_106 = arith.constant 0 : index
    %c0_107 = arith.constant 0 : index
    %82 = vector.load %arg3[%c2_105, %c0_106, %c0_107] : memref<9x64x128xbf16, #tpu.memory_space<vmem>>, vector<1x64x128xbf16>
    %83 = vector.shape_cast %82 : vector<1x64x128xbf16> to vector<64x128xbf16>
    %cst_108 = arith.constant dense<0.000000e+00> : vector<8x128xf32>
    %84 = tpu.matmul %81, %83, %cst_108 {dimension_numbers = #tpu.dot_dimension_numbers<[1], [0], [0], [1], [0, 0, 1, 1], [], []>} : vector<8x64xbf16>, vector<64x128xbf16>, vector<8x128xf32> -> vector<8x128xf32>
    %85 = arith.addf %79, %84 : vector<8x128xf32>
    %c0_109 = arith.constant 0 : index
    %c2_110 = arith.constant 2 : index
    %c1_111 = arith.constant 1 : index
    %c0_112 = arith.constant 0 : index
    %c0_113 = arith.constant 0 : index
    %86 = vector.load %arg2[%c0_109, %c2_110, %c1_111, %c0_112, %c0_113] : memref<1x4x5x9x64xbf16, #tpu.memory_space<vmem>>, vector<1x1x1x8x64xbf16>
    %87 = vector.shape_cast %86 : vector<1x1x1x8x64xbf16> to vector<8x64xbf16>
    %c3_114 = arith.constant 3 : index
    %c0_115 = arith.constant 0 : index
    %c0_116 = arith.constant 0 : index
    %88 = vector.load %arg3[%c3_114, %c0_115, %c0_116] : memref<9x64x128xbf16, #tpu.memory_space<vmem>>, vector<1x64x128xbf16>
    %89 = vector.shape_cast %88 : vector<1x64x128xbf16> to vector<64x128xbf16>
    %cst_117 = arith.constant dense<0.000000e+00> : vector<8x128xf32>
    %90 = tpu.matmul %87, %89, %cst_117 {dimension_numbers = #tpu.dot_dimension_numbers<[1], [0], [0], [1], [0, 0, 1, 1], [], []>} : vector<8x64xbf16>, vector<64x128xbf16>, vector<8x128xf32> -> vector<8x128xf32>
    %91 = arith.addf %85, %90 : vector<8x128xf32>
    %c0_118 = arith.constant 0 : index
    %c3_119 = arith.constant 3 : index
    %c1_120 = arith.constant 1 : index
    %c0_121 = arith.constant 0 : index
    %c0_122 = arith.constant 0 : index
    %92 = vector.load %arg2[%c0_118, %c3_119, %c1_120, %c0_121, %c0_122] : memref<1x4x5x9x64xbf16, #tpu.memory_space<vmem>>, vector<1x1x1x8x64xbf16>
    %93 = vector.shape_cast %92 : vector<1x1x1x8x64xbf16> to vector<8x64xbf16>
    %c4_123 = arith.constant 4 : index
    %c0_124 = arith.constant 0 : index
    %c0_125 = arith.constant 0 : index
    %94 = vector.load %arg3[%c4_123, %c0_124, %c0_125] : memref<9x64x128xbf16, #tpu.memory_space<vmem>>, vector<1x64x128xbf16>
    %95 = vector.shape_cast %94 : vector<1x64x128xbf16> to vector<64x128xbf16>
    %cst_126 = arith.constant dense<0.000000e+00> : vector<8x128xf32>
    %96 = tpu.matmul %93, %95, %cst_126 {dimension_numbers = #tpu.dot_dimension_numbers<[1], [0], [0], [1], [0, 0, 1, 1], [], []>} : vector<8x64xbf16>, vector<64x128xbf16>, vector<8x128xf32> -> vector<8x128xf32>
    %97 = arith.addf %91, %96 : vector<8x128xf32>
    %c0_127 = arith.constant 0 : index
    %c2_128 = arith.constant 2 : index
    %c1_129 = arith.constant 1 : index
    %c1_130 = arith.constant 1 : index
    %c0_131 = arith.constant 0 : index
    %98 = vector.load %arg2[%c0_127, %c2_128, %c1_129, %c1_130, %c0_131] : memref<1x4x5x9x64xbf16, #tpu.memory_space<vmem>>, vector<1x1x1x8x64xbf16>
    %99 = vector.shape_cast %98 : vector<1x1x1x8x64xbf16> to vector<8x64xbf16>
    %c5_132 = arith.constant 5 : index
    %c0_133 = arith.constant 0 : index
    %c0_134 = arith.constant 0 : index
    %100 = vector.load %arg3[%c5_132, %c0_133, %c0_134] : memref<9x64x128xbf16, #tpu.memory_space<vmem>>, vector<1x64x128xbf16>
    %101 = vector.shape_cast %100 : vector<1x64x128xbf16> to vector<64x128xbf16>
    %cst_135 = arith.constant dense<0.000000e+00> : vector<8x128xf32>
    %102 = tpu.matmul %99, %101, %cst_135 {dimension_numbers = #tpu.dot_dimension_numbers<[1], [0], [0], [1], [0, 0, 1, 1], [], []>} : vector<8x64xbf16>, vector<64x128xbf16>, vector<8x128xf32> -> vector<8x128xf32>
    %103 = arith.addf %97, %102 : vector<8x128xf32>
    %c0_136 = arith.constant 0 : index
    %c0_137 = arith.constant 0 : index
    %c2_138 = arith.constant 2 : index
    %c0_139 = arith.constant 0 : index
    %c0_140 = arith.constant 0 : index
    %104 = vector.load %arg2[%c0_136, %c0_137, %c2_138, %c0_139, %c0_140] : memref<1x4x5x9x64xbf16, #tpu.memory_space<vmem>>, vector<1x1x1x8x64xbf16>
    %105 = vector.shape_cast %104 : vector<1x1x1x8x64xbf16> to vector<8x64xbf16>
    %c6_141 = arith.constant 6 : index
    %c0_142 = arith.constant 0 : index
    %c0_143 = arith.constant 0 : index
    %106 = vector.load %arg3[%c6_141, %c0_142, %c0_143] : memref<9x64x128xbf16, #tpu.memory_space<vmem>>, vector<1x64x128xbf16>
    %107 = vector.shape_cast %106 : vector<1x64x128xbf16> to vector<64x128xbf16>
    %cst_144 = arith.constant dense<0.000000e+00> : vector<8x128xf32>
    %108 = tpu.matmul %105, %107, %cst_144 {dimension_numbers = #tpu.dot_dimension_numbers<[1], [0], [0], [1], [0, 0, 1, 1], [], []>} : vector<8x64xbf16>, vector<64x128xbf16>, vector<8x128xf32> -> vector<8x128xf32>
    %109 = arith.addf %103, %108 : vector<8x128xf32>
    %c0_145 = arith.constant 0 : index
    %c1_146 = arith.constant 1 : index
    %c2_147 = arith.constant 2 : index
    %c0_148 = arith.constant 0 : index
    %c0_149 = arith.constant 0 : index
    %110 = vector.load %arg2[%c0_145, %c1_146, %c2_147, %c0_148, %c0_149] : memref<1x4x5x9x64xbf16, #tpu.memory_space<vmem>>, vector<1x1x1x8x64xbf16>
    %111 = vector.shape_cast %110 : vector<1x1x1x8x64xbf16> to vector<8x64xbf16>
    %c7_150 = arith.constant 7 : index
    %c0_151 = arith.constant 0 : index
    %c0_152 = arith.constant 0 : index
    %112 = vector.load %arg3[%c7_150, %c0_151, %c0_152] : memref<9x64x128xbf16, #tpu.memory_space<vmem>>, vector<1x64x128xbf16>
    %113 = vector.shape_cast %112 : vector<1x64x128xbf16> to vector<64x128xbf16>
    %cst_153 = arith.constant dense<0.000000e+00> : vector<8x128xf32>
    %114 = tpu.matmul %111, %113, %cst_153 {dimension_numbers = #tpu.dot_dimension_numbers<[1], [0], [0], [1], [0, 0, 1, 1], [], []>} : vector<8x64xbf16>, vector<64x128xbf16>, vector<8x128xf32> -> vector<8x128xf32>
    %115 = arith.addf %109, %114 : vector<8x128xf32>
    %c0_154 = arith.constant 0 : index
    %c0_155 = arith.constant 0 : index
    %c2_156 = arith.constant 2 : index
    %c1_157 = arith.constant 1 : index
    %c0_158 = arith.constant 0 : index
    %116 = vector.load %arg2[%c0_154, %c0_155, %c2_156, %c1_157, %c0_158] : memref<1x4x5x9x64xbf16, #tpu.memory_space<vmem>>, vector<1x1x1x8x64xbf16>
    %117 = vector.shape_cast %116 : vector<1x1x1x8x64xbf16> to vector<8x64xbf16>
    %c8_159 = arith.constant 8 : index
    %c0_160 = arith.constant 0 : index
    %c0_161 = arith.constant 0 : index
    %118 = vector.load %arg3[%c8_159, %c0_160, %c0_161] : memref<9x64x128xbf16, #tpu.memory_space<vmem>>, vector<1x64x128xbf16>
    %119 = vector.shape_cast %118 : vector<1x64x128xbf16> to vector<64x128xbf16>
    %cst_162 = arith.constant dense<0.000000e+00> : vector<8x128xf32>
    %120 = tpu.matmul %117, %119, %cst_162 {dimension_numbers = #tpu.dot_dimension_numbers<[1], [0], [0], [1], [0, 0, 1, 1], [], []>} : vector<8x64xbf16>, vector<64x128xbf16>, vector<8x128xf32> -> vector<8x128xf32>
    %121 = arith.addf %115, %120 : vector<8x128xf32>
    %122 = vector.broadcast %0 : vector<1x128xf32> to vector<8x128xf32>
    %123 = arith.mulf %121, %122 : vector<8x128xf32>
    %124 = vector.broadcast %1 : vector<1x128xf32> to vector<8x128xf32>
    %125 = arith.addf %123, %124 : vector<8x128xf32>
    %cst_163 = arith.constant 0.000000e+00 : f32
    %126 = vector.broadcast %cst_163 : f32 to vector<8x128xf32>
    %127 = arith.maximumf %125, %126 : vector<8x128xf32>
    %128 = arith.truncf %127 : vector<8x128xf32> to vector<8x128xbf16>
    %c0_164 = arith.constant 0 : index
    %c1_165 = arith.constant 1 : index
    %c0_166 = arith.constant 0 : index
    %c0_167 = arith.constant 0 : index
    %129 = vector.load %arg6[%c0_164, %c1_165, %c0_166, %c0_167] : memref<1x4x8x128xbf16, #tpu.memory_space<vmem>>, vector<1x1x8x128xbf16>
    %130 = vector.shape_cast %129 : vector<1x1x8x128xbf16> to vector<8x128xbf16>
    %131 = vector.shape_cast %128 : vector<8x128xbf16> to vector<1x1x8x128xbf16>
    tpu.vector_store %arg6[%c0_164, %c1_165, %c0_166, %c0_167], %131 {strides = array<i32>} : memref<1x4x8x128xbf16, #tpu.memory_space<vmem>>, vector<1x1x8x128xbf16>,
    %cst_168 = arith.constant 0.000000e+00 : f32
    %132 = vector.broadcast %cst_168 : f32 to vector<8x128xf32>
    %c0_169 = arith.constant 0 : index
    %c0_170 = arith.constant 0 : index
    %c2_171 = arith.constant 2 : index
    %c0_172 = arith.constant 0 : index
    %c0_173 = arith.constant 0 : index
    %133 = vector.load %arg2[%c0_169, %c0_170, %c2_171, %c0_172, %c0_173] : memref<1x4x5x9x64xbf16, #tpu.memory_space<vmem>>, vector<1x1x1x8x64xbf16>
    %134 = vector.shape_cast %133 : vector<1x1x1x8x64xbf16> to vector<8x64xbf16>
    %c0_174 = arith.constant 0 : index
    %c0_175 = arith.constant 0 : index
    %c0_176 = arith.constant 0 : index
    %135 = vector.load %arg3[%c0_174, %c0_175, %c0_176] : memref<9x64x128xbf16, #tpu.memory_space<vmem>>, vector<1x64x128xbf16>
    %136 = vector.shape_cast %135 : vector<1x64x128xbf16> to vector<64x128xbf16>
    %cst_177 = arith.constant dense<0.000000e+00> : vector<8x128xf32>
    %137 = tpu.matmul %134, %136, %cst_177 {dimension_numbers = #tpu.dot_dimension_numbers<[1], [0], [0], [1], [0, 0, 1, 1], [], []>} : vector<8x64xbf16>, vector<64x128xbf16>, vector<8x128xf32> -> vector<8x128xf32>
    %138 = arith.addf %132, %137 : vector<8x128xf32>
    %c0_178 = arith.constant 0 : index
    %c1_179 = arith.constant 1 : index
    %c2_180 = arith.constant 2 : index
    %c0_181 = arith.constant 0 : index
    %c0_182 = arith.constant 0 : index
    %139 = vector.load %arg2[%c0_178, %c1_179, %c2_180, %c0_181, %c0_182] : memref<1x4x5x9x64xbf16, #tpu.memory_space<vmem>>, vector<1x1x1x8x64xbf16>
    %140 = vector.shape_cast %139 : vector<1x1x1x8x64xbf16> to vector<8x64xbf16>
    %c1_183 = arith.constant 1 : index
    %c0_184 = arith.constant 0 : index
    %c0_185 = arith.constant 0 : index
    %141 = vector.load %arg3[%c1_183, %c0_184, %c0_185] : memref<9x64x128xbf16, #tpu.memory_space<vmem>>, vector<1x64x128xbf16>
    %142 = vector.shape_cast %141 : vector<1x64x128xbf16> to vector<64x128xbf16>
    %cst_186 = arith.constant dense<0.000000e+00> : vector<8x128xf32>
    %143 = tpu.matmul %140, %142, %cst_186 {dimension_numbers = #tpu.dot_dimension_numbers<[1], [0], [0], [1], [0, 0, 1, 1], [], []>} : vector<8x64xbf16>, vector<64x128xbf16>, vector<8x128xf32> -> vector<8x128xf32>
    %144 = arith.addf %138, %143 : vector<8x128xf32>
    %c0_187 = arith.constant 0 : index
    %c0_188 = arith.constant 0 : index
    %c2_189 = arith.constant 2 : index
    %c1_190 = arith.constant 1 : index
    %c0_191 = arith.constant 0 : index
    %145 = vector.load %arg2[%c0_187, %c0_188, %c2_189, %c1_190, %c0_191] : memref<1x4x5x9x64xbf16, #tpu.memory_space<vmem>>, vector<1x1x1x8x64xbf16>
    %146 = vector.shape_cast %145 : vector<1x1x1x8x64xbf16> to vector<8x64xbf16>
    %c2_192 = arith.constant 2 : index
    %c0_193 = arith.constant 0 : index
    %c0_194 = arith.constant 0 : index
    %147 = vector.load %arg3[%c2_192, %c0_193, %c0_194] : memref<9x64x128xbf16, #tpu.memory_space<vmem>>, vector<1x64x128xbf16>
    %148 = vector.shape_cast %147 : vector<1x64x128xbf16> to vector<64x128xbf16>
    %cst_195 = arith.constant dense<0.000000e+00> : vector<8x128xf32>
    %149 = tpu.matmul %146, %148, %cst_195 {dimension_numbers = #tpu.dot_dimension_numbers<[1], [0], [0], [1], [0, 0, 1, 1], [], []>} : vector<8x64xbf16>, vector<64x128xbf16>, vector<8x128xf32> -> vector<8x128xf32>
    %150 = arith.addf %144, %149 : vector<8x128xf32>
    %c0_196 = arith.constant 0 : index
    %c2_197 = arith.constant 2 : index
    %c2_198 = arith.constant 2 : index
    %c0_199 = arith.constant 0 : index
    %c0_200 = arith.constant 0 : index
    %151 = vector.load %arg2[%c0_196, %c2_197, %c2_198, %c0_199, %c0_200] : memref<1x4x5x9x64xbf16, #tpu.memory_space<vmem>>, vector<1x1x1x8x64xbf16>
    %152 = vector.shape_cast %151 : vector<1x1x1x8x64xbf16> to vector<8x64xbf16>
    %c3_201 = arith.constant 3 : index
    %c0_202 = arith.constant 0 : index
    %c0_203 = arith.constant 0 : index
    %153 = vector.load %arg3[%c3_201, %c0_202, %c0_203] : memref<9x64x128xbf16, #tpu.memory_space<vmem>>, vector<1x64x128xbf16>
    %154 = vector.shape_cast %153 : vector<1x64x128xbf16> to vector<64x128xbf16>
    %cst_204 = arith.constant dense<0.000000e+00> : vector<8x128xf32>
    %155 = tpu.matmul %152, %154, %cst_204 {dimension_numbers = #tpu.dot_dimension_numbers<[1], [0], [0], [1], [0, 0, 1, 1], [], []>} : vector<8x64xbf16>, vector<64x128xbf16>, vector<8x128xf32> -> vector<8x128xf32>
    %156 = arith.addf %150, %155 : vector<8x128xf32>
    %c0_205 = arith.constant 0 : index
    %c3_206 = arith.constant 3 : index
    %c2_207 = arith.constant 2 : index
    %c0_208 = arith.constant 0 : index
    %c0_209 = arith.constant 0 : index
    %157 = vector.load %arg2[%c0_205, %c3_206, %c2_207, %c0_208, %c0_209] : memref<1x4x5x9x64xbf16, #tpu.memory_space<vmem>>, vector<1x1x1x8x64xbf16>
    %158 = vector.shape_cast %157 : vector<1x1x1x8x64xbf16> to vector<8x64xbf16>
    %c4_210 = arith.constant 4 : index
    %c0_211 = arith.constant 0 : index
    %c0_212 = arith.constant 0 : index
    %159 = vector.load %arg3[%c4_210, %c0_211, %c0_212] : memref<9x64x128xbf16, #tpu.memory_space<vmem>>, vector<1x64x128xbf16>
    %160 = vector.shape_cast %159 : vector<1x64x128xbf16> to vector<64x128xbf16>
    %cst_213 = arith.constant dense<0.000000e+00> : vector<8x128xf32>
    %161 = tpu.matmul %158, %160, %cst_213 {dimension_numbers = #tpu.dot_dimension_numbers<[1], [0], [0], [1], [0, 0, 1, 1], [], []>} : vector<8x64xbf16>, vector<64x128xbf16>, vector<8x128xf32> -> vector<8x128xf32>
    %162 = arith.addf %156, %161 : vector<8x128xf32>
    %c0_214 = arith.constant 0 : index
    %c2_215 = arith.constant 2 : index
    %c2_216 = arith.constant 2 : index
    %c1_217 = arith.constant 1 : index
    %c0_218 = arith.constant 0 : index
    %163 = vector.load %arg2[%c0_214, %c2_215, %c2_216, %c1_217, %c0_218] : memref<1x4x5x9x64xbf16, #tpu.memory_space<vmem>>, vector<1x1x1x8x64xbf16>
    %164 = vector.shape_cast %163 : vector<1x1x1x8x64xbf16> to vector<8x64xbf16>
    %c5_219 = arith.constant 5 : index
    %c0_220 = arith.constant 0 : index
    %c0_221 = arith.constant 0 : index
    %165 = vector.load %arg3[%c5_219, %c0_220, %c0_221] : memref<9x64x128xbf16, #tpu.memory_space<vmem>>, vector<1x64x128xbf16>
    %166 = vector.shape_cast %165 : vector<1x64x128xbf16> to vector<64x128xbf16>
    %cst_222 = arith.constant dense<0.000000e+00> : vector<8x128xf32>
    %167 = tpu.matmul %164, %166, %cst_222 {dimension_numbers = #tpu.dot_dimension_numbers<[1], [0], [0], [1], [0, 0, 1, 1], [], []>} : vector<8x64xbf16>, vector<64x128xbf16>, vector<8x128xf32> -> vector<8x128xf32>
    %168 = arith.addf %162, %167 : vector<8x128xf32>
    %c0_223 = arith.constant 0 : index
    %c0_224 = arith.constant 0 : index
    %c3_225 = arith.constant 3 : index
    %c0_226 = arith.constant 0 : index
    %c0_227 = arith.constant 0 : index
    %169 = vector.load %arg2[%c0_223, %c0_224, %c3_225, %c0_226, %c0_227] : memref<1x4x5x9x64xbf16, #tpu.memory_space<vmem>>, vector<1x1x1x8x64xbf16>
    %170 = vector.shape_cast %169 : vector<1x1x1x8x64xbf16> to vector<8x64xbf16>
    %c6_228 = arith.constant 6 : index
    %c0_229 = arith.constant 0 : index
    %c0_230 = arith.constant 0 : index
    %171 = vector.load %arg3[%c6_228, %c0_229, %c0_230] : memref<9x64x128xbf16, #tpu.memory_space<vmem>>, vector<1x64x128xbf16>
    %172 = vector.shape_cast %171 : vector<1x64x128xbf16> to vector<64x128xbf16>
    %cst_231 = arith.constant dense<0.000000e+00> : vector<8x128xf32>
    %173 = tpu.matmul %170, %172, %cst_231 {dimension_numbers = #tpu.dot_dimension_numbers<[1], [0], [0], [1], [0, 0, 1, 1], [], []>} : vector<8x64xbf16>, vector<64x128xbf16>, vector<8x128xf32> -> vector<8x128xf32>
    %174 = arith.addf %168, %173 : vector<8x128xf32>
    %c0_232 = arith.constant 0 : index
    %c1_233 = arith.constant 1 : index
    %c3_234 = arith.constant 3 : index
    %c0_235 = arith.constant 0 : index
    %c0_236 = arith.constant 0 : index
    %175 = vector.load %arg2[%c0_232, %c1_233, %c3_234, %c0_235, %c0_236] : memref<1x4x5x9x64xbf16, #tpu.memory_space<vmem>>, vector<1x1x1x8x64xbf16>
    %176 = vector.shape_cast %175 : vector<1x1x1x8x64xbf16> to vector<8x64xbf16>
    %c7_237 = arith.constant 7 : index
    %c0_238 = arith.constant 0 : index
    %c0_239 = arith.constant 0 : index
    %177 = vector.load %arg3[%c7_237, %c0_238, %c0_239] : memref<9x64x128xbf16, #tpu.memory_space<vmem>>, vector<1x64x128xbf16>
    %178 = vector.shape_cast %177 : vector<1x64x128xbf16> to vector<64x128xbf16>
    %cst_240 = arith.constant dense<0.000000e+00> : vector<8x128xf32>
    %179 = tpu.matmul %176, %178, %cst_240 {dimension_numbers = #tpu.dot_dimension_numbers<[1], [0], [0], [1], [0, 0, 1, 1], [], []>} : vector<8x64xbf16>, vector<64x128xbf16>, vector<8x128xf32> -> vector<8x128xf32>
    %180 = arith.addf %174, %179 : vector<8x128xf32>
    %c0_241 = arith.constant 0 : index
    %c0_242 = arith.constant 0 : index
    %c3_243 = arith.constant 3 : index
    %c1_244 = arith.constant 1 : index
    %c0_245 = arith.constant 0 : index
    %181 = vector.load %arg2[%c0_241, %c0_242, %c3_243, %c1_244, %c0_245] : memref<1x4x5x9x64xbf16, #tpu.memory_space<vmem>>, vector<1x1x1x8x64xbf16>
    %182 = vector.shape_cast %181 : vector<1x1x1x8x64xbf16> to vector<8x64xbf16>
    %c8_246 = arith.constant 8 : index
    %c0_247 = arith.constant 0 : index
    %c0_248 = arith.constant 0 : index
    %183 = vector.load %arg3[%c8_246, %c0_247, %c0_248] : memref<9x64x128xbf16, #tpu.memory_space<vmem>>, vector<1x64x128xbf16>
    %184 = vector.shape_cast %183 : vector<1x64x128xbf16> to vector<64x128xbf16>
    %cst_249 = arith.constant dense<0.000000e+00> : vector<8x128xf32>
    %185 = tpu.matmul %182, %184, %cst_249 {dimension_numbers = #tpu.dot_dimension_numbers<[1], [0], [0], [1], [0, 0, 1, 1], [], []>} : vector<8x64xbf16>, vector<64x128xbf16>, vector<8x128xf32> -> vector<8x128xf32>
    %186 = arith.addf %180, %185 : vector<8x128xf32>
    %187 = vector.broadcast %0 : vector<1x128xf32> to vector<8x128xf32>
    %188 = arith.mulf %186, %187 : vector<8x128xf32>
    %189 = vector.broadcast %1 : vector<1x128xf32> to vector<8x128xf32>
    %190 = arith.addf %188, %189 : vector<8x128xf32>
    %cst_250 = arith.constant 0.000000e+00 : f32
    %191 = vector.broadcast %cst_250 : f32 to vector<8x128xf32>
    %192 = arith.maximumf %190, %191 : vector<8x128xf32>
    %193 = arith.truncf %192 : vector<8x128xf32> to vector<8x128xbf16>
    %c0_251 = arith.constant 0 : index
    %c2_252 = arith.constant 2 : index
    %c0_253 = arith.constant 0 : index
    %c0_254 = arith.constant 0 : index
    %194 = vector.load %arg6[%c0_251, %c2_252, %c0_253, %c0_254] : memref<1x4x8x128xbf16, #tpu.memory_space<vmem>>, vector<1x1x8x128xbf16>
    %195 = vector.shape_cast %194 : vector<1x1x8x128xbf16> to vector<8x128xbf16>
    %196 = vector.shape_cast %193 : vector<8x128xbf16> to vector<1x1x8x128xbf16>
    tpu.vector_store %arg6[%c0_251, %c2_252, %c0_253, %c0_254], %196 {strides = array<i32>} : memref<1x4x8x128xbf16, #tpu.memory_space<vmem>>, vector<1x1x8x128xbf16>,
    %cst_255 = arith.constant 0.000000e+00 : f32
    %197 = vector.broadcast %cst_255 : f32 to vector<8x128xf32>
    %c0_256 = arith.constant 0 : index
    %c0_257 = arith.constant 0 : index
    %c3_258 = arith.constant 3 : index
    %c0_259 = arith.constant 0 : index
    %c0_260 = arith.constant 0 : index
    %198 = vector.load %arg2[%c0_256, %c0_257, %c3_258, %c0_259, %c0_260] : memref<1x4x5x9x64xbf16, #tpu.memory_space<vmem>>, vector<1x1x1x8x64xbf16>
    %199 = vector.shape_cast %198 : vector<1x1x1x8x64xbf16> to vector<8x64xbf16>
    %c0_261 = arith.constant 0 : index
    %c0_262 = arith.constant 0 : index
    %c0_263 = arith.constant 0 : index
    %200 = vector.load %arg3[%c0_261, %c0_262, %c0_263] : memref<9x64x128xbf16, #tpu.memory_space<vmem>>, vector<1x64x128xbf16>
    %201 = vector.shape_cast %200 : vector<1x64x128xbf16> to vector<64x128xbf16>
    %cst_264 = arith.constant dense<0.000000e+00> : vector<8x128xf32>
    %202 = tpu.matmul %199, %201, %cst_264 {dimension_numbers = #tpu.dot_dimension_numbers<[1], [0], [0], [1], [0, 0, 1, 1], [], []>} : vector<8x64xbf16>, vector<64x128xbf16>, vector<8x128xf32> -> vector<8x128xf32>
    %203 = arith.addf %197, %202 : vector<8x128xf32>
    %c0_265 = arith.constant 0 : index
    %c1_266 = arith.constant 1 : index
    %c3_267 = arith.constant 3 : index
    %c0_268 = arith.constant 0 : index
    %c0_269 = arith.constant 0 : index
    %204 = vector.load %arg2[%c0_265, %c1_266, %c3_267, %c0_268, %c0_269] : memref<1x4x5x9x64xbf16, #tpu.memory_space<vmem>>, vector<1x1x1x8x64xbf16>
    %205 = vector.shape_cast %204 : vector<1x1x1x8x64xbf16> to vector<8x64xbf16>
    %c1_270 = arith.constant 1 : index
    %c0_271 = arith.constant 0 : index
    %c0_272 = arith.constant 0 : index
    %206 = vector.load %arg3[%c1_270, %c0_271, %c0_272] : memref<9x64x128xbf16, #tpu.memory_space<vmem>>, vector<1x64x128xbf16>
    %207 = vector.shape_cast %206 : vector<1x64x128xbf16> to vector<64x128xbf16>
    %cst_273 = arith.constant dense<0.000000e+00> : vector<8x128xf32>
    %208 = tpu.matmul %205, %207, %cst_273 {dimension_numbers = #tpu.dot_dimension_numbers<[1], [0], [0], [1], [0, 0, 1, 1], [], []>} : vector<8x64xbf16>, vector<64x128xbf16>, vector<8x128xf32> -> vector<8x128xf32>
    %209 = arith.addf %203, %208 : vector<8x128xf32>
    %c0_274 = arith.constant 0 : index
    %c0_275 = arith.constant 0 : index
    %c3_276 = arith.constant 3 : index
    %c1_277 = arith.constant 1 : index
    %c0_278 = arith.constant 0 : index
    %210 = vector.load %arg2[%c0_274, %c0_275, %c3_276, %c1_277, %c0_278] : memref<1x4x5x9x64xbf16, #tpu.memory_space<vmem>>, vector<1x1x1x8x64xbf16>
    %211 = vector.shape_cast %210 : vector<1x1x1x8x64xbf16> to vector<8x64xbf16>
    %c2_279 = arith.constant 2 : index
    %c0_280 = arith.constant 0 : index
    %c0_281 = arith.constant 0 : index
    %212 = vector.load %arg3[%c2_279, %c0_280, %c0_281] : memref<9x64x128xbf16, #tpu.memory_space<vmem>>, vector<1x64x128xbf16>
    %213 = vector.shape_cast %212 : vector<1x64x128xbf16> to vector<64x128xbf16>
    %cst_282 = arith.constant dense<0.000000e+00> : vector<8x128xf32>
    %214 = tpu.matmul %211, %213, %cst_282 {dimension_numbers = #tpu.dot_dimension_numbers<[1], [0], [0], [1], [0, 0, 1, 1], [], []>} : vector<8x64xbf16>, vector<64x128xbf16>, vector<8x128xf32> -> vector<8x128xf32>
    %215 = arith.addf %209, %214 : vector<8x128xf32>
    %c0_283 = arith.constant 0 : index
    %c2_284 = arith.constant 2 : index
    %c3_285 = arith.constant 3 : index
    %c0_286 = arith.constant 0 : index
    %c0_287 = arith.constant 0 : index
    %216 = vector.load %arg2[%c0_283, %c2_284, %c3_285, %c0_286, %c0_287] : memref<1x4x5x9x64xbf16, #tpu.memory_space<vmem>>, vector<1x1x1x8x64xbf16>
    %217 = vector.shape_cast %216 : vector<1x1x1x8x64xbf16> to vector<8x64xbf16>
    %c3_288 = arith.constant 3 : index
    %c0_289 = arith.constant 0 : index
    %c0_290 = arith.constant 0 : index
    %218 = vector.load %arg3[%c3_288, %c0_289, %c0_290] : memref<9x64x128xbf16, #tpu.memory_space<vmem>>, vector<1x64x128xbf16>
    %219 = vector.shape_cast %218 : vector<1x64x128xbf16> to vector<64x128xbf16>
    %cst_291 = arith.constant dense<0.000000e+00> : vector<8x128xf32>
    %220 = tpu.matmul %217, %219, %cst_291 {dimension_numbers = #tpu.dot_dimension_numbers<[1], [0], [0], [1], [0, 0, 1, 1], [], []>} : vector<8x64xbf16>, vector<64x128xbf16>, vector<8x128xf32> -> vector<8x128xf32>
    %221 = arith.addf %215, %220 : vector<8x128xf32>
    %c0_292 = arith.constant 0 : index
    %c3_293 = arith.constant 3 : index
    %c3_294 = arith.constant 3 : index
    %c0_295 = arith.constant 0 : index
    %c0_296 = arith.constant 0 : index
    %222 = vector.load %arg2[%c0_292, %c3_293, %c3_294, %c0_295, %c0_296] : memref<1x4x5x9x64xbf16, #tpu.memory_space<vmem>>, vector<1x1x1x8x64xbf16>
    %223 = vector.shape_cast %222 : vector<1x1x1x8x64xbf16> to vector<8x64xbf16>
    %c4_297 = arith.constant 4 : index
    %c0_298 = arith.constant 0 : index
    %c0_299 = arith.constant 0 : index
    %224 = vector.load %arg3[%c4_297, %c0_298, %c0_299] : memref<9x64x128xbf16, #tpu.memory_space<vmem>>, vector<1x64x128xbf16>
    %225 = vector.shape_cast %224 : vector<1x64x128xbf16> to vector<64x128xbf16>
    %cst_300 = arith.constant dense<0.000000e+00> : vector<8x128xf32>
    %226 = tpu.matmul %223, %225, %cst_300 {dimension_numbers = #tpu.dot_dimension_numbers<[1], [0], [0], [1], [0, 0, 1, 1], [], []>} : vector<8x64xbf16>, vector<64x128xbf16>, vector<8x128xf32> -> vector<8x128xf32>
    %227 = arith.addf %221, %226 : vector<8x128xf32>
    %c0_301 = arith.constant 0 : index
    %c2_302 = arith.constant 2 : index
    %c3_303 = arith.constant 3 : index
    %c1_304 = arith.constant 1 : index
    %c0_305 = arith.constant 0 : index
    %228 = vector.load %arg2[%c0_301, %c2_302, %c3_303, %c1_304, %c0_305] : memref<1x4x5x9x64xbf16, #tpu.memory_space<vmem>>, vector<1x1x1x8x64xbf16>
    %229 = vector.shape_cast %228 : vector<1x1x1x8x64xbf16> to vector<8x64xbf16>
    %c5_306 = arith.constant 5 : index
    %c0_307 = arith.constant 0 : index
    %c0_308 = arith.constant 0 : index
    %230 = vector.load %arg3[%c5_306, %c0_307, %c0_308] : memref<9x64x128xbf16, #tpu.memory_space<vmem>>, vector<1x64x128xbf16>
    %231 = vector.shape_cast %230 : vector<1x64x128xbf16> to vector<64x128xbf16>
    %cst_309 = arith.constant dense<0.000000e+00> : vector<8x128xf32>
    %232 = tpu.matmul %229, %231, %cst_309 {dimension_numbers = #tpu.dot_dimension_numbers<[1], [0], [0], [1], [0, 0, 1, 1], [], []>} : vector<8x64xbf16>, vector<64x128xbf16>, vector<8x128xf32> -> vector<8x128xf32>
    %233 = arith.addf %227, %232 : vector<8x128xf32>
    %c0_310 = arith.constant 0 : index
    %c0_311 = arith.constant 0 : index
    %c4_312 = arith.constant 4 : index
    %c0_313 = arith.constant 0 : index
    %c0_314 = arith.constant 0 : index
    %234 = vector.load %arg2[%c0_310, %c0_311, %c4_312, %c0_313, %c0_314] : memref<1x4x5x9x64xbf16, #tpu.memory_space<vmem>>, vector<1x1x1x8x64xbf16>
    %235 = vector.shape_cast %234 : vector<1x1x1x8x64xbf16> to vector<8x64xbf16>
    %c6_315 = arith.constant 6 : index
    %c0_316 = arith.constant 0 : index
    %c0_317 = arith.constant 0 : index
    %236 = vector.load %arg3[%c6_315, %c0_316, %c0_317] : memref<9x64x128xbf16, #tpu.memory_space<vmem>>, vector<1x64x128xbf16>
    %237 = vector.shape_cast %236 : vector<1x64x128xbf16> to vector<64x128xbf16>
    %cst_318 = arith.constant dense<0.000000e+00> : vector<8x128xf32>
    %238 = tpu.matmul %235, %237, %cst_318 {dimension_numbers = #tpu.dot_dimension_numbers<[1], [0], [0], [1], [0, 0, 1, 1], [], []>} : vector<8x64xbf16>, vector<64x128xbf16>, vector<8x128xf32> -> vector<8x128xf32>
    %239 = arith.addf %233, %238 : vector<8x128xf32>
    %c0_319 = arith.constant 0 : index
    %c1_320 = arith.constant 1 : index
    %c4_321 = arith.constant 4 : index
    %c0_322 = arith.constant 0 : index
    %c0_323 = arith.constant 0 : index
    %240 = vector.load %arg2[%c0_319, %c1_320, %c4_321, %c0_322, %c0_323] : memref<1x4x5x9x64xbf16, #tpu.memory_space<vmem>>, vector<1x1x1x8x64xbf16>
    %241 = vector.shape_cast %240 : vector<1x1x1x8x64xbf16> to vector<8x64xbf16>
    %c7_324 = arith.constant 7 : index
    %c0_325 = arith.constant 0 : index
    %c0_326 = arith.constant 0 : index
    %242 = vector.load %arg3[%c7_324, %c0_325, %c0_326] : memref<9x64x128xbf16, #tpu.memory_space<vmem>>, vector<1x64x128xbf16>
    %243 = vector.shape_cast %242 : vector<1x64x128xbf16> to vector<64x128xbf16>
    %cst_327 = arith.constant dense<0.000000e+00> : vector<8x128xf32>
    %244 = tpu.matmul %241, %243, %cst_327 {dimension_numbers = #tpu.dot_dimension_numbers<[1], [0], [0], [1], [0, 0, 1, 1], [], []>} : vector<8x64xbf16>, vector<64x128xbf16>, vector<8x128xf32> -> vector<8x128xf32>
    %245 = arith.addf %239, %244 : vector<8x128xf32>
    %c0_328 = arith.constant 0 : index
    %c0_329 = arith.constant 0 : index
    %c4_330 = arith.constant 4 : index
    %c1_331 = arith.constant 1 : index
    %c0_332 = arith.constant 0 : index
    %246 = vector.load %arg2[%c0_328, %c0_329, %c4_330, %c1_331, %c0_332] : memref<1x4x5x9x64xbf16, #tpu.memory_space<vmem>>, vector<1x1x1x8x64xbf16>
    %247 = vector.shape_cast %246 : vector<1x1x1x8x64xbf16> to vector<8x64xbf16>
    %c8_333 = arith.constant 8 : index
    %c0_334 = arith.constant 0 : index
    %c0_335 = arith.constant 0 : index
    %248 = vector.load %arg3[%c8_333, %c0_334, %c0_335] : memref<9x64x128xbf16, #tpu.memory_space<vmem>>, vector<1x64x128xbf16>
    %249 = vector.shape_cast %248 : vector<1x64x128xbf16> to vector<64x128xbf16>
    %cst_336 = arith.constant dense<0.000000e+00> : vector<8x128xf32>
    %250 = tpu.matmul %247, %249, %cst_336 {dimension_numbers = #tpu.dot_dimension_numbers<[1], [0], [0], [1], [0, 0, 1, 1], [], []>} : vector<8x64xbf16>, vector<64x128xbf16>, vector<8x128xf32> -> vector<8x128xf32>
    %251 = arith.addf %245, %250 : vector<8x128xf32>
    %252 = vector.broadcast %0 : vector<1x128xf32> to vector<8x128xf32>
    %253 = arith.mulf %251, %252 : vector<8x128xf32>
    %254 = vector.broadcast %1 : vector<1x128xf32> to vector<8x128xf32>
    %255 = arith.addf %253, %254 : vector<8x128xf32>
    %cst_337 = arith.constant 0.000000e+00 : f32
    %256 = vector.broadcast %cst_337 : f32 to vector<8x128xf32>
    %257 = arith.maximumf %255, %256 : vector<8x128xf32>
    %258 = arith.truncf %257 : vector<8x128xf32> to vector<8x128xbf16>
    %c0_338 = arith.constant 0 : index
    %c3_339 = arith.constant 3 : index
    %c0_340 = arith.constant 0 : index
    %c0_341 = arith.constant 0 : index
    %259 = vector.load %arg6[%c0_338, %c3_339, %c0_340, %c0_341] : memref<1x4x8x128xbf16, #tpu.memory_space<vmem>>, vector<1x1x8x128xbf16>
    %260 = vector.shape_cast %259 : vector<1x1x8x128xbf16> to vector<8x128xbf16>
    %261 = vector.shape_cast %258 : vector<8x128xbf16> to vector<1x1x8x128xbf16>
    tpu.vector_store %arg6[%c0_338, %c3_339, %c0_340, %c0_341], %261 {strides = array<i32>} : memref<1x4x8x128xbf16, #tpu.memory_space<vmem>>, vector<1x1x8x128xbf16>,
    return
  }
  func.func @transform_0(%arg0: i32, %arg1: i32) -> (i32, i32, i32, i32, i32) {
    %c2_i32 = arith.constant 2 : i32
    %0 = arith.muli %arg0, %c2_i32 : i32
    %1 = arith.addi %0, %arg1 : i32
    %c0_i32 = arith.constant 0 : i32
    %c0_i32_0 = arith.constant 0 : i32
    %c0_i32_1 = arith.constant 0 : i32
    %c0_i32_2 = arith.constant 0 : i32
    %c0_i32_3 = arith.constant 0 : i32
    return %1, %c0_i32, %c0_i32_0, %c0_i32_1, %c0_i32_2 : i32, i32, i32, i32, i32
  }
  func.func @transform_1(%arg0: i32, %arg1: i32) -> (i32, i32, i32) {
    %c0_i32 = arith.constant 0 : i32
    %c0_i32_0 = arith.constant 0 : i32
    %c0_i32_1 = arith.constant 0 : i32
    %c0_i32_2 = arith.constant 0 : i32
    return %c0_i32, %c0_i32_0, %c0_i32_1 : i32, i32, i32
  }
  func.func @transform_2(%arg0: i32, %arg1: i32) -> (i32, i32) {
    %c0_i32 = arith.constant 0 : i32
    %c0_i32_0 = arith.constant 0 : i32
    %c0_i32_1 = arith.constant 0 : i32
    return %c0_i32, %c0_i32_0 : i32, i32
  }
  func.func @transform_3(%arg0: i32, %arg1: i32) -> (i32, i32) {
    %c0_i32 = arith.constant 0 : i32
    %c0_i32_0 = arith.constant 0 : i32
    %c0_i32_1 = arith.constant 0 : i32
    return %c0_i32, %c0_i32_0 : i32, i32
  }
  func.func @transform_4(%arg0: i32, %arg1: i32) -> (i32, i32, i32, i32) {
    %c0_i32 = arith.constant 0 : i32
    %c0_i32_0 = arith.constant 0 : i32
    %c0_i32_1 = arith.constant 0 : i32
    return %arg0, %arg1, %c0_i32, %c0_i32_0 : i32, i32, i32, i32
  }
}

module attributes {stable_mosaic.version = 11 : i64} {
  func.func @_conv3x3s2_bn_relu_kernel(%arg0: i32, %arg1: i32, %arg2: memref<1x4x3x5x128xbf16, #tpu.memory_space<vmem>>, %arg3: memref<9x128x256xbf16, #tpu.memory_space<vmem>>, %arg4: memref<1x256xf32, #tpu.memory_space<vmem>>, %arg5: memref<1x256xf32, #tpu.memory_space<vmem>>, %arg6: memref<1x2x4x256xf32, #tpu.memory_space<vmem>>) attributes {dimension_semantics = [#tpu.dimension_semantics<parallel>, #tpu.dimension_semantics<parallel>], iteration_bounds = array<i64: 2, 2>, scalar_prefetch = 0 : i64, scratch_operands = 0 : i64, tpu.core_type = #tpu.core_type<tc>, window_params = [{transform_indices = @transform_0, window_bounds = array<i64: 1, 4, 3, 5, 128>}, {pipeline_mode = #tpu.pipeline_mode<synchronous>, transform_indices = @transform_1, window_bounds = array<i64: 9, 128, 256>}, {pipeline_mode = #tpu.pipeline_mode<synchronous>, transform_indices = @transform_2, window_bounds = array<i64: 1, 256>}, {pipeline_mode = #tpu.pipeline_mode<synchronous>, transform_indices = @transform_3, window_bounds = array<i64: 1, 256>}, {transform_indices = @transform_4, window_bounds = array<i64: 1, 2, 4, 256>}]} {
    %c0 = arith.constant 0 : index
    %c0_0 = arith.constant 0 : index
    %0 = vector.load %arg4[%c0, %c0_0] : memref<1x256xf32, #tpu.memory_space<vmem>>, vector<1x256xf32>
    %c0_1 = arith.constant 0 : index
    %c0_2 = arith.constant 0 : index
    %1 = vector.load %arg5[%c0_1, %c0_2] : memref<1x256xf32, #tpu.memory_space<vmem>>, vector<1x256xf32>
    %cst = arith.constant 0.000000e+00 : f32
    %2 = vector.broadcast %cst : f32 to vector<4x256xf32>
    %c0_3 = arith.constant 0 : index
    %c0_4 = arith.constant 0 : index
    %c0_5 = arith.constant 0 : index
    %c0_6 = arith.constant 0 : index
    %c0_7 = arith.constant 0 : index
    %3 = vector.load %arg2[%c0_3, %c0_4, %c0_5, %c0_6, %c0_7] : memref<1x4x3x5x128xbf16, #tpu.memory_space<vmem>>, vector<1x1x1x4x128xbf16>
    %4 = vector.shape_cast %3 : vector<1x1x1x4x128xbf16> to vector<4x128xbf16>
    %c0_8 = arith.constant 0 : index
    %c0_9 = arith.constant 0 : index
    %c0_10 = arith.constant 0 : index
    %5 = vector.load %arg3[%c0_8, %c0_9, %c0_10] : memref<9x128x256xbf16, #tpu.memory_space<vmem>>, vector<1x128x256xbf16>
    %6 = vector.shape_cast %5 : vector<1x128x256xbf16> to vector<128x256xbf16>
    %cst_11 = arith.constant dense<0.000000e+00> : vector<4x256xf32>
    %7 = tpu.matmul %4, %6, %cst_11 {dimension_numbers = #tpu.dot_dimension_numbers<[1], [0], [0], [1], [0, 0, 1, 1], [], []>} : vector<4x128xbf16>, vector<128x256xbf16>, vector<4x256xf32> -> vector<4x256xf32>
    %8 = arith.addf %2, %7 : vector<4x256xf32>
    %c0_12 = arith.constant 0 : index
    %c1 = arith.constant 1 : index
    %c0_13 = arith.constant 0 : index
    %c0_14 = arith.constant 0 : index
    %c0_15 = arith.constant 0 : index
    %9 = vector.load %arg2[%c0_12, %c1, %c0_13, %c0_14, %c0_15] : memref<1x4x3x5x128xbf16, #tpu.memory_space<vmem>>, vector<1x1x1x4x128xbf16>
    %10 = vector.shape_cast %9 : vector<1x1x1x4x128xbf16> to vector<4x128xbf16>
    %c1_16 = arith.constant 1 : index
    %c0_17 = arith.constant 0 : index
    %c0_18 = arith.constant 0 : index
    %11 = vector.load %arg3[%c1_16, %c0_17, %c0_18] : memref<9x128x256xbf16, #tpu.memory_space<vmem>>, vector<1x128x256xbf16>
    %12 = vector.shape_cast %11 : vector<1x128x256xbf16> to vector<128x256xbf16>
    %cst_19 = arith.constant dense<0.000000e+00> : vector<4x256xf32>
    %13 = tpu.matmul %10, %12, %cst_19 {dimension_numbers = #tpu.dot_dimension_numbers<[1], [0], [0], [1], [0, 0, 1, 1], [], []>} : vector<4x128xbf16>, vector<128x256xbf16>, vector<4x256xf32> -> vector<4x256xf32>
    %14 = arith.addf %8, %13 : vector<4x256xf32>
    %c0_20 = arith.constant 0 : index
    %c0_21 = arith.constant 0 : index
    %c0_22 = arith.constant 0 : index
    %c1_23 = arith.constant 1 : index
    %c0_24 = arith.constant 0 : index
    %15 = vector.load %arg2[%c0_20, %c0_21, %c0_22, %c1_23, %c0_24] : memref<1x4x3x5x128xbf16, #tpu.memory_space<vmem>>, vector<1x1x1x4x128xbf16>
    %16 = vector.shape_cast %15 : vector<1x1x1x4x128xbf16> to vector<4x128xbf16>
    %c2 = arith.constant 2 : index
    %c0_25 = arith.constant 0 : index
    %c0_26 = arith.constant 0 : index
    %17 = vector.load %arg3[%c2, %c0_25, %c0_26] : memref<9x128x256xbf16, #tpu.memory_space<vmem>>, vector<1x128x256xbf16>
    %18 = vector.shape_cast %17 : vector<1x128x256xbf16> to vector<128x256xbf16>
    %cst_27 = arith.constant dense<0.000000e+00> : vector<4x256xf32>
    %19 = tpu.matmul %16, %18, %cst_27 {dimension_numbers = #tpu.dot_dimension_numbers<[1], [0], [0], [1], [0, 0, 1, 1], [], []>} : vector<4x128xbf16>, vector<128x256xbf16>, vector<4x256xf32> -> vector<4x256xf32>
    %20 = arith.addf %14, %19 : vector<4x256xf32>
    %c0_28 = arith.constant 0 : index
    %c2_29 = arith.constant 2 : index
    %c0_30 = arith.constant 0 : index
    %c0_31 = arith.constant 0 : index
    %c0_32 = arith.constant 0 : index
    %21 = vector.load %arg2[%c0_28, %c2_29, %c0_30, %c0_31, %c0_32] : memref<1x4x3x5x128xbf16, #tpu.memory_space<vmem>>, vector<1x1x1x4x128xbf16>
    %22 = vector.shape_cast %21 : vector<1x1x1x4x128xbf16> to vector<4x128xbf16>
    %c3 = arith.constant 3 : index
    %c0_33 = arith.constant 0 : index
    %c0_34 = arith.constant 0 : index
    %23 = vector.load %arg3[%c3, %c0_33, %c0_34] : memref<9x128x256xbf16, #tpu.memory_space<vmem>>, vector<1x128x256xbf16>
    %24 = vector.shape_cast %23 : vector<1x128x256xbf16> to vector<128x256xbf16>
    %cst_35 = arith.constant dense<0.000000e+00> : vector<4x256xf32>
    %25 = tpu.matmul %22, %24, %cst_35 {dimension_numbers = #tpu.dot_dimension_numbers<[1], [0], [0], [1], [0, 0, 1, 1], [], []>} : vector<4x128xbf16>, vector<128x256xbf16>, vector<4x256xf32> -> vector<4x256xf32>
    %26 = arith.addf %20, %25 : vector<4x256xf32>
    %c0_36 = arith.constant 0 : index
    %c3_37 = arith.constant 3 : index
    %c0_38 = arith.constant 0 : index
    %c0_39 = arith.constant 0 : index
    %c0_40 = arith.constant 0 : index
    %27 = vector.load %arg2[%c0_36, %c3_37, %c0_38, %c0_39, %c0_40] : memref<1x4x3x5x128xbf16, #tpu.memory_space<vmem>>, vector<1x1x1x4x128xbf16>
    %28 = vector.shape_cast %27 : vector<1x1x1x4x128xbf16> to vector<4x128xbf16>
    %c4 = arith.constant 4 : index
    %c0_41 = arith.constant 0 : index
    %c0_42 = arith.constant 0 : index
    %29 = vector.load %arg3[%c4, %c0_41, %c0_42] : memref<9x128x256xbf16, #tpu.memory_space<vmem>>, vector<1x128x256xbf16>
    %30 = vector.shape_cast %29 : vector<1x128x256xbf16> to vector<128x256xbf16>
    %cst_43 = arith.constant dense<0.000000e+00> : vector<4x256xf32>
    %31 = tpu.matmul %28, %30, %cst_43 {dimension_numbers = #tpu.dot_dimension_numbers<[1], [0], [0], [1], [0, 0, 1, 1], [], []>} : vector<4x128xbf16>, vector<128x256xbf16>, vector<4x256xf32> -> vector<4x256xf32>
    %32 = arith.addf %26, %31 : vector<4x256xf32>
    %c0_44 = arith.constant 0 : index
    %c2_45 = arith.constant 2 : index
    %c0_46 = arith.constant 0 : index
    %c1_47 = arith.constant 1 : index
    %c0_48 = arith.constant 0 : index
    %33 = vector.load %arg2[%c0_44, %c2_45, %c0_46, %c1_47, %c0_48] : memref<1x4x3x5x128xbf16, #tpu.memory_space<vmem>>, vector<1x1x1x4x128xbf16>
    %34 = vector.shape_cast %33 : vector<1x1x1x4x128xbf16> to vector<4x128xbf16>
    %c5 = arith.constant 5 : index
    %c0_49 = arith.constant 0 : index
    %c0_50 = arith.constant 0 : index
    %35 = vector.load %arg3[%c5, %c0_49, %c0_50] : memref<9x128x256xbf16, #tpu.memory_space<vmem>>, vector<1x128x256xbf16>
    %36 = vector.shape_cast %35 : vector<1x128x256xbf16> to vector<128x256xbf16>
    %cst_51 = arith.constant dense<0.000000e+00> : vector<4x256xf32>
    %37 = tpu.matmul %34, %36, %cst_51 {dimension_numbers = #tpu.dot_dimension_numbers<[1], [0], [0], [1], [0, 0, 1, 1], [], []>} : vector<4x128xbf16>, vector<128x256xbf16>, vector<4x256xf32> -> vector<4x256xf32>
    %38 = arith.addf %32, %37 : vector<4x256xf32>
    %c0_52 = arith.constant 0 : index
    %c0_53 = arith.constant 0 : index
    %c1_54 = arith.constant 1 : index
    %c0_55 = arith.constant 0 : index
    %c0_56 = arith.constant 0 : index
    %39 = vector.load %arg2[%c0_52, %c0_53, %c1_54, %c0_55, %c0_56] : memref<1x4x3x5x128xbf16, #tpu.memory_space<vmem>>, vector<1x1x1x4x128xbf16>
    %40 = vector.shape_cast %39 : vector<1x1x1x4x128xbf16> to vector<4x128xbf16>
    %c6 = arith.constant 6 : index
    %c0_57 = arith.constant 0 : index
    %c0_58 = arith.constant 0 : index
    %41 = vector.load %arg3[%c6, %c0_57, %c0_58] : memref<9x128x256xbf16, #tpu.memory_space<vmem>>, vector<1x128x256xbf16>
    %42 = vector.shape_cast %41 : vector<1x128x256xbf16> to vector<128x256xbf16>
    %cst_59 = arith.constant dense<0.000000e+00> : vector<4x256xf32>
    %43 = tpu.matmul %40, %42, %cst_59 {dimension_numbers = #tpu.dot_dimension_numbers<[1], [0], [0], [1], [0, 0, 1, 1], [], []>} : vector<4x128xbf16>, vector<128x256xbf16>, vector<4x256xf32> -> vector<4x256xf32>
    %44 = arith.addf %38, %43 : vector<4x256xf32>
    %c0_60 = arith.constant 0 : index
    %c1_61 = arith.constant 1 : index
    %c1_62 = arith.constant 1 : index
    %c0_63 = arith.constant 0 : index
    %c0_64 = arith.constant 0 : index
    %45 = vector.load %arg2[%c0_60, %c1_61, %c1_62, %c0_63, %c0_64] : memref<1x4x3x5x128xbf16, #tpu.memory_space<vmem>>, vector<1x1x1x4x128xbf16>
    %46 = vector.shape_cast %45 : vector<1x1x1x4x128xbf16> to vector<4x128xbf16>
    %c7 = arith.constant 7 : index
    %c0_65 = arith.constant 0 : index
    %c0_66 = arith.constant 0 : index
    %47 = vector.load %arg3[%c7, %c0_65, %c0_66] : memref<9x128x256xbf16, #tpu.memory_space<vmem>>, vector<1x128x256xbf16>
    %48 = vector.shape_cast %47 : vector<1x128x256xbf16> to vector<128x256xbf16>
    %cst_67 = arith.constant dense<0.000000e+00> : vector<4x256xf32>
    %49 = tpu.matmul %46, %48, %cst_67 {dimension_numbers = #tpu.dot_dimension_numbers<[1], [0], [0], [1], [0, 0, 1, 1], [], []>} : vector<4x128xbf16>, vector<128x256xbf16>, vector<4x256xf32> -> vector<4x256xf32>
    %50 = arith.addf %44, %49 : vector<4x256xf32>
    %c0_68 = arith.constant 0 : index
    %c0_69 = arith.constant 0 : index
    %c1_70 = arith.constant 1 : index
    %c1_71 = arith.constant 1 : index
    %c0_72 = arith.constant 0 : index
    %51 = vector.load %arg2[%c0_68, %c0_69, %c1_70, %c1_71, %c0_72] : memref<1x4x3x5x128xbf16, #tpu.memory_space<vmem>>, vector<1x1x1x4x128xbf16>
    %52 = vector.shape_cast %51 : vector<1x1x1x4x128xbf16> to vector<4x128xbf16>
    %c8 = arith.constant 8 : index
    %c0_73 = arith.constant 0 : index
    %c0_74 = arith.constant 0 : index
    %53 = vector.load %arg3[%c8, %c0_73, %c0_74] : memref<9x128x256xbf16, #tpu.memory_space<vmem>>, vector<1x128x256xbf16>
    %54 = vector.shape_cast %53 : vector<1x128x256xbf16> to vector<128x256xbf16>
    %cst_75 = arith.constant dense<0.000000e+00> : vector<4x256xf32>
    %55 = tpu.matmul %52, %54, %cst_75 {dimension_numbers = #tpu.dot_dimension_numbers<[1], [0], [0], [1], [0, 0, 1, 1], [], []>} : vector<4x128xbf16>, vector<128x256xbf16>, vector<4x256xf32> -> vector<4x256xf32>
    %56 = arith.addf %50, %55 : vector<4x256xf32>
    %57 = vector.broadcast %0 : vector<1x256xf32> to vector<4x256xf32>
    %58 = arith.mulf %56, %57 : vector<4x256xf32>
    %59 = vector.broadcast %1 : vector<1x256xf32> to vector<4x256xf32>
    %60 = arith.addf %58, %59 : vector<4x256xf32>
    %cst_76 = arith.constant 0.000000e+00 : f32
    %61 = vector.broadcast %cst_76 : f32 to vector<4x256xf32>
    %62 = arith.maximumf %60, %61 : vector<4x256xf32>
    %c0_77 = arith.constant 0 : index
    %c0_78 = arith.constant 0 : index
    %c0_79 = arith.constant 0 : index
    %c0_80 = arith.constant 0 : index
    %63 = vector.load %arg6[%c0_77, %c0_78, %c0_79, %c0_80] : memref<1x2x4x256xf32, #tpu.memory_space<vmem>>, vector<1x1x4x256xf32>
    %64 = vector.shape_cast %63 : vector<1x1x4x256xf32> to vector<4x256xf32>
    %65 = vector.shape_cast %62 : vector<4x256xf32> to vector<1x1x4x256xf32>
    tpu.vector_store %arg6[%c0_77, %c0_78, %c0_79, %c0_80], %65 {strides = array<i32>} : memref<1x2x4x256xf32, #tpu.memory_space<vmem>>, vector<1x1x4x256xf32>,
    %cst_81 = arith.constant 0.000000e+00 : f32
    %66 = vector.broadcast %cst_81 : f32 to vector<4x256xf32>
    %c0_82 = arith.constant 0 : index
    %c0_83 = arith.constant 0 : index
    %c1_84 = arith.constant 1 : index
    %c0_85 = arith.constant 0 : index
    %c0_86 = arith.constant 0 : index
    %67 = vector.load %arg2[%c0_82, %c0_83, %c1_84, %c0_85, %c0_86] : memref<1x4x3x5x128xbf16, #tpu.memory_space<vmem>>, vector<1x1x1x4x128xbf16>
    %68 = vector.shape_cast %67 : vector<1x1x1x4x128xbf16> to vector<4x128xbf16>
    %c0_87 = arith.constant 0 : index
    %c0_88 = arith.constant 0 : index
    %c0_89 = arith.constant 0 : index
    %69 = vector.load %arg3[%c0_87, %c0_88, %c0_89] : memref<9x128x256xbf16, #tpu.memory_space<vmem>>, vector<1x128x256xbf16>
    %70 = vector.shape_cast %69 : vector<1x128x256xbf16> to vector<128x256xbf16>
    %cst_90 = arith.constant dense<0.000000e+00> : vector<4x256xf32>
    %71 = tpu.matmul %68, %70, %cst_90 {dimension_numbers = #tpu.dot_dimension_numbers<[1], [0], [0], [1], [0, 0, 1, 1], [], []>} : vector<4x128xbf16>, vector<128x256xbf16>, vector<4x256xf32> -> vector<4x256xf32>
    %72 = arith.addf %66, %71 : vector<4x256xf32>
    %c0_91 = arith.constant 0 : index
    %c1_92 = arith.constant 1 : index
    %c1_93 = arith.constant 1 : index
    %c0_94 = arith.constant 0 : index
    %c0_95 = arith.constant 0 : index
    %73 = vector.load %arg2[%c0_91, %c1_92, %c1_93, %c0_94, %c0_95] : memref<1x4x3x5x128xbf16, #tpu.memory_space<vmem>>, vector<1x1x1x4x128xbf16>
    %74 = vector.shape_cast %73 : vector<1x1x1x4x128xbf16> to vector<4x128xbf16>
    %c1_96 = arith.constant 1 : index
    %c0_97 = arith.constant 0 : index
    %c0_98 = arith.constant 0 : index
    %75 = vector.load %arg3[%c1_96, %c0_97, %c0_98] : memref<9x128x256xbf16, #tpu.memory_space<vmem>>, vector<1x128x256xbf16>
    %76 = vector.shape_cast %75 : vector<1x128x256xbf16> to vector<128x256xbf16>
    %cst_99 = arith.constant dense<0.000000e+00> : vector<4x256xf32>
    %77 = tpu.matmul %74, %76, %cst_99 {dimension_numbers = #tpu.dot_dimension_numbers<[1], [0], [0], [1], [0, 0, 1, 1], [], []>} : vector<4x128xbf16>, vector<128x256xbf16>, vector<4x256xf32> -> vector<4x256xf32>
    %78 = arith.addf %72, %77 : vector<4x256xf32>
    %c0_100 = arith.constant 0 : index
    %c0_101 = arith.constant 0 : index
    %c1_102 = arith.constant 1 : index
    %c1_103 = arith.constant 1 : index
    %c0_104 = arith.constant 0 : index
    %79 = vector.load %arg2[%c0_100, %c0_101, %c1_102, %c1_103, %c0_104] : memref<1x4x3x5x128xbf16, #tpu.memory_space<vmem>>, vector<1x1x1x4x128xbf16>
    %80 = vector.shape_cast %79 : vector<1x1x1x4x128xbf16> to vector<4x128xbf16>
    %c2_105 = arith.constant 2 : index
    %c0_106 = arith.constant 0 : index
    %c0_107 = arith.constant 0 : index
    %81 = vector.load %arg3[%c2_105, %c0_106, %c0_107] : memref<9x128x256xbf16, #tpu.memory_space<vmem>>, vector<1x128x256xbf16>
    %82 = vector.shape_cast %81 : vector<1x128x256xbf16> to vector<128x256xbf16>
    %cst_108 = arith.constant dense<0.000000e+00> : vector<4x256xf32>
    %83 = tpu.matmul %80, %82, %cst_108 {dimension_numbers = #tpu.dot_dimension_numbers<[1], [0], [0], [1], [0, 0, 1, 1], [], []>} : vector<4x128xbf16>, vector<128x256xbf16>, vector<4x256xf32> -> vector<4x256xf32>
    %84 = arith.addf %78, %83 : vector<4x256xf32>
    %c0_109 = arith.constant 0 : index
    %c2_110 = arith.constant 2 : index
    %c1_111 = arith.constant 1 : index
    %c0_112 = arith.constant 0 : index
    %c0_113 = arith.constant 0 : index
    %85 = vector.load %arg2[%c0_109, %c2_110, %c1_111, %c0_112, %c0_113] : memref<1x4x3x5x128xbf16, #tpu.memory_space<vmem>>, vector<1x1x1x4x128xbf16>
    %86 = vector.shape_cast %85 : vector<1x1x1x4x128xbf16> to vector<4x128xbf16>
    %c3_114 = arith.constant 3 : index
    %c0_115 = arith.constant 0 : index
    %c0_116 = arith.constant 0 : index
    %87 = vector.load %arg3[%c3_114, %c0_115, %c0_116] : memref<9x128x256xbf16, #tpu.memory_space<vmem>>, vector<1x128x256xbf16>
    %88 = vector.shape_cast %87 : vector<1x128x256xbf16> to vector<128x256xbf16>
    %cst_117 = arith.constant dense<0.000000e+00> : vector<4x256xf32>
    %89 = tpu.matmul %86, %88, %cst_117 {dimension_numbers = #tpu.dot_dimension_numbers<[1], [0], [0], [1], [0, 0, 1, 1], [], []>} : vector<4x128xbf16>, vector<128x256xbf16>, vector<4x256xf32> -> vector<4x256xf32>
    %90 = arith.addf %84, %89 : vector<4x256xf32>
    %c0_118 = arith.constant 0 : index
    %c3_119 = arith.constant 3 : index
    %c1_120 = arith.constant 1 : index
    %c0_121 = arith.constant 0 : index
    %c0_122 = arith.constant 0 : index
    %91 = vector.load %arg2[%c0_118, %c3_119, %c1_120, %c0_121, %c0_122] : memref<1x4x3x5x128xbf16, #tpu.memory_space<vmem>>, vector<1x1x1x4x128xbf16>
    %92 = vector.shape_cast %91 : vector<1x1x1x4x128xbf16> to vector<4x128xbf16>
    %c4_123 = arith.constant 4 : index
    %c0_124 = arith.constant 0 : index
    %c0_125 = arith.constant 0 : index
    %93 = vector.load %arg3[%c4_123, %c0_124, %c0_125] : memref<9x128x256xbf16, #tpu.memory_space<vmem>>, vector<1x128x256xbf16>
    %94 = vector.shape_cast %93 : vector<1x128x256xbf16> to vector<128x256xbf16>
    %cst_126 = arith.constant dense<0.000000e+00> : vector<4x256xf32>
    %95 = tpu.matmul %92, %94, %cst_126 {dimension_numbers = #tpu.dot_dimension_numbers<[1], [0], [0], [1], [0, 0, 1, 1], [], []>} : vector<4x128xbf16>, vector<128x256xbf16>, vector<4x256xf32> -> vector<4x256xf32>
    %96 = arith.addf %90, %95 : vector<4x256xf32>
    %c0_127 = arith.constant 0 : index
    %c2_128 = arith.constant 2 : index
    %c1_129 = arith.constant 1 : index
    %c1_130 = arith.constant 1 : index
    %c0_131 = arith.constant 0 : index
    %97 = vector.load %arg2[%c0_127, %c2_128, %c1_129, %c1_130, %c0_131] : memref<1x4x3x5x128xbf16, #tpu.memory_space<vmem>>, vector<1x1x1x4x128xbf16>
    %98 = vector.shape_cast %97 : vector<1x1x1x4x128xbf16> to vector<4x128xbf16>
    %c5_132 = arith.constant 5 : index
    %c0_133 = arith.constant 0 : index
    %c0_134 = arith.constant 0 : index
    %99 = vector.load %arg3[%c5_132, %c0_133, %c0_134] : memref<9x128x256xbf16, #tpu.memory_space<vmem>>, vector<1x128x256xbf16>
    %100 = vector.shape_cast %99 : vector<1x128x256xbf16> to vector<128x256xbf16>
    %cst_135 = arith.constant dense<0.000000e+00> : vector<4x256xf32>
    %101 = tpu.matmul %98, %100, %cst_135 {dimension_numbers = #tpu.dot_dimension_numbers<[1], [0], [0], [1], [0, 0, 1, 1], [], []>} : vector<4x128xbf16>, vector<128x256xbf16>, vector<4x256xf32> -> vector<4x256xf32>
    %102 = arith.addf %96, %101 : vector<4x256xf32>
    %c0_136 = arith.constant 0 : index
    %c0_137 = arith.constant 0 : index
    %c2_138 = arith.constant 2 : index
    %c0_139 = arith.constant 0 : index
    %c0_140 = arith.constant 0 : index
    %103 = vector.load %arg2[%c0_136, %c0_137, %c2_138, %c0_139, %c0_140] : memref<1x4x3x5x128xbf16, #tpu.memory_space<vmem>>, vector<1x1x1x4x128xbf16>
    %104 = vector.shape_cast %103 : vector<1x1x1x4x128xbf16> to vector<4x128xbf16>
    %c6_141 = arith.constant 6 : index
    %c0_142 = arith.constant 0 : index
    %c0_143 = arith.constant 0 : index
    %105 = vector.load %arg3[%c6_141, %c0_142, %c0_143] : memref<9x128x256xbf16, #tpu.memory_space<vmem>>, vector<1x128x256xbf16>
    %106 = vector.shape_cast %105 : vector<1x128x256xbf16> to vector<128x256xbf16>
    %cst_144 = arith.constant dense<0.000000e+00> : vector<4x256xf32>
    %107 = tpu.matmul %104, %106, %cst_144 {dimension_numbers = #tpu.dot_dimension_numbers<[1], [0], [0], [1], [0, 0, 1, 1], [], []>} : vector<4x128xbf16>, vector<128x256xbf16>, vector<4x256xf32> -> vector<4x256xf32>
    %108 = arith.addf %102, %107 : vector<4x256xf32>
    %c0_145 = arith.constant 0 : index
    %c1_146 = arith.constant 1 : index
    %c2_147 = arith.constant 2 : index
    %c0_148 = arith.constant 0 : index
    %c0_149 = arith.constant 0 : index
    %109 = vector.load %arg2[%c0_145, %c1_146, %c2_147, %c0_148, %c0_149] : memref<1x4x3x5x128xbf16, #tpu.memory_space<vmem>>, vector<1x1x1x4x128xbf16>
    %110 = vector.shape_cast %109 : vector<1x1x1x4x128xbf16> to vector<4x128xbf16>
    %c7_150 = arith.constant 7 : index
    %c0_151 = arith.constant 0 : index
    %c0_152 = arith.constant 0 : index
    %111 = vector.load %arg3[%c7_150, %c0_151, %c0_152] : memref<9x128x256xbf16, #tpu.memory_space<vmem>>, vector<1x128x256xbf16>
    %112 = vector.shape_cast %111 : vector<1x128x256xbf16> to vector<128x256xbf16>
    %cst_153 = arith.constant dense<0.000000e+00> : vector<4x256xf32>
    %113 = tpu.matmul %110, %112, %cst_153 {dimension_numbers = #tpu.dot_dimension_numbers<[1], [0], [0], [1], [0, 0, 1, 1], [], []>} : vector<4x128xbf16>, vector<128x256xbf16>, vector<4x256xf32> -> vector<4x256xf32>
    %114 = arith.addf %108, %113 : vector<4x256xf32>
    %c0_154 = arith.constant 0 : index
    %c0_155 = arith.constant 0 : index
    %c2_156 = arith.constant 2 : index
    %c1_157 = arith.constant 1 : index
    %c0_158 = arith.constant 0 : index
    %115 = vector.load %arg2[%c0_154, %c0_155, %c2_156, %c1_157, %c0_158] : memref<1x4x3x5x128xbf16, #tpu.memory_space<vmem>>, vector<1x1x1x4x128xbf16>
    %116 = vector.shape_cast %115 : vector<1x1x1x4x128xbf16> to vector<4x128xbf16>
    %c8_159 = arith.constant 8 : index
    %c0_160 = arith.constant 0 : index
    %c0_161 = arith.constant 0 : index
    %117 = vector.load %arg3[%c8_159, %c0_160, %c0_161] : memref<9x128x256xbf16, #tpu.memory_space<vmem>>, vector<1x128x256xbf16>
    %118 = vector.shape_cast %117 : vector<1x128x256xbf16> to vector<128x256xbf16>
    %cst_162 = arith.constant dense<0.000000e+00> : vector<4x256xf32>
    %119 = tpu.matmul %116, %118, %cst_162 {dimension_numbers = #tpu.dot_dimension_numbers<[1], [0], [0], [1], [0, 0, 1, 1], [], []>} : vector<4x128xbf16>, vector<128x256xbf16>, vector<4x256xf32> -> vector<4x256xf32>
    %120 = arith.addf %114, %119 : vector<4x256xf32>
    %121 = vector.broadcast %0 : vector<1x256xf32> to vector<4x256xf32>
    %122 = arith.mulf %120, %121 : vector<4x256xf32>
    %123 = vector.broadcast %1 : vector<1x256xf32> to vector<4x256xf32>
    %124 = arith.addf %122, %123 : vector<4x256xf32>
    %cst_163 = arith.constant 0.000000e+00 : f32
    %125 = vector.broadcast %cst_163 : f32 to vector<4x256xf32>
    %126 = arith.maximumf %124, %125 : vector<4x256xf32>
    %c0_164 = arith.constant 0 : index
    %c1_165 = arith.constant 1 : index
    %c0_166 = arith.constant 0 : index
    %c0_167 = arith.constant 0 : index
    %127 = vector.load %arg6[%c0_164, %c1_165, %c0_166, %c0_167] : memref<1x2x4x256xf32, #tpu.memory_space<vmem>>, vector<1x1x4x256xf32>
    %128 = vector.shape_cast %127 : vector<1x1x4x256xf32> to vector<4x256xf32>
    %129 = vector.shape_cast %126 : vector<4x256xf32> to vector<1x1x4x256xf32>
    tpu.vector_store %arg6[%c0_164, %c1_165, %c0_166, %c0_167], %129 {strides = array<i32>} : memref<1x2x4x256xf32, #tpu.memory_space<vmem>>, vector<1x1x4x256xf32>,
    return
  }
  func.func @transform_0(%arg0: i32, %arg1: i32) -> (i32, i32, i32, i32, i32) {
    %c2_i32 = arith.constant 2 : i32
    %0 = arith.muli %arg0, %c2_i32 : i32
    %1 = arith.addi %0, %arg1 : i32
    %c0_i32 = arith.constant 0 : i32
    %c0_i32_0 = arith.constant 0 : i32
    %c0_i32_1 = arith.constant 0 : i32
    %c0_i32_2 = arith.constant 0 : i32
    %c0_i32_3 = arith.constant 0 : i32
    return %1, %c0_i32, %c0_i32_0, %c0_i32_1, %c0_i32_2 : i32, i32, i32, i32, i32
  }
  func.func @transform_1(%arg0: i32, %arg1: i32) -> (i32, i32, i32) {
    %c0_i32 = arith.constant 0 : i32
    %c0_i32_0 = arith.constant 0 : i32
    %c0_i32_1 = arith.constant 0 : i32
    %c0_i32_2 = arith.constant 0 : i32
    return %c0_i32, %c0_i32_0, %c0_i32_1 : i32, i32, i32
  }
  func.func @transform_2(%arg0: i32, %arg1: i32) -> (i32, i32) {
    %c0_i32 = arith.constant 0 : i32
    %c0_i32_0 = arith.constant 0 : i32
    %c0_i32_1 = arith.constant 0 : i32
    return %c0_i32, %c0_i32_0 : i32, i32
  }
  func.func @transform_3(%arg0: i32, %arg1: i32) -> (i32, i32) {
    %c0_i32 = arith.constant 0 : i32
    %c0_i32_0 = arith.constant 0 : i32
    %c0_i32_1 = arith.constant 0 : i32
    return %c0_i32, %c0_i32_0 : i32, i32
  }
  func.func @transform_4(%arg0: i32, %arg1: i32) -> (i32, i32, i32, i32) {
    %c0_i32 = arith.constant 0 : i32
    %c0_i32_0 = arith.constant 0 : i32
    %c0_i32_1 = arith.constant 0 : i32
    return %arg0, %arg1, %c0_i32, %c0_i32_0 : i32, i32, i32, i32
  }
}

</mosaic_0001>

<bundles_post_ra>
// kernel: spatial_path.3
= control target key start
LH: loop header
LB: loop body
LE: loop exit
PB: predicated region body
PF: predicated region fallthrough
CT: control target
= control target key end

     0   :  { %s1103_s15 = smov 0   ;;  %s1307_s0 = inlined_call_operand.vmem [shape: bf16[512,27], index: 0, kind: input, shape index: {}]   ;;  %s1308_s1 = inlined_call_operand.vmem [shape: bf16[27,64], index: 1, kind: input, shape index: {}]   ;;  %s1309_s2 = inlined_call_operand.vmem [shape: f32[1,64], index: 2, kind: input, shape index: {}]   ;;  %s1310_s3 = inlined_call_operand.vmem [shape: f32[1,64], index: 3, kind: input, shape index: {}]   ;;  %s1311_s4 = inlined_call_operand.vmem [shape: bf16[512,64], index: 4, kind: output, shape index: {}]  }
   0x1 LB: > { %s873_s16 = sadd.s32 4294967295, %s1075_s15   ;;  %p877_p0 = scmp.ge.s32.totalorder %s1075_s15, 1  ;;  %s1075_s15 = sphi %s1103_s15, %s14_s15  }
   0x2   : > { %p163_p1 = scmp.lt.s32.totalorder %s1075_s15, 3 }
   0x4   : > { %p164_p2 = pnand %p877_p0, %p163_p1 }
   0x5   : > { %v1051_v0 = vld [vmem:[%s1308_s1] sm:$0xff] (!%p164_p2)   ;;  %vm378_vm0 = vcmask (!%p164_p2), 1044480   ;;  %v1052_v1 = vld [vmem:[%s1308_s1 + $0x8] sm:$0x3f] (!%p164_p2)   ;;  %vm379_vm1 = vcmask (!%p164_p2), 1045504   ;;  %s878_s21 = sshll.u32 (!%p164_p2), %s873_s16, 5 }
   0x6   : > { %167 = sbr.rel (%p164_p2) target bundleno = 269 (0x10d), region = 36  ;;  %1002 = vmatprep.subr.bf16.mxu0 (!%p164_p2), %v1051_v0  ;;  %1038 = vmatprep.subr.bf16.mxu1 (!%p164_p2), %v1051_v0  ;;  %v1077_v2 = vmov (!%p164_p2), 65535   ;;  %p190_p3 = scmp.lt.s32.totalorder (!%p164_p2), %s878_s21, 63  ;;  %vm329_vm2 = vcmask (!%p164_p2), 220160   ;;  %v1162_v22 = vld [vmem:[%s1309_s2] ss:$0 sm:$0xff] (!%p164_p2) }
   0x7   : > { %1003 = vmatpush3.bf16.msra.mxu0 (!%p164_p2), %v1051_v0  ;;  %1040 = vmatpush3.bf16.msra.mxu1 (!%p164_p2), %v1051_v0  ;;  %v380_v3 = vsel (!%p164_p2), %vm378_vm0, 4294967295, %v1077_v2  ;;  %v1167_v24 = vld [vmem:[%s1310_s3] ss:$0 sm:$0xff] (!%p164_p2)  ;;  %vm784_vm3 = vcmask (!%p164_p2), 519168  }
   0x8   : > { %v381_v4 = vsel (!%p164_p2), %vm379_vm1, %v380_v3, 0 }
   0x9   : > { %v383_v5 = vand.u32 (!%p164_p2), %v1052_v1, %v381_v4 }
   0xb   : > { %1004 = vmatprep.subr.bf16.mxu0 (!%p164_p2), %v383_v5  ;;  %1039 = vmatprep.subr.bf16.mxu1 (!%p164_p2), %v383_v5 }
   0xc   : > { %1005 = vmatpush3.bf16.msra.mxu0 (!%p164_p2), %v383_v5  ;;  %1041 = vmatpush3.bf16.msra.mxu1 (!%p164_p2), %v383_v5 }
   0xd   : > { %s1313_s21 = smov (!%p190_p3, %s878_s21), 63 }
   0xe   : > { %s879_s22 = sshll.u32 %s1313_s21, 2 }
   0xf   : > { %s1125_s25 = scalar_lea.vmem %s1307_s0, %s879_s22  ;;  %s1187_s6 = scalar_lea.vmem %s1311_s4, %s879_s22 }
  0x10   : > { %v1053_v6 = vld [vmem:[%s1125_s25] sm:$0xff]   ;;  %v1055_v8 = vld [vmem:[%s1125_s25 + $0x8] sm:$0xff]   ;;  %v1057_v10 = vld [vmem:[%s1125_s25 + $0x10] sm:$0xff]  }
  0x11   : > { %v1054_v7 = vld [vmem:[%s1125_s25 + $0x40] sm:$0xff]   ;;  %1006 = vmatprep.mubr.msk.bf16.mxu0 %vm329_vm2, %v1053_v6  ;;  %v1056_v9 = vld [vmem:[%s1125_s25 + $0x48] sm:$0xff]   ;;  %v1058_v11 = vld [vmem:[%s1125_s25 + $0x50] sm:$0xff]  }
  0x12   : > { %1022 = vmatprep.mubr.msk.bf16.mxu1 %vm329_vm2, %v1054_v7  ;;  %1007 = vmatmul.mubr.msk.bf16.vlgmr.msra.gmra.mrb[0].mxu0 %vm329_vm2, %v1055_v8  ;;  %v1059_v12 = vld [vmem:[%s1125_s25 + $0x18] sm:$0xff]   ;;  %v1061_v14 = vld [vmem:[%s1125_s25 + $0x20] sm:$0xff]   ;;  %v1063_v16 = vld [vmem:[%s1125_s25 + $0x28] sm:$0xff]  }
  0x13   : > { %1023 = vmatmul.mubr.msk.bf16.vlgmr.msra.gmra.mrb[0].mxu1 %vm329_vm2, %v1056_v9  ;;  %1010 = vmatprep.mubr.msk.bf16.mxu0 %vm329_vm2, %v1057_v10  ;;  %v1060_v13 = vld [vmem:[%s1125_s25 + $0x58] sm:$0xff]   ;;  %v1062_v15 = vld [vmem:[%s1125_s25 + $0x60] sm:$0xff]   ;;  %v1064_v17 = vld [vmem:[%s1125_s25 + $0x68] sm:$0xff]  }
  0x14   : > { %1026 = vmatprep.mubr.msk.bf16.mxu1 %vm329_vm2, %v1058_v11  ;;  %v1065_v18 = vld [vmem:[%s1125_s25 + $0x30] sm:$0xff]   ;;  %v1067_v20 = vld [vmem:[%s1125_s25 + $0x38] sm:$0xff]  }
  0x15   : > { %v1066_v19 = vld [vmem:[%s1125_s25 + $0x70] sm:$0xff]   ;;  %v1068_v21 = vld [vmem:[%s1125_s25 + $0x78] sm:$0xff]  }
  0x1a   : > { %1011 = vmatmul.mubr.msk.bf16.gmra.mrb[4].mxu0 %vm329_vm2, %v1059_v12 }
  0x1b   : > { %1027 = vmatmul.mubr.msk.bf16.gmra.mrb[4].mxu1 %vm329_vm2, %v1060_v13  ;;  %1014 = vmatprep.mubr.msk.bf16.mxu0 %vm329_vm2, %v1061_v14 }
  0x1c   : > { %1030 = vmatprep.mubr.msk.bf16.mxu1 %vm329_vm2, %v1062_v15 }
  0x22   : > { %1015 = vmatmul.mubr.msk.bf16.gmra.mrb[8].mxu0 %vm329_vm2, %v1063_v16 }
  0x23   : > { %1031 = vmatmul.mubr.msk.bf16.gmra.mrb[8].mxu1 %vm329_vm2, %v1064_v17  ;;  %1018 = vmatprep.mubr.msk.bf16.mxu0 %vm329_vm2, %v1065_v18 }
  0x24   : > { %1034 = vmatprep.mubr.msk.bf16.mxu1 %vm329_vm2, %v1066_v19 }
  0x2a   : > { %1019 = vmatmul.mubr.msk.bf16.gmra.mrb[12].mxu0 %vm329_vm2, %v1067_v20 }
  0x2b   : > { %1035 = vmatmul.mubr.msk.bf16.gmra.mrb[12].mxu1 %vm329_vm2, %v1068_v21 }
  0xe5   : > { %v1008_v23 = vpop.f32.mrb[0].mxu0 }
  0xe6   : > { %v555_v25 = vmul.f32 %v1008_v23, %v1162_v22  ;;  %v1024_v26 = vpop.f32.mrb[0].mxu1  ;;  %v419_v27 = vpop.f32.mrb[1].mxu0 }
  0xe7   : > { %v571_v28 = vmul.f32 %v1024_v26, %v1162_v22  ;;  %v553_v29 = vmul.f32 %v1162_v22, %v419_v27  ;;  %v483_v30 = vpop.f32.mrb[1].mxu1  ;;  %v1009_v31 = vpop.f32.mrb[2].mxu0 }
  0xe8   : > { %v594_v32 = vadd.f32 %v1167_v24, %v555_v25  ;;  %v569_v33 = vmul.f32 %v1162_v22, %v483_v30  ;;  %v556_v34 = vmul.f32 %v1009_v31, %v1162_v22  ;;  %v1025_v35 = vpop.f32.mrb[2].mxu1  ;;  %v422_v36 = vpop.f32.mrb[3].mxu0 }
  0xe9   : > { %v610_v37 = vadd.f32 %v1167_v24, %v571_v28  ;;  %v592_v38 = vadd.f32 %v1167_v24, %v553_v29  ;;  %v572_v39 = vmul.f32 %v1025_v35, %v1162_v22  ;;  %v554_v40 = vmul.f32 %v1162_v22, %v422_v36  ;;  %v486_v41 = vpop.f32.mrb[3].mxu1 }
  0xea   : > { %v626_v42 = vmax.f32 %v594_v32, 0.0  ;;  %v608_v43 = vadd.f32 %v1167_v24, %v569_v33  ;;  %v595_v44 = vadd.f32 %v1167_v24, %v556_v34  ;;  %v570_v45 = vmul.f32 %v1162_v22, %v486_v41 }
  0xeb   : > { %v642_v46 = vmax.f32 %v610_v37, 0.0  ;;  %v624_v47 = vmax.f32 %v592_v38, 0.0  ;;  %v611_v48 = vadd.f32 %v1167_v24, %v572_v39  ;;  %v593_v49 = vadd.f32 %v1167_v24, %v554_v40 }
  0xec   : > { %v954_v50 = vpack.c.bf16 %v626_v42, %v626_v42  ;;  %v640_v51 = vmax.f32 %v608_v43, 0.0  ;;  %v627_v52 = vmax.f32 %v595_v44, 0.0  ;;  %v609_v53 = vadd.f32 %v1167_v24, %v570_v45 }
  0xed   : > { %v970_v54 = vpack.c.bf16 %v642_v46, %v642_v46  ;;  %v952_v55 = vpack.c.bf16 %v624_v47, %v624_v47  ;;  %v643_v56 = vmax.f32 %v611_v48, 0.0  ;;  %v625_v57 = vmax.f32 %v593_v49, 0.0  ;;  %v1012_v58 = vpop.f32.mrb[4].mxu0 }
  0xee   : > { %787 = vst.msk [vmem:[%s1187_s6 + $0x8] sm:$0xf] %vm784_vm3, %v954_v50  ;;  %v968_v59 = vpack.c.bf16 %v640_v51, %v640_v51  ;;  %v955_v60 = vpack.c.bf16 %v627_v52, %v627_v52  ;;  %v641_v61 = vmax.f32 %v609_v53, 0.0  ;;  %v559_v62 = vmul.f32 %v1012_v58, %v1162_v22  ;;  %v1028_v63 = vpop.f32.mrb[4].mxu1  ;;  %v435_v0 = vpop.f32.mrb[5].mxu0 }
  0xef   : > { %803 = vst.msk [vmem:[%s1187_s6 + $0x48] sm:$0xf] %vm784_vm3, %v970_v54  ;;  %785 = vst.msk [vmem:[%s1187_s6] sm:$0xf] %vm784_vm3, %v952_v55  ;;  %v971_v1 = vpack.c.bf16 %v643_v56, %v643_v56  ;;  %v953_v2 = vpack.c.bf16 %v625_v57, %v625_v57  ;;  %v575_v3 = vmul.f32 %v1028_v63, %v1162_v22  ;;  %v499_v5 = vpop.f32.mrb[5].mxu1  ;;  %v1013_v6 = vpop.f32.mrb[6].mxu0 }
  0xf0   : > { %v557_v4 = vmul.f32 %v1162_v22, %v435_v0  ;;  %801 = vst.msk [vmem:[%s1187_s6 + $0x40] sm:$0xf] %vm784_vm3, %v968_v59  ;;  %788 = vst.msk [vmem:[%s1187_s6 + $0xc] sm:$0xf] %vm784_vm3, %v955_v60  ;;  %v969_v7 = vpack.c.bf16 %v641_v61, %v641_v61  ;;  %v598_v8 = vadd.f32 %v1167_v24, %v559_v62  ;;  %v1029_v11 = vpop.f32.mrb[6].mxu1  ;;  %v438_v12 = vpop.f32.mrb[7].mxu0 }
  0xf1   : > { %v573_v9 = vmul.f32 %v1162_v22, %v499_v5  ;;  %v560_v10 = vmul.f32 %v1013_v6, %v1162_v22  ;;  %804 = vst.msk [vmem:[%s1187_s6 + $0x4c] sm:$0xf] %vm784_vm3, %v971_v1  ;;  %786 = vst.msk [vmem:[%s1187_s6 + $0x4] sm:$0xf] %vm784_vm3, %v953_v2  ;;  %v614_v13 = vadd.f32 %v1167_v24, %v575_v3  ;;  %v502_v17 = vpop.f32.mrb[7].mxu1 }
  0xf2   : > { %v596_v14 = vadd.f32 %v1167_v24, %v557_v4  ;;  %v576_v15 = vmul.f32 %v1029_v11, %v1162_v22  ;;  %v558_v16 = vmul.f32 %v1162_v22, %v438_v12  ;;  %802 = vst.msk [vmem:[%s1187_s6 + $0x44] sm:$0xf] %vm784_vm3, %v969_v7  ;;  %v630_v18 = vmax.f32 %v598_v8, 0.0 }
  0xf3   : > { %v612_v19 = vadd.f32 %v1167_v24, %v573_v9  ;;  %v599_v20 = vadd.f32 %v1167_v24, %v560_v10  ;;  %v574_v21 = vmul.f32 %v1162_v22, %v502_v17  ;;  %v646_v23 = vmax.f32 %v614_v13, 0.0 }
  0xf4   : > { %v628_v25 = vmax.f32 %v596_v14, 0.0  ;;  %v615_v26 = vadd.f32 %v1167_v24, %v576_v15  ;;  %v597_v27 = vadd.f32 %v1167_v24, %v558_v16  ;;  %v958_v28 = vpack.c.bf16 %v630_v18, %v630_v18 }
  0xf5   : > { %v644_v29 = vmax.f32 %v612_v19, 0.0  ;;  %v631_v30 = vmax.f32 %v599_v20, 0.0  ;;  %v613_v31 = vadd.f32 %v1167_v24, %v574_v21  ;;  %v974_v32 = vpack.c.bf16 %v646_v23, %v646_v23  ;;  %v1016_v36 = vpop.f32.mrb[8].mxu0 }
  0xf6   : > { %v956_v33 = vpack.c.bf16 %v628_v25, %v628_v25  ;;  %v647_v34 = vmax.f32 %v615_v26, 0.0  ;;  %v629_v35 = vmax.f32 %v597_v27, 0.0  ;;  %791 = vst.msk [vmem:[%s1187_s6 + $0x18] sm:$0xf] %vm784_vm3, %v958_v28  ;;  %v563_v40 = vmul.f32 %v1016_v36, %v1162_v22  ;;  %v1032_v41 = vpop.f32.mrb[8].mxu1  ;;  %v451_v42 = vpop.f32.mrb[9].mxu0 }
  0xf7   : > { %v972_v37 = vpack.c.bf16 %v644_v29, %v644_v29  ;;  %v959_v38 = vpack.c.bf16 %v631_v30, %v631_v30  ;;  %v645_v39 = vmax.f32 %v613_v31, 0.0  ;;  %807 = vst.msk [vmem:[%s1187_s6 + $0x58] sm:$0xf] %vm784_vm3, %v974_v32  ;;  %v579_v45 = vmul.f32 %v1032_v41, %v1162_v22  ;;  %v515_v47 = vpop.f32.mrb[9].mxu1  ;;  %v1017_v48 = vpop.f32.mrb[10].mxu0 }
  0xf8   : > { %789 = vst.msk [vmem:[%s1187_s6 + $0x10] sm:$0xf] %vm784_vm3, %v956_v33  ;;  %v975_v43 = vpack.c.bf16 %v647_v34, %v647_v34  ;;  %v957_v44 = vpack.c.bf16 %v629_v35, %v629_v35  ;;  %v561_v46 = vmul.f32 %v1162_v22, %v451_v42  ;;  %v602_v50 = vadd.f32 %v1167_v24, %v563_v40  ;;  %v1033_v53 = vpop.f32.mrb[10].mxu1  ;;  %v454_v54 = vpop.f32.mrb[11].mxu0 }
  0xf9   : > { %805 = vst.msk [vmem:[%s1187_s6 + $0x50] sm:$0xf] %vm784_vm3, %v972_v37  ;;  %792 = vst.msk [vmem:[%s1187_s6 + $0x1c] sm:$0xf] %vm784_vm3, %v959_v38  ;;  %v973_v49 = vpack.c.bf16 %v645_v39, %v645_v39  ;;  %v577_v51 = vmul.f32 %v1162_v22, %v515_v47  ;;  %v564_v52 = vmul.f32 %v1017_v48, %v1162_v22  ;;  %v518_v59 = vpop.f32.mrb[11].mxu1 }
  0xfa   : > { %808 = vst.msk [vmem:[%s1187_s6 + $0x5c] sm:$0xf] %vm784_vm3, %v975_v43  ;;  %790 = vst.msk [vmem:[%s1187_s6 + $0x14] sm:$0xf] %vm784_vm3, %v957_v44  ;;  %v618_v55 = vadd.f32 %v1167_v24, %v579_v45  ;;  %v600_v56 = vadd.f32 %v1167_v24, %v561_v46  ;;  %v580_v57 = vmul.f32 %v1033_v53, %v1162_v22  ;;  %v634_v60 = vmax.f32 %v602_v50, 0.0 }
  0xfb   : > { %v562_v58 = vmul.f32 %v1162_v22, %v454_v54  ;;  %806 = vst.msk [vmem:[%s1187_s6 + $0x54] sm:$0xf] %vm784_vm3, %v973_v49  ;;  %v616_v61 = vadd.f32 %v1167_v24, %v577_v51  ;;  %v603_v62 = vadd.f32 %v1167_v24, %v564_v52  ;;  %v578_v63 = vmul.f32 %v1162_v22, %v518_v59 }
  0xfc   : > { %v650_v0 = vmax.f32 %v618_v55, 0.0  ;;  %v632_v1 = vmax.f32 %v600_v56, 0.0  ;;  %v619_v2 = vadd.f32 %v1167_v24, %v580_v57  ;;  %v962_v4 = vpack.c.bf16 %v634_v60, %v634_v60 }
  0xfd   : > { %v601_v3 = vadd.f32 %v1167_v24, %v562_v58  ;;  %v648_v5 = vmax.f32 %v616_v61, 0.0  ;;  %v635_v6 = vmax.f32 %v603_v62, 0.0  ;;  %v617_v7 = vadd.f32 %v1167_v24, %v578_v63  ;;  %v1020_v12 = vpop.f32.mrb[12].mxu0 }
  0xfe   : > { %v978_v8 = vpack.c.bf16 %v650_v0, %v650_v0  ;;  %v960_v9 = vpack.c.bf16 %v632_v1, %v632_v1  ;;  %v651_v10 = vmax.f32 %v619_v2, 0.0  ;;  %795 = vst.msk [vmem:[%s1187_s6 + $0x28] sm:$0xf] %vm784_vm3, %v962_v4  ;;  %v567_v16 = vmul.f32 %v1020_v12, %v1162_v22  ;;  %v1036_v17 = vpop.f32.mrb[12].mxu1  ;;  %v467_v18 = vpop.f32.mrb[13].mxu0 }
  0xff   : > { %v633_v11 = vmax.f32 %v601_v3, 0.0  ;;  %v976_v13 = vpack.c.bf16 %v648_v5, %v648_v5  ;;  %v963_v14 = vpack.c.bf16 %v635_v6, %v635_v6  ;;  %v649_v15 = vmax.f32 %v617_v7, 0.0  ;;  %v531_v25 = vpop.f32.mrb[13].mxu1  ;;  %v1021_v26 = vpop.f32.mrb[14].mxu0 }
 0x100   : > { %811 = vst.msk [vmem:[%s1187_s6 + $0x68] sm:$0xf] %vm784_vm3, %v978_v8  ;;  %793 = vst.msk [vmem:[%s1187_s6 + $0x20] sm:$0xf] %vm784_vm3, %v960_v9  ;;  %v979_v19 = vpack.c.bf16 %v651_v10, %v651_v10  ;;  %v583_v21 = vmul.f32 %v1036_v17, %v1162_v22  ;;  %v565_v23 = vmul.f32 %v1162_v22, %v467_v18  ;;  %v1037_v31 = vpop.f32.mrb[14].mxu1  ;;  %v470_v32 = vpop.f32.mrb[15].mxu0 }
 0x101   : > { %v961_v20 = vpack.c.bf16 %v633_v11, %v633_v11  ;;  %809 = vst.msk [vmem:[%s1187_s6 + $0x60] sm:$0xf] %vm784_vm3, %v976_v13  ;;  %796 = vst.msk [vmem:[%s1187_s6 + $0x2c] sm:$0xf] %vm784_vm3, %v963_v14  ;;  %v977_v27 = vpack.c.bf16 %v649_v15, %v649_v15  ;;  %v606_v28 = vadd.f32 %v1167_v24, %v567_v16  ;;  %v534_v37 = vpop.f32.mrb[15].mxu1 }
 0x102   : > { %v581_v29 = vmul.f32 %v1162_v22, %v531_v25  ;;  %v568_v30 = vmul.f32 %v1021_v26, %v1162_v22  ;;  %812 = vst.msk [vmem:[%s1187_s6 + $0x6c] sm:$0xf] %vm784_vm3, %v979_v19  ;;  %v622_v33 = vadd.f32 %v1167_v24, %v583_v21  ;;  %v604_v34 = vadd.f32 %v1167_v24, %v565_v23 }
 0x103   : > { %794 = vst.msk [vmem:[%s1187_s6 + $0x24] sm:$0xf] %vm784_vm3, %v961_v20  ;;  %v584_v35 = vmul.f32 %v1037_v31, %v1162_v22  ;;  %v566_v36 = vmul.f32 %v1162_v22, %v470_v32  ;;  %810 = vst.msk [vmem:[%s1187_s6 + $0x64] sm:$0xf] %vm784_vm3, %v977_v27  ;;  %v638_v38 = vmax.f32 %v606_v28, 0.0  ;;  %v582_v41 = vmul.f32 %v1162_v22, %v534_v37 }
 0x104   : > { %v620_v39 = vadd.f32 %v1167_v24, %v581_v29  ;;  %v607_v40 = vadd.f32 %v1167_v24, %v568_v30  ;;  %v654_v42 = vmax.f32 %v622_v33, 0.0  ;;  %v636_v43 = vmax.f32 %v604_v34, 0.0 }
 0x105   : > { %v623_v44 = vadd.f32 %v1167_v24, %v584_v35  ;;  %v605_v45 = vadd.f32 %v1167_v24, %v566_v36  ;;  %v966_v46 = vpack.c.bf16 %v638_v38, %v638_v38  ;;  %v621_v49 = vadd.f32 %v1167_v24, %v582_v41 }
 0x106   : > { %v652_v47 = vmax.f32 %v620_v39, 0.0  ;;  %v639_v48 = vmax.f32 %v607_v40, 0.0  ;;  %v982_v50 = vpack.c.bf16 %v654_v42, %v654_v42  ;;  %v964_v51 = vpack.c.bf16 %v636_v43, %v636_v43 }
 0x107   : > { %v655_v22 = vmax.f32 %v623_v44, 0.0  ;;  %v637_v52 = vmax.f32 %v605_v45, 0.0  ;;  %799 = vst.msk [vmem:[%s1187_s6 + $0x38] sm:$0xf] %vm784_vm3, %v966_v46  ;;  %v653_v55 = vmax.f32 %v621_v49, 0.0 }
 0x108   : > { %v980_v53 = vpack.c.bf16 %v652_v47, %v652_v47  ;;  %v967_v54 = vpack.c.bf16 %v639_v48, %v639_v48  ;;  %815 = vst.msk [vmem:[%s1187_s6 + $0x78] sm:$0xf] %vm784_vm3, %v982_v50  ;;  %797 = vst.msk [vmem:[%s1187_s6 + $0x30] sm:$0xf] %vm784_vm3, %v964_v51 }
 0x109   : > { %v983_v56 = vpack.c.bf16 %v655_v22, %v655_v22  ;;  %v965_v57 = vpack.c.bf16 %v637_v52, %v637_v52  ;;  %v981_v24 = vpack.c.bf16 %v653_v55, %v653_v55 }
 0x10a   : > { %813 = vst.msk [vmem:[%s1187_s6 + $0x70] sm:$0xf] %vm784_vm3, %v980_v53  ;;  %800 = vst.msk [vmem:[%s1187_s6 + $0x3c] sm:$0xf] %vm784_vm3, %v967_v54 }
 0x10b   : > { %816 = vst.msk [vmem:[%s1187_s6 + $0x7c] sm:$0xf] %vm784_vm3, %v983_v56  ;;  %798 = vst.msk [vmem:[%s1187_s6 + $0x34] sm:$0xf] %vm784_vm3, %v965_v57 }
 0x10c   : > { %814 = vst.msk [vmem:[%s1187_s6 + $0x74] sm:$0xf] %vm784_vm3, %v981_v24 }
 0x10d PF: > { %s14_s15 = sadd.s32 1, %s1075_s15  }
 0x10e   : > { %p11_p4 = scmp.ge.s32.totalorder %s14_s15, 4  }
 0x110   :  { %13 = sbr.rel (!%p11_p4) target bundleno = 1 (0x1), region = 66 }

// kernel: spatial_path.4
= control target key start
LH: loop header
LB: loop body
LE: loop exit
PB: predicated region body
PF: predicated region fallthrough
CT: control target
= control target key end

     0   :  { %s4821_s15 = smov 0   ;;  %s4823_s16 = smov 0   ;;  %s5609_s0 = inlined_call_operand.vmem [shape: bf16[4,4,5,9,64], index: 0, kind: input, shape index: {}]   ;;  %s5610_s1 = inlined_call_operand.vmem [shape: bf16[9,64,128], index: 1, kind: input, shape index: {}]   ;;  %s5611_s2 = inlined_call_operand.vmem [shape: f32[1,128], index: 2, kind: input, shape index: {}]   ;;  %s5612_s3 = inlined_call_operand.vmem [shape: f32[1,128], index: 3, kind: input, shape index: {}]   ;;  %s5613_s4 = inlined_call_operand.vmem [shape: bf16[2,8,8,128], index: 4, kind: output, shape index: {}]  }
   0x1   :  { %s4825_s17 = smov 0   ;;  %s4827_s18 = smov 0  }
   0x2   :  { %s4829_s19 = smov 0  }
   0x3 LB: > { %s23_s20 = sadd.s32 1, %s4784_s17  ;;  %s26_s21 = sadd.s32 1, %s4788_s18  ;;  %s4792_s19 = sphi %s4829_s19, %s14_s19   ;;  %s4788_s18 = sphi %s4827_s18, %s5617_s18   ;;  %s4784_s17 = sphi %s4825_s17, %s5616_s17   ;;  %s4780_s16 = sphi %s4823_s16, %s5615_s16   ;;  %s4776_s15 = sphi %s4821_s15, %s5614_s15  }
   0x4   : > { %p24_p0 = scmp.ge.s32.totalorder %s23_s20, 2  ;;  %p3309_p1 = scmp.ge.s32.totalorder %s4792_s19, 1 }
   0x5   : > { %p184_p2 = scmp.lt.s32.totalorder %s4792_s19, 5 }
   0x6   : > { %s5619_s20 = smov (%p24_p0, %s23_s20), 0  ;;  %s5621_s21 = smov (!%p24_p0, %s26_s21), %s4788_s18 }
   0x7   : > { %p185_p3 = pnand %p3309_p1, %p184_p2  ;;  %p28_p4 = scmp.ge.s32.totalorder %s5621_s21, 2 }
   0x8   : > { %v4598_v0 = vld [vmem:[%s5610_s1 + $0x20] sm:$0xff] (!%p185_p3)   ;;  %v4794_v1 = vmov (!%p185_p3), 0.0   ;;  %v4600_v3 = vld [vmem:[%s5610_s1 + $0x28] sm:$0xff] (!%p185_p3)   ;;  %vm4795_vm0 = vmmov (!%p185_p3), 0   ;;  %s3310_s28 = sshll.u32 (!%p185_p3), %s4780_s16, 1  ;;  %v4602_v5 = vld [vmem:[%s5610_s1 + $0x30] sm:$0xff] (!%p185_p3)  }
   0x9   : > { %s5623_s21 = smov (%p28_p4, %s5621_s21), 0  ;;  %188 = sbr.rel (%p185_p3) target bundleno = 520 (0x208), region = 36 }
   0xa   : > { %3995 = vmatprep.subr.bf16.mxu0 (!%p185_p3), %v4794_v1  ;;  %4103 = vmatprep.subr.bf16.mxu1 (!%p185_p3), %v4794_v1  ;;  %v4599_v2 = vld [vmem:[%s5610_s1 + $0x20] sm:$0xff] (!%p185_p3)   ;;  %v4601_v4 = vld [vmem:[%s5610_s1 + $0x28] sm:$0xff] (!%p185_p3)   ;;  %s217_s5 = sadd.s32 (!%p185_p3), %s4776_s15, %s3310_s28  ;;  %v4603_v6 = vld [vmem:[%s5610_s1 + $0x30] sm:$0xff] (!%p185_p3)   ;;  %vm282_vm1 = vcmask (!%p185_p3), 523264   ;;  %s3312_s26 = sshll.u32 (!%p185_p3), %s4776_s15, 2 }
   0xb   : > { %3996 = vmatpush3.bf16.msra.mxu0 (!%p185_p3), %v4598_v0  ;;  %4003 = vmatprep.mubr.msk.bf16.mxu0 (!%p185_p3), %vm4795_vm0, %v4794_v1  ;;  %p218_p5 = scmp.lt.s32.totalorder (!%p185_p3), %s217_s5, 3  ;;  %v4604_v7 = vld [vmem:[%s5610_s1 + $0x38] sm:$0xff] (!%p185_p3)   ;;  %v4606_v9 = vld [vmem:[%s5610_s1] sm:$0xff] (!%p185_p3)   ;;  %v4608_v13 = vld [vmem:[%s5610_s1 + $0x8] sm:$0xff] (!%p185_p3)   ;;  %p226_p6 = scmp.lt.s32.totalorder (!%p185_p3), %s4780_s16, 1 }
   0xc   : > { %4104 = vmatpush3.bf16.msra.mxu1 (!%p185_p3), %v4599_v2  ;;  %3997 = vmatprep.subr.bf16.mxu0 (!%p185_p3), %v4794_v1  ;;  %v4605_v8 = vld [vmem:[%s5610_s1 + $0x38] sm:$0xff] (!%p185_p3)   ;;  %v4607_v10 = vld [vmem:[%s5610_s1] sm:$0xff] (!%p185_p3)   ;;  %v4609_v14 = vld [vmem:[%s5610_s1 + $0x8] sm:$0xff] (!%p185_p3)   ;;  %p228_p7 = scmp.lt.s32.totalorder (!%p185_p3), %s3312_s26, 7 }
   0xd   : > { %4105 = vmatprep.subr.bf16.mxu1 (!%p185_p3), %v4794_v1  ;;  %4111 = vmatprep.mubr.msk.bf16.mxu1 (!%p185_p3), %vm4795_vm0, %v4794_v1  ;;  %v4610_v15 = vld [vmem:[%s5610_s1 + $0x10] sm:$0xff] (!%p185_p3)   ;;  %v4612_v17 = vld [vmem:[%s5610_s1 + $0x18] sm:$0xff] (!%p185_p3)   ;;  %v4614_v20 = vld [vmem:[%s5610_s1 + $0x40] sm:$0xff] (!%p185_p3)  }
   0xe   : > { %v4611_v16 = vld [vmem:[%s5610_s1 + $0x10] sm:$0xff] (!%p185_p3)   ;;  %v4613_v18 = vld [vmem:[%s5610_s1 + $0x18] sm:$0xff] (!%p185_p3)   ;;  %v4615_v22 = vld [vmem:[%s5610_s1 + $0x40] sm:$0xff] (!%p185_p3)  }
   0xf   : > { %3998 = vmatpush3.bf16.msra.mxu0 (!%p185_p3), %v4600_v3  ;;  %v4616_v23 = vld [vmem:[%s5610_s1 + $0x48] sm:$0xff] (!%p185_p3)   ;;  %v4618_v28 = vld [vmem:[%s5610_s1 + $0x50] sm:$0xff] (!%p185_p3)   ;;  %v4620_v31 = vld [vmem:[%s5610_s1 + $0x58] sm:$0xff] (!%p185_p3)  }
  0x10   : > { %s5625_s5 = smov (!%p218_p5, %s217_s5), 3  ;;  %4106 = vmatpush3.bf16.msra.mxu1 %v4601_v4  ;;  %3999 = vmatprep.subr.bf16.mxu0 %v4794_v1  ;;  %v4617_v26 = vld [vmem:[%s5610_s1 + $0x48] sm:$0xff]   ;;  %v4619_v30 = vld [vmem:[%s5610_s1 + $0x50] sm:$0xff]   ;;  %v4621_v36 = vld [vmem:[%s5610_s1 + $0x58] sm:$0xff]   ;;  %s5627_s16 = smov (!%p226_p6, %s4780_s16), 1 }
  0x11   : > { %4107 = vmatprep.subr.bf16.mxu1 %v4794_v1  ;;  %s4555_s10 = smul.u32 160, %s5625_s5  ;;  %v4623_v38 = vld [vmem:[%s5610_s1 + $0x60] sm:$0xff]   ;;  %v4626_v41 = vld [vmem:[%s5610_s1 + $0x68] sm:$0xff]   ;;  %v4628_v43 = vld [vmem:[%s5610_s1 + $0x70] sm:$0xff]   ;;  %s5629_s26 = smov (!%p228_p7, %s3312_s26), 7 }
  0x12   : > { %v4625_v40 = vld [vmem:[%s5610_s1 + $0x60] sm:$0xff]   ;;  %v4627_v42 = vld [vmem:[%s5610_s1 + $0x68] sm:$0xff]   ;;  %v4629_v44 = vld [vmem:[%s5610_s1 + $0x70] sm:$0xff]   ;;  %s3313_s27 = sshll.u32 %s5627_s16, 3 }
  0x13   : > { %4000 = vmatpush3.bf16.msra.mxu0 %v4602_v5  ;;  %s4895_s24 = scalar_lea.vmem %s5609_s0, %s4555_s10  ;;  %v4630_v45 = vld [vmem:[%s5610_s1 + $0x78] sm:$0xff]   ;;  %v4632_v48 = vld [vmem:[%s5610_s1 + $0x80] sm:$0xff]   ;;  %v4634_v51 = vld [vmem:[%s5610_s1 + $0x88] sm:$0xff]   ;;  %s231_s30 = sadd.s32 %s3313_s27, %s5629_s26 }
  0x14   : > { %4108 = vmatpush3.bf16.msra.mxu1 %v4603_v6  ;;  %4001 = vmatprep.subr.bf16.mxu0 %v4794_v1  ;;  %v3315_v11 = vld [vmem:[%s4895_s24 + $0x28] sm:$0xf]  ;;  %v3439_v12 = vld [vmem:[%s4895_s24 + $0x30] sm:$0xf]  ;;  %v238_v19 = vld [vmem:[%s4895_s24] sm:$0xf] }
  0x15   : > { %4109 = vmatprep.subr.bf16.mxu1 %v4794_v1  ;;  %v3438_v21 = vld [vmem:[%s4895_s24 + $0x8] sm:$0xf]  ;;  %v4622_v24 = vld [vmem:[%s4895_s24] sm:$0x1f]   ;;  %v4631_v46 = vld [vmem:[%s5610_s1 + $0x78] sm:$0xff]   ;;  %s3314_s15 = sshll.u32 %s231_s30, 2 }
  0x16   : > { %v4624_v25 = vld [vmem:[%s4895_s24 + $0x8] sm:$0x1f]   ;;  %v412_v27 = vshll.u32 %v4622_v24, 16  ;;  %v410_v32 = vshrl.u32 %v4622_v24, 16  ;;  %v3348_v47 = vld [vmem:[%s4895_s24 + $0x50] sm:$0xf]  ;;  %s233_s8 = scalar_lea.vmem %s5613_s4, %s3314_s15 }
  0x17   : > { %4002 = vmatpush3.bf16.msra.mxu0 %v4604_v7  ;;  %v1169_v29 = vshll.u32 %v4624_v25, 16  ;;  %v1167_v34 = vshrl.u32 %v4624_v25, 16  ;;  %v3474_v49 = vld [vmem:[%s4895_s24 + $0x58] sm:$0xf]  ;;  %v4633_v50 = vld [vmem:[%s5610_s1 + $0x80] sm:$0xff]   ;;  %v4635_v52 = vld [vmem:[%s5610_s1 + $0x88] sm:$0xff]  }
  0x18   : > { %4110 = vmatpush3.bf16.msra.mxu1 %v4605_v8  ;;  %4007 = vmatprep.subr.bf16.mxu0 %v4794_v1  ;;  %v414_v33 = vrot.slane %v412_v27, 1  ;;  %v4636_v53 = vld [vmem:[%s5610_s1 + $0x90] sm:$0xff]   ;;  %v4638_v55 = vld [vmem:[%s5610_s1 + $0x98] sm:$0xff]   ;;  %v4640_v58 = vld [vmem:[%s5610_s1 + $0xa0] sm:$0xff]  }
  0x19   : > { %4115 = vmatprep.subr.bf16.mxu1 %v4794_v1  ;;  %v1171_v35 = vrot.slane %v1169_v29, 1  ;;  %v4637_v54 = vld [vmem:[%s5610_s1 + $0x90] sm:$0xff]   ;;  %v4639_v56 = vld [vmem:[%s5610_s1 + $0x98] sm:$0xff]   ;;  %v3488_v59 = vld [vmem:[%s4895_s24 + $0x80] sm:$0xf] }
  0x1a   : > { %4004 = vmatmul.mubr.msk.bf16.vlgmr.msra.gmra.mrb[0].mxu0 %vm282_vm1, %v3315_v11  ;;  %v415_v37 = vor.u32 %v414_v33, %v410_v32  ;;  %v3362_v57 = vld [vmem:[%s4895_s24 + $0x78] sm:$0xf]  ;;  %v4641_v60 = vld [vmem:[%s5610_s1 + $0xa0] sm:$0xff]   ;;  %v4642_v61 = vld [vmem:[%s5610_s1 + $0xa8] sm:$0xff]  }
  0x1b   : > { %4008 = vmatpush3.bf16.msra.mxu0 %v4606_v9  ;;  %4112 = vmatmul.mubr.msk.bf16.vlgmr.msra.gmra.mrb[0].mxu1 %vm282_vm1, %v3439_v12  ;;  %v1172_v39 = vor.u32 %v1171_v35, %v1167_v34  ;;  %v4648_v62 = vld [vmem:[%s4895_s24 + $0x50] sm:$0x1f]   ;;  %v4650_v63 = vld [vmem:[%s4895_s24 + $0x58] sm:$0x1f]   ;;  %v4643_v0 = vld [vmem:[%s5610_s1 + $0xa8] sm:$0xff]  }
  0x1c   : > { %4116 = vmatpush3.bf16.msra.mxu1 %v4607_v10  ;;  %4009 = vmatprep.subr.bf16.mxu0 %v4794_v1  ;;  %v661_v2 = vshll.u32 %v4648_v62, 16  ;;  %v4644_v3 = vld [vmem:[%s5610_s1 + $0xb0] sm:$0xff]   ;;  %v1415_v4 = vshll.u32 %v4650_v63, 16  ;;  %v4646_v6 = vld [vmem:[%s5610_s1 + $0xb8] sm:$0xff]   ;;  %v659_v7 = vshrl.u32 %v4648_v62, 16  ;;  %v1413_v9 = vshrl.u32 %v4650_v63, 16 }
  0x1d   : > { %4117 = vmatprep.subr.bf16.mxu1 %v4794_v1  ;;  %4015 = vmatprep.mubr.msk.bf16.mxu0 %vm4795_vm0, %v4794_v1  ;;  %v4645_v5 = vld [vmem:[%s5610_s1 + $0xb0] sm:$0xff]   ;;  %v4647_v11 = vld [vmem:[%s5610_s1 + $0xb8] sm:$0xff]   ;;  %v4659_v25 = vld [vmem:[%s5610_s1 + $0xe0] sm:$0xff]  }
  0x1e   : > { %4123 = vmatprep.mubr.msk.bf16.mxu1 %vm4795_vm0, %v4794_v1  ;;  %v663_v8 = vrot.slane %v661_v2, 1  ;;  %v1417_v10 = vrot.slane %v1415_v4, 1  ;;  %v3518_v24 = vld [vmem:[%s4895_s24 + $0x10] sm:$0xf]  ;;  %v4661_v27 = vld [vmem:[%s5610_s1 + $0xe8] sm:$0xff]   ;;  %v4666_v33 = vld [vmem:[%s5610_s1 + $0x100] sm:$0xff]  }
  0x1f   : > { %4010 = vmatpush3.bf16.msra.mxu0 %v4608_v13  ;;  %v4649_v13 = vld [vmem:[%s5610_s1 + $0xc0] sm:$0xff]   ;;  %v4663_v29 = vld [vmem:[%s5610_s1 + $0xf0] sm:$0xff]   ;;  %v3532_v34 = vld [vmem:[%s4895_s24 + $0x38] sm:$0xf] }
  0x20   : > { %4118 = vmatpush3.bf16.msra.mxu1 %v4609_v14  ;;  %4011 = vmatprep.subr.bf16.mxu0 %v4794_v1  ;;  %v664_v12 = vor.u32 %v663_v8, %v659_v7  ;;  %v1418_v14 = vor.u32 %v1417_v10, %v1413_v9  ;;  %v3406_v32 = vld [vmem:[%s4895_s24 + $0x30] sm:$0xf]  ;;  %v4667_v35 = vld [vmem:[%s5610_s1 + $0x100] sm:$0xff]   ;;  %v4687_v2 = vld [vmem:[%s5610_s1 + $0x8] sm:$0xff]  }
  0x21   : > { %4119 = vmatprep.subr.bf16.mxu1 %v4794_v1  ;;  %v3689_v62 = vld [vmem:[%s4895_s24 + $0x40] sm:$0xf]  ;;  %v4689_v4 = vld [vmem:[%s5610_s1 + $0x10] sm:$0xff]   ;;  %v3688_v9 = vld [vmem:[%s4895_s24 + $0x18] sm:$0xf] }
  0x22   : > { %v4685_v63 = vld [vmem:[%s5610_s1] sm:$0xff]   ;;  %v3563_v7 = vld [vmem:[%s4895_s24 + $0x10] sm:$0xf] }
  0x23   : > { %4012 = vmatpush3.bf16.msra.mxu0 %v4610_v15  ;;  %v4651_v15 = vld [vmem:[%s5610_s1 + $0xc0] sm:$0xff]  }
  0x24   : > { %4120 = vmatpush3.bf16.msra.mxu1 %v4611_v16  ;;  %4013 = vmatprep.subr.bf16.mxu0 %v4794_v1  ;;  %v4652_v16 = vld [vmem:[%s5610_s1 + $0xc8] sm:$0xff]   ;;  %v4692_v8 = vld [vmem:[%s5610_s1 + $0x40] sm:$0xff]  }
  0x25   : > { %4121 = vmatprep.subr.bf16.mxu1 %v4794_v1  ;;  %v4693_v10 = vld [vmem:[%s5610_s1 + $0x40] sm:$0xff]  }
  0x27   : > { %4014 = vmatpush3.bf16.msra.mxu0 %v4612_v17  ;;  %v4653_v17 = vld [vmem:[%s5610_s1 + $0xc8] sm:$0xff]  }
  0x28   : > { %4122 = vmatpush3.bf16.msra.mxu1 %v4613_v18  ;;  %4019 = vmatprep.subr.bf16.mxu0 %v4794_v1  ;;  %v4654_v18 = vld [vmem:[%s5610_s1 + $0xd0] sm:$0xff]  }
  0x29   : > { %4127 = vmatprep.subr.bf16.mxu1 %v4794_v1 }
  0x2a   : > { %4016 = vmatmul.mubr.msk.bf16.vlgmr.msra.gmra.mrb[0].mxu0 %vm282_vm1, %v238_v19  ;;  %v4655_v19 = vld [vmem:[%s5610_s1 + $0xd0] sm:$0xff]  }
  0x2b   : > { %4020 = vmatpush3.bf16.msra.mxu0 %v4614_v20  ;;  %4124 = vmatmul.mubr.msk.bf16.vlgmr.msra.gmra.mrb[0].mxu1 %vm282_vm1, %v3438_v21  ;;  %v4656_v20 = vld [vmem:[%s5610_s1 + $0xd8] sm:$0xff]  }
  0x2c   : > { %4128 = vmatpush3.bf16.msra.mxu1 %v4615_v22  ;;  %4021 = vmatprep.subr.bf16.mxu0 %v4794_v1  ;;  %v4657_v21 = vld [vmem:[%s5610_s1 + $0xd8] sm:$0xff]   ;;  %v3392_v22 = vld [vmem:[%s4895_s24 + $0x8] sm:$0xf] }
  0x2d   : > { %4129 = vmatprep.subr.bf16.mxu1 %v4794_v1  ;;  %4027 = vmatprep.mubr.msk.bf16.mxu0 %vm4795_vm0, %v4794_v1 }
  0x2e   : > { %4135 = vmatprep.mubr.msk.bf16.mxu1 %vm4795_vm0, %v4794_v1 }
  0x2f   : > { %4022 = vmatpush3.bf16.msra.mxu0 %v4616_v23  ;;  %v4658_v23 = vld [vmem:[%s5610_s1 + $0xe0] sm:$0xff]  }
  0x30   : > { %4130 = vmatpush3.bf16.msra.mxu1 %v4617_v26  ;;  %4023 = vmatprep.subr.bf16.mxu0 %v4794_v1  ;;  %v4660_v26 = vld [vmem:[%s5610_s1 + $0xe8] sm:$0xff]  }
  0x31   : > { %4131 = vmatprep.subr.bf16.mxu1 %v4794_v1 }
  0x33   : > { %4024 = vmatpush3.bf16.msra.mxu0 %v4618_v28  ;;  %v4662_v28 = vld [vmem:[%s5610_s1 + $0xf0] sm:$0xff]  }
  0x34   : > { %4132 = vmatpush3.bf16.msra.mxu1 %v4619_v30  ;;  %4025 = vmatprep.subr.bf16.mxu0 %v4794_v1  ;;  %v4664_v30 = vld [vmem:[%s5610_s1 + $0xf8] sm:$0xff]  }
  0x35   : > { %4133 = vmatprep.subr.bf16.mxu1 %v4794_v1 }
  0x37   : > { %4026 = vmatpush3.bf16.msra.mxu0 %v4620_v31  ;;  %v4665_v31 = vld [vmem:[%s5610_s1 + $0xf8] sm:$0xff]  }
  0x38   : > { %4134 = vmatpush3.bf16.msra.mxu1 %v4621_v36  ;;  %4031 = vmatprep.subr.bf16.mxu0 %v4794_v1  ;;  %v4668_v36 = vld [vmem:[%s5610_s1 + $0x108] sm:$0xff]  }
  0x39   : > { %4139 = vmatprep.subr.bf16.mxu1 %v4794_v1 }
  0x3a   : > { %4028 = vmatmul.mubr.msk.bf16.vlgmr.msra.gmra.mrb[0].mxu0 %vm282_vm1, %v415_v37  ;;  %v4674_v37 = vld [vmem:[%s4895_s24 + $0x8] sm:$0x1f]  }
  0x3b   : > { %4032 = vmatpush3.bf16.msra.mxu0 %v4623_v38  ;;  %4136 = vmatmul.mubr.msk.bf16.vlgmr.msra.gmra.mrb[0].mxu1 %vm282_vm1, %v1172_v39  ;;  %v4675_v38 = vld [vmem:[%s4895_s24 + $0x10] sm:$0x1f]   ;;  %v4669_v39 = vld [vmem:[%s5610_s1 + $0x108] sm:$0xff]  }
  0x3c   : > { %4140 = vmatpush3.bf16.msra.mxu1 %v4625_v40  ;;  %4033 = vmatprep.subr.bf16.mxu0 %v4794_v1  ;;  %v910_v40 = vshll.u32 %v4674_v37, 16 }
  0x3d   : > { %4141 = vmatprep.subr.bf16.mxu1 %v4794_v1  ;;  %4039 = vmatprep.mubr.msk.bf16.mxu0 %vm4795_vm0, %v4794_v1 }
  0x3e   : > { %4147 = vmatprep.mubr.msk.bf16.mxu1 %vm4795_vm0, %v4794_v1 }
  0x3f   : > { %4034 = vmatpush3.bf16.msra.mxu0 %v4626_v41  ;;  %v4670_v41 = vld [vmem:[%s5610_s1 + $0x110] sm:$0xff]  }
  0x40   : > { %4142 = vmatpush3.bf16.msra.mxu1 %v4627_v42  ;;  %4035 = vmatprep.subr.bf16.mxu0 %v4794_v1  ;;  %v1661_v42 = vshll.u32 %v4675_v38, 16 }
  0x41   : > { %4143 = vmatprep.subr.bf16.mxu1 %v4794_v1 }
  0x43   : > { %4036 = vmatpush3.bf16.msra.mxu0 %v4628_v43  ;;  %v4671_v43 = vld [vmem:[%s5610_s1 + $0x110] sm:$0xff]  }
  0x44   : > { %4144 = vmatpush3.bf16.msra.mxu1 %v4629_v44  ;;  %4037 = vmatprep.subr.bf16.mxu0 %v4794_v1  ;;  %v4672_v44 = vld [vmem:[%s5610_s1 + $0x118] sm:$0xff]  }
  0x45   : > { %4145 = vmatprep.subr.bf16.mxu1 %v4794_v1 }
  0x47   : > { %4038 = vmatpush3.bf16.msra.mxu0 %v4630_v45  ;;  %v908_v45 = vshrl.u32 %v4674_v37, 16  ;;  %v3724_v37 = vld [vmem:[%s4895_s24 + $0x68] sm:$0xf] }
  0x48   : > { %4146 = vmatpush3.bf16.msra.mxu1 %v4631_v46  ;;  %4043 = vmatprep.subr.bf16.mxu0 %v4794_v1  ;;  %v912_v46 = vrot.slane %v910_v40, 1  ;;  %v4713_v40 = vld [vmem:[%s5610_s1 + $0x88] sm:$0xff]  }
  0x49   : > { %4151 = vmatprep.subr.bf16.mxu1 %v4794_v1 }
  0x4a   : > { %4040 = vmatmul.mubr.msk.bf16.vlgmr.msra.gmra.mrb[0].mxu0 %vm282_vm1, %v3348_v47  ;;  %v1659_v47 = vshrl.u32 %v4675_v38, 16  ;;  %v4711_v38 = vld [vmem:[%s5610_s1 + $0x80] sm:$0xff]  }
  0x4b   : > { %4044 = vmatpush3.bf16.msra.mxu0 %v4632_v48  ;;  %4148 = vmatmul.mubr.msk.bf16.vlgmr.msra.gmra.mrb[0].mxu1 %vm282_vm1, %v3474_v49  ;;  %v1663_v48 = vrot.slane %v1661_v42, 1  ;;  %v4673_v49 = vld [vmem:[%s5610_s1 + $0x118] sm:$0xff]   ;;  %v4715_v42 = vld [vmem:[%s5610_s1 + $0x90] sm:$0xff]  }
  0x4c   : > { %4152 = vmatpush3.bf16.msra.mxu1 %v4633_v50  ;;  %4045 = vmatprep.subr.bf16.mxu0 %v4794_v1  ;;  %v913_v50 = vor.u32 %v912_v46, %v908_v45  ;;  %v3613_v45 = vld [vmem:[%s4895_s24 + $0x88] sm:$0xf]  ;;  %v4718_v46 = vld [vmem:[%s5610_s1 + $0xa0] sm:$0xff]  }
  0x4d   : > { %4153 = vmatprep.subr.bf16.mxu1 %v4794_v1  ;;  %4051 = vmatprep.mubr.msk.bf16.mxu0 %vm4795_vm0, %v4794_v1 }
  0x4e   : > { %4159 = vmatprep.mubr.msk.bf16.mxu1 %vm4795_vm0, %v4794_v1 }
  0x4f   : > { %4046 = vmatpush3.bf16.msra.mxu0 %v4634_v51  ;;  %v4676_v51 = vld [vmem:[%s5610_s1 + $0x20] sm:$0xff]  }
  0x50   : > { %4154 = vmatpush3.bf16.msra.mxu1 %v4635_v52  ;;  %4047 = vmatprep.subr.bf16.mxu0 %v4794_v1  ;;  %v1664_v52 = vor.u32 %v1663_v48, %v1659_v47  ;;  %v3738_v47 = vld [vmem:[%s4895_s24 + $0x90] sm:$0xf]  ;;  %v4719_v48 = vld [vmem:[%s5610_s1 + $0xa0] sm:$0xff]  }
  0x51   : > { %4155 = vmatprep.subr.bf16.mxu1 %v4794_v1 }
  0x53   : > { %4048 = vmatpush3.bf16.msra.mxu0 %v4636_v53  ;;  %v4677_v53 = vld [vmem:[%s5610_s1 + $0x20] sm:$0xff]  }
  0x54   : > { %4156 = vmatpush3.bf16.msra.mxu1 %v4637_v54  ;;  %4049 = vmatprep.subr.bf16.mxu0 %v4794_v1  ;;  %v4678_v54 = vld [vmem:[%s5610_s1 + $0x28] sm:$0xff]  }
  0x55   : > { %4157 = vmatprep.subr.bf16.mxu1 %v4794_v1 }
  0x57   : > { %4050 = vmatpush3.bf16.msra.mxu0 %v4638_v55  ;;  %v4679_v55 = vld [vmem:[%s5610_s1 + $0x28] sm:$0xff]  }
  0x58   : > { %4158 = vmatpush3.bf16.msra.mxu1 %v4639_v56  ;;  %4055 = vmatprep.subr.bf16.mxu0 %v4794_v1  ;;  %v4680_v56 = vld [vmem:[%s5610_s1 + $0x30] sm:$0xff]  }
  0x59   : > { %4163 = vmatprep.subr.bf16.mxu1 %v4794_v1 }
  0x5a   : > { %4052 = vmatmul.mubr.msk.bf16.vlgmr.msra.gmra.mrb[0].mxu0 %vm282_vm1, %v3362_v57  ;;  %v4681_v57 = vld [vmem:[%s5610_s1 + $0x30] sm:$0xff]  }
  0x5b   : > { %4056 = vmatpush3.bf16.msra.mxu0 %v4640_v58  ;;  %4160 = vmatmul.mubr.msk.bf16.vlgmr.msra.gmra.mrb[0].mxu1 %vm282_vm1, %v3488_v59  ;;  %v4682_v58 = vld [vmem:[%s5610_s1 + $0x38] sm:$0xff]  }
  0x5c   : > { %4164 = vmatpush3.bf16.msra.mxu1 %v4641_v60  ;;  %4057 = vmatprep.subr.bf16.mxu0 %v4794_v1  ;;  %v4683_v59 = vld [vmem:[%s5610_s1 + $0x38] sm:$0xff]  }
  0x5d   : > { %4165 = vmatprep.subr.bf16.mxu1 %v4794_v1  ;;  %4063 = vmatprep.mubr.msk.bf16.mxu0 %vm4795_vm0, %v4794_v1  ;;  %v3564_v60 = vld [vmem:[%s4895_s24 + $0x38] sm:$0xf] }
  0x5e   : > { %4171 = vmatprep.mubr.msk.bf16.mxu1 %vm4795_vm0, %v4794_v1 }
  0x5f   : > { %4058 = vmatpush3.bf16.msra.mxu0 %v4642_v61  ;;  %v4684_v61 = vld [vmem:[%s5610_s1] sm:$0xff]  }
  0x60   : > { %4166 = vmatpush3.bf16.msra.mxu1 %v4643_v0  ;;  %4059 = vmatprep.subr.bf16.mxu0 %v4794_v1  ;;  %v4686_v0 = vld [vmem:[%s5610_s1 + $0x8] sm:$0xff]  }
  0x61   : > { %4167 = vmatprep.subr.bf16.mxu1 %v4794_v1 }
  0x63   : > { %4060 = vmatpush3.bf16.msra.mxu0 %v4644_v3  ;;  %v4688_v3 = vld [vmem:[%s5610_s1 + $0x10] sm:$0xff]  }
  0x64   : > { %4168 = vmatpush3.bf16.msra.mxu1 %v4645_v5  ;;  %4061 = vmatprep.subr.bf16.mxu0 %v4794_v1  ;;  %v4690_v5 = vld [vmem:[%s5610_s1 + $0x18] sm:$0xff]  }
  0x65   : > { %4169 = vmatprep.subr.bf16.mxu1 %v4794_v1 }
  0x67   : > { %4062 = vmatpush3.bf16.msra.mxu0 %v4646_v6  ;;  %v4691_v6 = vld [vmem:[%s5610_s1 + $0x18] sm:$0xff]  }
  0x68   : > { %4170 = vmatpush3.bf16.msra.mxu1 %v4647_v11  ;;  %4067 = vmatprep.subr.bf16.mxu0 %v4794_v1  ;;  %v4700_v11 = vld [vmem:[%s4895_s24 + $0x10] sm:$0x1f]  }
  0x69   : > { %4175 = vmatprep.subr.bf16.mxu1 %v4794_v1 }
  0x6a   : > { %4064 = vmatmul.mubr.msk.bf16.vlgmr.msra.gmra.mrb[0].mxu0 %vm282_vm1, %v664_v12  ;;  %v4694_v12 = vld [vmem:[%s5610_s1 + $0x48] sm:$0xff]  }
  0x6b   : > { %4068 = vmatpush3.bf16.msra.mxu0 %v4649_v13  ;;  %4172 = vmatmul.mubr.msk.bf16.vlgmr.msra.gmra.mrb[0].mxu1 %vm282_vm1, %v1418_v14  ;;  %v4702_v13 = vld [vmem:[%s4895_s24 + $0x18] sm:$0x1f]   ;;  %v4695_v14 = vld [vmem:[%s5610_s1 + $0x48] sm:$0xff]  }
  0x6c   : > { %4176 = vmatpush3.bf16.msra.mxu1 %v4651_v15  ;;  %4069 = vmatprep.subr.bf16.mxu0 %v4794_v1  ;;  %v1909_v15 = vshll.u32 %v4700_v11, 16 }
  0x6d   : > { %4177 = vmatprep.subr.bf16.mxu1 %v4794_v1  ;;  %4075 = vmatprep.mubr.msk.bf16.mxu0 %vm4795_vm0, %v4794_v1 }
  0x6e   : > { %4183 = vmatprep.mubr.msk.bf16.mxu1 %vm4795_vm0, %v4794_v1 }
  0x6f   : > { %4070 = vmatpush3.bf16.msra.mxu0 %v4652_v16  ;;  %v4696_v16 = vld [vmem:[%s5610_s1 + $0x50] sm:$0xff]  }
  0x70   : > { %4178 = vmatpush3.bf16.msra.mxu1 %v4653_v17  ;;  %4071 = vmatprep.subr.bf16.mxu0 %v4794_v1  ;;  %v2649_v17 = vshll.u32 %v4702_v13, 16 }
  0x71   : > { %4179 = vmatprep.subr.bf16.mxu1 %v4794_v1 }
  0x73   : > { %4072 = vmatpush3.bf16.msra.mxu0 %v4654_v18  ;;  %v4697_v18 = vld [vmem:[%s5610_s1 + $0x50] sm:$0xff]  }
  0x74   : > { %4180 = vmatpush3.bf16.msra.mxu1 %v4655_v19  ;;  %4073 = vmatprep.subr.bf16.mxu0 %v4794_v1  ;;  %v1907_v19 = vshrl.u32 %v4700_v11, 16  ;;  %v4736_v11 = vld [vmem:[%s5610_s1 + $0xe0] sm:$0xff]  }
  0x75   : > { %4181 = vmatprep.subr.bf16.mxu1 %v4794_v1 }
  0x77   : > { %4074 = vmatpush3.bf16.msra.mxu0 %v4656_v20  ;;  %v1911_v20 = vrot.slane %v1909_v15, 1  ;;  %v4739_v15 = vld [vmem:[%s5610_s1 + $0xe8] sm:$0xff]  }
  0x78   : > { %4182 = vmatpush3.bf16.msra.mxu1 %v4657_v21  ;;  %4079 = vmatprep.subr.bf16.mxu0 %v4794_v1  ;;  %v4698_v21 = vld [vmem:[%s5610_s1 + $0x58] sm:$0xff]  }
  0x79   : > { %4187 = vmatprep.subr.bf16.mxu1 %v4794_v1 }
  0x7a   : > { %4076 = vmatmul.mubr.msk.bf16.vlgmr.msra.gmra.mrb[0].mxu0 %vm282_vm1, %v3392_v22  ;;  %v2647_v22 = vshrl.u32 %v4702_v13, 16  ;;  %v4737_v13 = vld [vmem:[%s5610_s1 + $0xe0] sm:$0xff]  }
  0x7b   : > { %4080 = vmatpush3.bf16.msra.mxu0 %v4658_v23  ;;  %4184 = vmatmul.mubr.msk.bf16.vlgmr.msra.gmra.mrb[0].mxu1 %vm282_vm1, %v3518_v24  ;;  %v2651_v23 = vrot.slane %v2649_v17, 1  ;;  %v4699_v24 = vld [vmem:[%s5610_s1 + $0x58] sm:$0xff]   ;;  %v4741_v17 = vld [vmem:[%s5610_s1 + $0xf0] sm:$0xff]  }
  0x7c   : > { %4188 = vmatpush3.bf16.msra.mxu1 %v4659_v25  ;;  %4081 = vmatprep.subr.bf16.mxu0 %v4794_v1  ;;  %v1912_v25 = vor.u32 %v1911_v20, %v1907_v19  ;;  %v4743_v19 = vld [vmem:[%s5610_s1 + $0xf8] sm:$0xff]   ;;  %v3657_v20 = vld [vmem:[%s4895_s24 + $0x40] sm:$0xf] }
  0x7d   : > { %4189 = vmatprep.subr.bf16.mxu1 %v4794_v1  ;;  %4087 = vmatprep.mubr.msk.bf16.mxu0 %vm4795_vm0, %v4794_v1 }
  0x7e   : > { %4195 = vmatprep.mubr.msk.bf16.mxu1 %vm4795_vm0, %v4794_v1 }
  0x7f   : > { %4082 = vmatpush3.bf16.msra.mxu0 %v4660_v26  ;;  %v4701_v26 = vld [vmem:[%s5610_s1 + $0x60] sm:$0xff]  }
  0x80   : > { %4190 = vmatpush3.bf16.msra.mxu1 %v4661_v27  ;;  %4083 = vmatprep.subr.bf16.mxu0 %v4794_v1  ;;  %v2652_v27 = vor.u32 %v2651_v23, %v2647_v22  ;;  %v3782_v22 = vld [vmem:[%s4895_s24 + $0x48] sm:$0xf]  ;;  %v4745_v23 = vld [vmem:[%s5610_s1 + $0x100] sm:$0xff]  }
  0x81   : > { %4191 = vmatprep.subr.bf16.mxu1 %v4794_v1 }
  0x83   : > { %4084 = vmatpush3.bf16.msra.mxu0 %v4662_v28  ;;  %v4703_v28 = vld [vmem:[%s5610_s1 + $0x60] sm:$0xff]  }
  0x84   : > { %4192 = vmatpush3.bf16.msra.mxu1 %v4663_v29  ;;  %4085 = vmatprep.subr.bf16.mxu0 %v4794_v1  ;;  %v4704_v29 = vld [vmem:[%s5610_s1 + $0x68] sm:$0xff]  }
  0x85   : > { %4193 = vmatprep.subr.bf16.mxu1 %v4794_v1 }
  0x87   : > { %4086 = vmatpush3.bf16.msra.mxu0 %v4664_v30  ;;  %v4705_v30 = vld [vmem:[%s5610_s1 + $0x68] sm:$0xff]  }
  0x88   : > { %4194 = vmatpush3.bf16.msra.mxu1 %v4665_v31  ;;  %4091 = vmatprep.subr.bf16.mxu0 %v4794_v1  ;;  %v4706_v31 = vld [vmem:[%s5610_s1 + $0x70] sm:$0xff]  }
  0x89   : > { %4199 = vmatprep.subr.bf16.mxu1 %v4794_v1 }
  0x8a   : > { %4088 = vmatmul.mubr.msk.bf16.vlgmr.msra.gmra.mrb[0].mxu0 %vm282_vm1, %v3406_v32  ;;  %v4707_v32 = vld [vmem:[%s5610_s1 + $0x70] sm:$0xff]  }
  0x8b   : > { %4092 = vmatpush3.bf16.msra.mxu0 %v4666_v33  ;;  %4196 = vmatmul.mubr.msk.bf16.vlgmr.msra.gmra.mrb[0].mxu1 %vm282_vm1, %v3532_v34  ;;  %v4708_v33 = vld [vmem:[%s5610_s1 + $0x78] sm:$0xff]  }
  0x8c   : > { %4200 = vmatpush3.bf16.msra.mxu1 %v4667_v35  ;;  %4093 = vmatprep.subr.bf16.mxu0 %v4794_v1  ;;  %v4709_v34 = vld [vmem:[%s5610_s1 + $0x78] sm:$0xff]   ;;  %v3599_v35 = vld [vmem:[%s4895_s24 + $0x60] sm:$0xf] }
  0x8d   : > { %4201 = vmatprep.subr.bf16.mxu1 %v4794_v1  ;;  %4099 = vmatprep.mubr.msk.bf16.mxu0 %vm4795_vm0, %v4794_v1 }
  0x8e   : > { %4207 = vmatprep.mubr.msk.bf16.mxu1 %vm4795_vm0, %v4794_v1 }
  0x8f   : > { %4094 = vmatpush3.bf16.msra.mxu0 %v4668_v36  ;;  %v4710_v36 = vld [vmem:[%s5610_s1 + $0x80] sm:$0xff]  }
  0x90   : > { %4202 = vmatpush3.bf16.msra.mxu1 %v4669_v39  ;;  %4095 = vmatprep.subr.bf16.mxu0 %v4794_v1  ;;  %v4712_v39 = vld [vmem:[%s5610_s1 + $0x88] sm:$0xff]  }
  0x91   : > { %4203 = vmatprep.subr.bf16.mxu1 %v4794_v1 }
  0x93   : > { %4096 = vmatpush3.bf16.msra.mxu0 %v4670_v41  ;;  %v4714_v41 = vld [vmem:[%s5610_s1 + $0x90] sm:$0xff]  }
  0x94   : > { %4204 = vmatpush3.bf16.msra.mxu1 %v4671_v43  ;;  %4097 = vmatprep.subr.bf16.mxu0 %v4794_v1  ;;  %v4716_v43 = vld [vmem:[%s5610_s1 + $0x98] sm:$0xff]  }
  0x95   : > { %4205 = vmatprep.subr.bf16.mxu1 %v4794_v1 }
  0x97   : > { %4098 = vmatpush3.bf16.msra.mxu0 %v4672_v44  ;;  %v4717_v44 = vld [vmem:[%s5610_s1 + $0x98] sm:$0xff]  }
  0x98   : > { %4206 = vmatpush3.bf16.msra.mxu1 %v4673_v49  ;;  %4211 = vmatprep.subr.bf16.mxu0 %v4794_v1  ;;  %v4726_v49 = vld [vmem:[%s4895_s24 + $0x60] sm:$0x1f]  }
  0x99   : > { %4319 = vmatprep.subr.bf16.mxu1 %v4794_v1 }
  0x9a   : > { %4100 = vmatmul.mubr.msk.bf16.vlgmr.msra.gmra.mrb[0].mxu0 %vm282_vm1, %v913_v50  ;;  %v4720_v50 = vld [vmem:[%s5610_s1 + $0xa8] sm:$0xff]  }
  0x9b   : > { %4208 = vmatmul.mubr.msk.bf16.vlgmr.msra.gmra.mrb[0].mxu1 %vm282_vm1, %v1664_v52  ;;  %4212 = vmatpush3.bf16.msra.mxu0 %v4676_v51  ;;  %v4728_v51 = vld [vmem:[%s4895_s24 + $0x68] sm:$0x1f]  }
  0x9c   : > { %4320 = vmatpush3.bf16.msra.mxu1 %v4677_v53  ;;  %4213 = vmatprep.subr.bf16.mxu0 %v4794_v1  ;;  %v4721_v52 = vld [vmem:[%s5610_s1 + $0xa8] sm:$0xff]   ;;  %v2155_v53 = vshll.u32 %v4726_v49, 16 }
  0x9d   : > { %4321 = vmatprep.subr.bf16.mxu1 %v4794_v1  ;;  %4219 = vmatprep.mubr.msk.bf16.mxu0 %vm4795_vm0, %v4794_v1 }
  0x9e   : > { %4327 = vmatprep.mubr.msk.bf16.mxu1 %vm4795_vm0, %v4794_v1 }
  0x9f   : > { %4214 = vmatpush3.bf16.msra.mxu0 %v4678_v54  ;;  %v4722_v54 = vld [vmem:[%s5610_s1 + $0xb0] sm:$0xff]  }
  0xa0   : > { %4322 = vmatpush3.bf16.msra.mxu1 %v4679_v55  ;;  %4215 = vmatprep.subr.bf16.mxu0 %v4794_v1  ;;  %v2895_v55 = vshll.u32 %v4728_v51, 16 }
  0xa1   : > { %4323 = vmatprep.subr.bf16.mxu1 %v4794_v1 }
  0xa3   : > { %4216 = vmatpush3.bf16.msra.mxu0 %v4680_v56  ;;  %v4723_v56 = vld [vmem:[%s5610_s1 + $0xb0] sm:$0xff]  }
  0xa4   : > { %4324 = vmatpush3.bf16.msra.mxu1 %v4681_v57  ;;  %4217 = vmatprep.subr.bf16.mxu0 %v4794_v1  ;;  %v2153_v57 = vshrl.u32 %v4726_v49, 16 }
  0xa5   : > { %4325 = vmatprep.subr.bf16.mxu1 %v4794_v1 }
  0xa7   : > { %4218 = vmatpush3.bf16.msra.mxu0 %v4682_v58  ;;  %v2157_v58 = vrot.slane %v2155_v53, 1 }
  0xa8   : > { %4326 = vmatpush3.bf16.msra.mxu1 %v4683_v59  ;;  %4223 = vmatprep.subr.bf16.mxu0 %v4794_v1  ;;  %v4724_v59 = vld [vmem:[%s5610_s1 + $0xb8] sm:$0xff]  }
  0xa9   : > { %4331 = vmatprep.subr.bf16.mxu1 %v4794_v1 }
  0xaa   : > { %4220 = vmatmul.mubr.msk.bf16.vlgmr.msra.gmra.mrb[4].mxu0 %vm282_vm1, %v3564_v60  ;;  %v2893_v60 = vshrl.u32 %v4728_v51, 16 }
  0xab   : > { %4224 = vmatpush3.bf16.msra.mxu0 %v4684_v61  ;;  %4328 = vmatmul.mubr.msk.bf16.vlgmr.msra.gmra.mrb[4].mxu1 %vm282_vm1, %v3689_v62  ;;  %v2897_v61 = vrot.slane %v2895_v55, 1  ;;  %v4725_v62 = vld [vmem:[%s5610_s1 + $0xb8] sm:$0xff]  }
  0xac   : > { %4332 = vmatpush3.bf16.msra.mxu1 %v4685_v63  ;;  %4225 = vmatprep.subr.bf16.mxu0 %v4794_v1  ;;  %v2158_v63 = vor.u32 %v2157_v58, %v2153_v57 }
  0xad   : > { %4333 = vmatprep.subr.bf16.mxu1 %v4794_v1  ;;  %4231 = vmatprep.mubr.msk.bf16.mxu0 %vm4795_vm0, %v4794_v1 }
  0xae   : > { %4339 = vmatprep.mubr.msk.bf16.mxu1 %vm4795_vm0, %v4794_v1 }
  0xaf   : > { %4226 = vmatpush3.bf16.msra.mxu0 %v4686_v0  ;;  %v4727_v0 = vld [vmem:[%s5610_s1 + $0xc0] sm:$0xff]  }
  0xb0   : > { %4334 = vmatpush3.bf16.msra.mxu1 %v4687_v2  ;;  %4227 = vmatprep.subr.bf16.mxu0 %v4794_v1  ;;  %v2898_v2 = vor.u32 %v2897_v61, %v2893_v60 }
  0xb1   : > { %4335 = vmatprep.subr.bf16.mxu1 %v4794_v1 }
  0xb3   : > { %4228 = vmatpush3.bf16.msra.mxu0 %v4688_v3  ;;  %v4729_v3 = vld [vmem:[%s5610_s1 + $0xc0] sm:$0xff]  }
  0xb4   : > { %4336 = vmatpush3.bf16.msra.mxu1 %v4689_v4  ;;  %4229 = vmatprep.subr.bf16.mxu0 %v4794_v1  ;;  %v4730_v4 = vld [vmem:[%s5610_s1 + $0xc8] sm:$0xff]  }
  0xb5   : > { %4337 = vmatprep.subr.bf16.mxu1 %v4794_v1 }
  0xb7   : > { %4230 = vmatpush3.bf16.msra.mxu0 %v4690_v5  ;;  %v4731_v5 = vld [vmem:[%s5610_s1 + $0xc8] sm:$0xff]  }
  0xb8   : > { %4338 = vmatpush3.bf16.msra.mxu1 %v4691_v6  ;;  %4235 = vmatprep.subr.bf16.mxu0 %v4794_v1  ;;  %v4732_v6 = vld [vmem:[%s5610_s1 + $0xd0] sm:$0xff]  }
  0xb9   : > { %4343 = vmatprep.subr.bf16.mxu1 %v4794_v1 }
  0xba   : > { %4232 = vmatmul.mubr.msk.bf16.vlgmr.msra.gmra.mrb[4].mxu0 %vm282_vm1, %v3563_v7  ;;  %v4733_v7 = vld [vmem:[%s5610_s1 + $0xd0] sm:$0xff]  }
  0xbb   : > { %4236 = vmatpush3.bf16.msra.mxu0 %v4692_v8  ;;  %4340 = vmatmul.mubr.msk.bf16.vlgmr.msra.gmra.mrb[4].mxu1 %vm282_vm1, %v3688_v9  ;;  %v4734_v8 = vld [vmem:[%s5610_s1 + $0xd8] sm:$0xff]  }
  0xbc   : > { %4344 = vmatpush3.bf16.msra.mxu1 %v4693_v10  ;;  %4237 = vmatprep.subr.bf16.mxu0 %v4794_v1  ;;  %v4735_v9 = vld [vmem:[%s5610_s1 + $0xd8] sm:$0xff]  }
  0xbd   : > { %4345 = vmatprep.subr.bf16.mxu1 %v4794_v1  ;;  %4243 = vmatprep.mubr.msk.bf16.mxu0 %vm4795_vm0, %v4794_v1  ;;  %v3643_v10 = vld [vmem:[%s4895_s24 + $0x18] sm:$0xf] }
  0xbe   : > { %4351 = vmatprep.mubr.msk.bf16.mxu1 %vm4795_vm0, %v4794_v1 }
  0xbf   : > { %4238 = vmatpush3.bf16.msra.mxu0 %v4694_v12  ;;  %v3768_v12 = vld [vmem:[%s4895_s24 + $0x20] sm:$0xf] }
  0xc0   : > { %4346 = vmatpush3.bf16.msra.mxu1 %v4695_v14  ;;  %4239 = vmatprep.subr.bf16.mxu0 %v4794_v1  ;;  %v4738_v14 = vld [vmem:[%s5610_s1 + $0xe8] sm:$0xff]  }
  0xc1   : > { %4347 = vmatprep.subr.bf16.mxu1 %v4794_v1 }
  0xc3   : > { %4240 = vmatpush3.bf16.msra.mxu0 %v4696_v16  ;;  %v4740_v16 = vld [vmem:[%s5610_s1 + $0xf0] sm:$0xff]  }
  0xc4   : > { %4348 = vmatpush3.bf16.msra.mxu1 %v4697_v18  ;;  %4241 = vmatprep.subr.bf16.mxu0 %v4794_v1  ;;  %v4742_v18 = vld [vmem:[%s5610_s1 + $0xf8] sm:$0xff]  }
  0xc5   : > { %4349 = vmatprep.subr.bf16.mxu1 %v4794_v1 }
  0xc7   : > { %4242 = vmatpush3.bf16.msra.mxu0 %v4698_v21  ;;  %v4744_v21 = vld [vmem:[%s5610_s1 + $0x100] sm:$0xff]  }
  0xc8   : > { %4350 = vmatpush3.bf16.msra.mxu1 %v4699_v24  ;;  %4247 = vmatprep.subr.bf16.mxu0 %v4794_v1  ;;  %v4752_v24 = vld [vmem:[%s4895_s24 + $0x18] sm:$0x1f]  }
  0xc9   : > { %4355 = vmatprep.subr.bf16.mxu1 %v4794_v1 }
  0xca   : > { %4244 = vmatmul.mubr.msk.bf16.vlgmr.msra.gmra.mrb[4].mxu0 %vm282_vm1, %v1912_v25  ;;  %v4746_v25 = vld [vmem:[%s5610_s1 + $0x108] sm:$0xff]  }
  0xcb   : > { %4248 = vmatpush3.bf16.msra.mxu0 %v4701_v26  ;;  %4352 = vmatmul.mubr.msk.bf16.vlgmr.msra.gmra.mrb[4].mxu1 %vm282_vm1, %v2652_v27  ;;  %v4753_v26 = vld [vmem:[%s4895_s24 + $0x20] sm:$0x1f]   ;;  %v4747_v27 = vld [vmem:[%s5610_s1 + $0x108] sm:$0xff]  }
  0xcc   : > { %4356 = vmatpush3.bf16.msra.mxu1 %v4703_v28  ;;  %4249 = vmatprep.subr.bf16.mxu0 %v4794_v1  ;;  %v2401_v28 = vshll.u32 %v4752_v24, 16 }
  0xcd   : > { %4357 = vmatprep.subr.bf16.mxu1 %v4794_v1  ;;  %4255 = vmatprep.mubr.msk.bf16.mxu0 %vm4795_vm0, %v4794_v1 }
  0xce   : > { %4363 = vmatprep.mubr.msk.bf16.mxu1 %vm4795_vm0, %v4794_v1 }
  0xcf   : > { %4250 = vmatpush3.bf16.msra.mxu0 %v4704_v29  ;;  %v4748_v29 = vld [vmem:[%s5610_s1 + $0x110] sm:$0xff]  }
  0xd0   : > { %4358 = vmatpush3.bf16.msra.mxu1 %v4705_v30  ;;  %4251 = vmatprep.subr.bf16.mxu0 %v4794_v1  ;;  %v3141_v30 = vshll.u32 %v4753_v26, 16 }
  0xd1   : > { %4359 = vmatprep.subr.bf16.mxu1 %v4794_v1 }
  0xd3   : > { %4252 = vmatpush3.bf16.msra.mxu0 %v4706_v31  ;;  %v4749_v31 = vld [vmem:[%s5610_s1 + $0x110] sm:$0xff]  }
  0xd4   : > { %4360 = vmatpush3.bf16.msra.mxu1 %v4707_v32  ;;  %4253 = vmatprep.subr.bf16.mxu0 %v4794_v1  ;;  %v2399_v32 = vshrl.u32 %v4752_v24, 16 }
  0xd5   : > { %4361 = vmatprep.subr.bf16.mxu1 %v4794_v1 }
  0xd7   : > { %4254 = vmatpush3.bf16.msra.mxu0 %v4708_v33  ;;  %v2403_v33 = vrot.slane %v2401_v28, 1 }
  0xd8   : > { %4362 = vmatpush3.bf16.msra.mxu1 %v4709_v34  ;;  %4259 = vmatprep.subr.bf16.mxu0 %v4794_v1  ;;  %v4750_v34 = vld [vmem:[%s5610_s1 + $0x118] sm:$0xff]  }
  0xd9   : > { %4367 = vmatprep.subr.bf16.mxu1 %v4794_v1 }
  0xda   : > { %4256 = vmatmul.mubr.msk.bf16.vlgmr.msra.gmra.mrb[4].mxu0 %vm282_vm1, %v3599_v35  ;;  %v3139_v35 = vshrl.u32 %v4753_v26, 16 }
  0xdb   : > { %4260 = vmatpush3.bf16.msra.mxu0 %v4710_v36  ;;  %4364 = vmatmul.mubr.msk.bf16.vlgmr.msra.gmra.mrb[4].mxu1 %vm282_vm1, %v3724_v37  ;;  %v3143_v36 = vrot.slane %v3141_v30, 1  ;;  %v4751_v37 = vld [vmem:[%s5610_s1 + $0x118] sm:$0xff]  }
  0xdc   : > { %4368 = vmatpush3.bf16.msra.mxu1 %v4711_v38  ;;  %4261 = vmatprep.subr.bf16.mxu0 %v4794_v1  ;;  %v2404_v38 = vor.u32 %v2403_v33, %v2399_v32 }
  0xdd   : > { %4369 = vmatprep.subr.bf16.mxu1 %v4794_v1  ;;  %4267 = vmatprep.mubr.msk.bf16.mxu0 %vm4795_vm0, %v4794_v1 }
  0xde   : > { %4375 = vmatprep.mubr.msk.bf16.mxu1 %vm4795_vm0, %v4794_v1 }
  0xdf   : > { %4262 = vmatpush3.bf16.msra.mxu0 %v4712_v39  ;;  %v3144_v39 = vor.u32 %v3143_v36, %v3139_v35 }
  0xe0   : > { %4370 = vmatpush3.bf16.msra.mxu1 %v4713_v40  ;;  %4263 = vmatprep.subr.bf16.mxu0 %v4794_v1  ;;  %v3436_v40 = vld [vmem:[%s5611_s2] ss:$0 sm:$0xff] }
  0xe1   : > { %4371 = vmatprep.subr.bf16.mxu1 %v4794_v1 }
  0xe3   : > { %4264 = vmatpush3.bf16.msra.mxu0 %v4714_v41 }
  0xe4   : > { %4372 = vmatpush3.bf16.msra.mxu1 %v4715_v42  ;;  %4265 = vmatprep.subr.bf16.mxu0 %v4794_v1 }
  0xe5   : > { %4373 = vmatprep.subr.bf16.mxu1 %v4794_v1 }
  0xe7   : > { %4266 = vmatpush3.bf16.msra.mxu0 %v4716_v43 }
  0xe8   : > { %4374 = vmatpush3.bf16.msra.mxu1 %v4717_v44  ;;  %4271 = vmatprep.subr.bf16.mxu0 %v4794_v1 }
  0xe9   : > { %4379 = vmatprep.subr.bf16.mxu1 %v4794_v1 }
  0xea   : > { %4268 = vmatmul.mubr.msk.bf16.vlgmr.msra.gmra.mrb[4].mxu0 %vm282_vm1, %v3613_v45 }
  0xeb   : > { %4272 = vmatpush3.bf16.msra.mxu0 %v4718_v46  ;;  %4376 = vmatmul.mubr.msk.bf16.vlgmr.msra.gmra.mrb[4].mxu1 %vm282_vm1, %v3738_v47 }
  0xec   : > { %4380 = vmatpush3.bf16.msra.mxu1 %v4719_v48  ;;  %4273 = vmatprep.subr.bf16.mxu0 %v4794_v1 }
  0xed   : > { %4381 = vmatprep.subr.bf16.mxu1 %v4794_v1  ;;  %4279 = vmatprep.mubr.msk.bf16.mxu0 %vm4795_vm0, %v4794_v1 }
  0xee   : > { %4387 = vmatprep.mubr.msk.bf16.mxu1 %vm4795_vm0, %v4794_v1 }
  0xef   : > { %4274 = vmatpush3.bf16.msra.mxu0 %v4720_v50 }
  0xf0   : > { %4382 = vmatpush3.bf16.msra.mxu1 %v4721_v52  ;;  %4275 = vmatprep.subr.bf16.mxu0 %v4794_v1 }
  0xf1   : > { %4383 = vmatprep.subr.bf16.mxu1 %v4794_v1 }
  0xf3   : > { %4276 = vmatpush3.bf16.msra.mxu0 %v4722_v54 }
  0xf4   : > { %4384 = vmatpush3.bf16.msra.mxu1 %v4723_v56  ;;  %4277 = vmatprep.subr.bf16.mxu0 %v4794_v1 }
  0xf5   : > { %4385 = vmatprep.subr.bf16.mxu1 %v4794_v1 }
  0xf7   : > { %4278 = vmatpush3.bf16.msra.mxu0 %v4724_v59 }
  0xf8   : > { %4386 = vmatpush3.bf16.msra.mxu1 %v4725_v62  ;;  %4283 = vmatprep.subr.bf16.mxu0 %v4794_v1 }
  0xf9   : > { %4391 = vmatprep.subr.bf16.mxu1 %v4794_v1 }
  0xfa   : > { %4280 = vmatmul.mubr.msk.bf16.vlgmr.msra.gmra.mrb[4].mxu0 %vm282_vm1, %v2158_v63 }
  0xfb   : > { %4284 = vmatpush3.bf16.msra.mxu0 %v4727_v0  ;;  %4388 = vmatmul.mubr.msk.bf16.vlgmr.msra.gmra.mrb[4].mxu1 %vm282_vm1, %v2898_v2 }
  0xfc   : > { %4392 = vmatpush3.bf16.msra.mxu1 %v4729_v3  ;;  %4285 = vmatprep.subr.bf16.mxu0 %v4794_v1 }
  0xfd   : > { %4393 = vmatprep.subr.bf16.mxu1 %v4794_v1  ;;  %4291 = vmatprep.mubr.msk.bf16.mxu0 %vm4795_vm0, %v4794_v1 }
  0xfe   : > { %4399 = vmatprep.mubr.msk.bf16.mxu1 %vm4795_vm0, %v4794_v1 }
  0xff   : > { %4286 = vmatpush3.bf16.msra.mxu0 %v4730_v4 }
 0x100   : > { %4394 = vmatpush3.bf16.msra.mxu1 %v4731_v5  ;;  %4287 = vmatprep.subr.bf16.mxu0 %v4794_v1 }
 0x101   : > { %4395 = vmatprep.subr.bf16.mxu1 %v4794_v1 }
 0x103   : > { %4288 = vmatpush3.bf16.msra.mxu0 %v4732_v6 }
 0x104   : > { %4396 = vmatpush3.bf16.msra.mxu1 %v4733_v7  ;;  %4289 = vmatprep.subr.bf16.mxu0 %v4794_v1 }
 0x105   : > { %4397 = vmatprep.subr.bf16.mxu1 %v4794_v1 }
 0x107   : > { %4290 = vmatpush3.bf16.msra.mxu0 %v4734_v8 }
 0x108   : > { %4398 = vmatpush3.bf16.msra.mxu1 %v4735_v9  ;;  %4295 = vmatprep.subr.bf16.mxu0 %v4794_v1 }
 0x109   : > { %4403 = vmatprep.subr.bf16.mxu1 %v4794_v1 }
 0x10a   : > { %4292 = vmatmul.mubr.msk.bf16.vlgmr.msra.gmra.mrb[4].mxu0 %vm282_vm1, %v3643_v10 }
 0x10b   : > { %4296 = vmatpush3.bf16.msra.mxu0 %v4736_v11  ;;  %4400 = vmatmul.mubr.msk.bf16.vlgmr.msra.gmra.mrb[4].mxu1 %vm282_vm1, %v3768_v12 }
 0x10c   : > { %4404 = vmatpush3.bf16.msra.mxu1 %v4737_v13  ;;  %4297 = vmatprep.subr.bf16.mxu0 %v4794_v1 }
 0x10d   : > { %4405 = vmatprep.subr.bf16.mxu1 %v4794_v1  ;;  %4303 = vmatprep.mubr.msk.bf16.mxu0 %vm4795_vm0, %v4794_v1 }
 0x10e   : > { %4411 = vmatprep.mubr.msk.bf16.mxu1 %vm4795_vm0, %v4794_v1 }
 0x10f   : > { %4298 = vmatpush3.bf16.msra.mxu0 %v4738_v14 }
 0x110   : > { %4406 = vmatpush3.bf16.msra.mxu1 %v4739_v15  ;;  %4299 = vmatprep.subr.bf16.mxu0 %v4794_v1 }
 0x111   : > { %4407 = vmatprep.subr.bf16.mxu1 %v4794_v1 }
 0x113   : > { %4300 = vmatpush3.bf16.msra.mxu0 %v4740_v16 }
 0x114   : > { %4408 = vmatpush3.bf16.msra.mxu1 %v4741_v17  ;;  %4301 = vmatprep.subr.bf16.mxu0 %v4794_v1 }
 0x115   : > { %4409 = vmatprep.subr.bf16.mxu1 %v4794_v1 }
 0x117   : > { %4302 = vmatpush3.bf16.msra.mxu0 %v4742_v18 }
 0x118   : > { %4410 = vmatpush3.bf16.msra.mxu1 %v4743_v19  ;;  %4307 = vmatprep.subr.bf16.mxu0 %v4794_v1 }
 0x119   : > { %4415 = vmatprep.subr.bf16.mxu1 %v4794_v1 }
 0x11a   : > { %4304 = vmatmul.mubr.msk.bf16.vlgmr.msra.gmra.mrb[4].mxu0 %vm282_vm1, %v3657_v20 }
 0x11b   : > { %4308 = vmatpush3.bf16.msra.mxu0 %v4744_v21  ;;  %4412 = vmatmul.mubr.msk.bf16.vlgmr.msra.gmra.mrb[4].mxu1 %vm282_vm1, %v3782_v22 }
 0x11c   : > { %4416 = vmatpush3.bf16.msra.mxu1 %v4745_v23  ;;  %4309 = vmatprep.subr.bf16.mxu0 %v4794_v1 }
 0x11d   : > { %4417 = vmatprep.subr.bf16.mxu1 %v4794_v1  ;;  %4315 = vmatprep.mubr.msk.bf16.mxu0 %vm4795_vm0, %v4794_v1 }
 0x11e   : > { %4423 = vmatprep.mubr.msk.bf16.mxu1 %vm4795_vm0, %v4794_v1 }
 0x11f   : > { %4310 = vmatpush3.bf16.msra.mxu0 %v4746_v25 }
 0x120   : > { %4418 = vmatpush3.bf16.msra.mxu1 %v4747_v27  ;;  %4311 = vmatprep.subr.bf16.mxu0 %v4794_v1 }
 0x121   : > { %4419 = vmatprep.subr.bf16.mxu1 %v4794_v1 }
 0x123   : > { %4312 = vmatpush3.bf16.msra.mxu0 %v4748_v29 }
 0x124   : > { %4420 = vmatpush3.bf16.msra.mxu1 %v4749_v31  ;;  %4313 = vmatprep.subr.bf16.mxu0 %v4794_v1 }
 0x125   : > { %4421 = vmatprep.subr.bf16.mxu1 %v4794_v1  ;;  %v3437_v1 = vld [vmem:[%s5612_s3] ss:$0 sm:$0xff] }
 0x127   : > { %4314 = vmatpush3.bf16.msra.mxu0 %v4750_v34 }
 0x128   : > { %4422 = vmatpush3.bf16.msra.mxu1 %v4751_v37 }
 0x12a   : > { %4316 = vmatmul.mubr.msk.bf16.vlgmr.msra.gmra.mrb[4].mxu0 %vm282_vm1, %v2404_v38 }
 0x12b   : > { %4424 = vmatmul.mubr.msk.bf16.vlgmr.msra.gmra.mrb[4].mxu1 %vm282_vm1, %v3144_v39 }
 0x16d   : > { %v975_v41 = vpop.f32.mrb[0].mxu0 }
 0x16e   : > { %v988_v42 = vmul.f32 %v3436_v40, %v975_v41  ;;  %v1726_v43 = vpop.f32.mrb[0].mxu1  ;;  %v4101_v44 = vpop.f32.mrb[1].mxu0 }
 0x16f   : > { %v1733_v45 = vmul.f32 %v3436_v40, %v1726_v43  ;;  %v4209_v46 = vpop.f32.mrb[1].mxu1  ;;  %v978_v47 = vpop.f32.mrb[2].mxu0 }
 0x170   : > { %v995_v48 = vadd.f32 %v3437_v1, %v988_v42  ;;  %v1729_v49 = vpop.f32.mrb[2].mxu1  ;;  %v4102_v50 = vpop.f32.mrb[3].mxu0 }
 0x171   : > { %v1734_v51 = vadd.f32 %v3437_v1, %v1733_v45  ;;  %v4210_v52 = vpop.f32.mrb[3].mxu1 }
 0x172   : > { %v996_v53 = vmax.f32 %v995_v48, 0.0 }
 0x173   : > { %v1735_v54 = vmax.f32 %v1734_v51, 0.0 }
 0x174   : > { %v997_v55 = vpack.c.bf16 %v996_v53, %v996_v53 }
 0x175   : > { %v1736_v56 = vpack.c.bf16 %v1735_v54, %v1735_v54 }
 0x176   : > { %998 = vst [vmem:[%s233_s8] sm:$0xf] %v997_v55 }
 0x177   : > { %3562 = vst [vmem:[%s233_s8 + $0x4] sm:$0xf] %v1736_v56 }
 0x1fd   : > { %v2466_v57 = vpop.f32.mrb[4].mxu0 }
 0x1fe   : > { %v2473_v58 = vmul.f32 %v3436_v40, %v2466_v57  ;;  %v3206_v59 = vpop.f32.mrb[4].mxu1  ;;  %v4317_v60 = vpop.f32.mrb[5].mxu0 }
 0x1ff   : > { %v3213_v61 = vmul.f32 %v3436_v40, %v3206_v59  ;;  %v4425_v62 = vpop.f32.mrb[5].mxu1  ;;  %v2469_v63 = vpop.f32.mrb[6].mxu0 }
 0x200   : > { %v2474_v0 = vadd.f32 %v3437_v1, %v2473_v58  ;;  %v3209_v2 = vpop.f32.mrb[6].mxu1  ;;  %v4318_v3 = vpop.f32.mrb[7].mxu0 }
 0x201   : > { %v3214_v4 = vadd.f32 %v3437_v1, %v3213_v61  ;;  %v4426_v5 = vpop.f32.mrb[7].mxu1 }
 0x202   : > { %v2475_v6 = vmax.f32 %v2474_v0, 0.0 }
 0x203   : > { %v3215_v7 = vmax.f32 %v3214_v4, 0.0 }
 0x204   : > { %v2476_v8 = vpack.c.bf16 %v2475_v6, %v2475_v6 }
 0x205   : > { %v3216_v9 = vpack.c.bf16 %v3215_v7, %v3215_v7 }
 0x206   : > { %3687 = vst [vmem:[%s233_s8 + $0x8] sm:$0xf] %v2476_v8 }
 0x207   : > { %3812 = vst [vmem:[%s233_s8 + $0xc] sm:$0xf] %v3216_v9 }
 0x208 PF: > { %s14_s19 = sadd.s32 1, %s4792_s19   ;;  %s5614_s15 = smov %s4784_s17 }
 0x209   : > { %p11_p8 = scmp.ge.s32.totalorder %s14_s19, 6   ;;  %s5615_s16 = smov %s4788_s18 }
 0x20a   : > { %s5616_s17 = smov %s5619_s20  ;;  %s5617_s18 = smov %s5623_s21 }
 0x20b   :  { %13 = sbr.rel (!%p11_p8) target bundleno = 3 (0x3), region = 94 }

// kernel: spatial_path.5
= control target key start
LH: loop header
LB: loop body
LE: loop exit
PB: predicated region body
PF: predicated region fallthrough
CT: control target
= control target key end

     0   :  { %9 = vsyncpa [#allocation3], 0  ;;  %s4650_s0 = inlined_call_operand.vmem [shape: bf16[4,4,3,5,128], index: 0, kind: input, shape index: {}]   ;;  %s4651_s1 = inlined_call_operand.vmem [shape: bf16[9,128,256], index: 1, kind: input, shape index: {}]   ;;  %s4652_s2 = inlined_call_operand.vmem [shape: f32[1,256], index: 2, kind: input, shape index: {}]   ;;  %s4653_s3 = inlined_call_operand.vmem [shape: f32[1,256], index: 3, kind: input, shape index: {}]   ;;  %s4654_s4 = inlined_call_operand.hbm [shape: f32[2,4,4,256], index: 4, kind: output, shape index: {}]  }
   0x1   :  { %11 = vsyncpa [#allocation3 + $0x1], 0  ;;  %s4032_s15 = smov 0   ;;  %s4034_s16 = smov 0  }
   0x2   :  { %s4036_s17 = smov 0   ;;  %s4038_s18 = smov 0  }
   0x3   :  { %s4040_s19 = smov 0   ;;  %s4042_s20 = smov 0  }
   0x4   :  { %s4044_s21 = smov 0   ;;  %s4046_s22 = smov 0  }
   0x5 LB: > { %s2961_s23 = sadd.s32 4294967295, %s4001_s22   ;;  %s2962_s24 = sadd.s32 4294967294, %s4001_s22   ;;  %s4001_s22 = sphi %s4046_s22, %s17_s22   ;;  %s3997_s21 = sphi %s4044_s21, %s4663_s21   ;;  %s3993_s20 = sphi %s4042_s20, %s4662_s20   ;;  %s3989_s19 = sphi %s4040_s19, %s4661_s19   ;;  %s3985_s18 = sphi %s4038_s18, %s4660_s18   ;;  %s3981_s17 = sphi %s4036_s17, %s4659_s17   ;;  %s3977_s16 = sphi %s4034_s16, %s4658_s16   ;;  %s3973_s15 = sphi %s4032_s15, %s4657_s15  }
   0x6   : > { %s26_s25 = sadd.s32 1, %s3993_s20  ;;  %s29_s26 = sadd.s32 1, %s3997_s21 }
   0x7   : > { %p27_p0 = scmp.ge.s32.totalorder %s26_s25, 2  ;;  %p141_p1 = scmp.ne.s32.totalorder %s3981_s17, %s3977_s16 }
   0x8   : > { %p142_p2 = scmp.eq.s32.totalorder %s2961_s23, 3  ;;  %p147_p5 = scmp.ne.s32.totalorder %s3977_s16, %s3973_s15 }
   0x9   : > { %s4665_s25 = smov (%p27_p0, %s26_s25), 0  ;;  %s4667_s26 = smov (!%p27_p0, %s29_s26), %s3997_s21 }
   0xa   : > { %s127_s27 = ssub.s32 %s3993_s20, %s4665_s25  ;;  %p4083_p3 = por %p142_p2, %p141_p1 }
   0xb   : > { %p31_p4 = scmp.ge.s32.totalorder %s4667_s26, 2  ;;  %p148_p6 = scmp.eq.s32.totalorder %s2962_s24, 3 }
   0xc   : > { %p2967_p7 = scmp.ge.s32.totalorder %s4001_s22, 1  ;;  %p187_p9 = scmp.lt.s32.totalorder %s4001_s22, 5 }
   0xd   : > { %s4669_s26 = smov (%p31_p4, %s4667_s26), 0  ;;  %p4092_p8 = por %p148_p6, %p147_p5 }
   0xe   : > { %s126_s30 = ssub.s32 %s3997_s21, %s4669_s26  ;;  %s131_s5 = sadd.s32 1, %s3981_s17 }
   0xf   : > { %s128_s6 = sor.u32 %s127_s27, %s126_s30  ;;  %p188_p10 = pnand %p2967_p7, %p187_p9 }
  0x10   : > { %p129_p11 = scmp.eq.s32.totalorder %s128_s6, 0  ;;  %v3685_v0 = vld [vmem:[%s4651_s1 + $0x84] ss:$8 sps:$4 sm:$0xff] (!%p188_p10)   ;;  %v3687_v1 = vld [vmem:[%s4651_s1 + $0x80] ss:$8 sps:$4 sm:$0xff] (!%p188_p10)   ;;  %v4003_v2 = vmov (!%p188_p10), 0  }
  0x11   : > { %191 = sbr.rel (%p188_p10) target bundleno = 543 (0x21f), region = 36  ;;  %376 = vmatprep.mubr.bf16.mxu0 (!%p188_p10), %v4003_v2  ;;  %1709 = vmatprep.mubr.bf16.mxu1 (!%p188_p10), %v4003_v2  ;;  %v3688_v3 = vld [vmem:[%s4651_s1 + $0x94] ss:$8 sps:$4 sm:$0xff] (!%p188_p10)   ;;  %v3690_v4 = vld [vmem:[%s4651_s1 + $0x90] ss:$8 sps:$4 sm:$0xff] (!%p188_p10)   ;;  %s2969_s9 = sshll.u32 (!%p188_p10), %s3989_s19, 1 }
  0x12   : > { %s4101_s7 = scalar_select %p129_p11, %s3981_s17, %s131_s5  }
  0x13   : > { %344 = vmatprep.subr.bf16.mxu0 (!%p188_p10), %v3685_v0  ;;  %1677 = vmatprep.subr.bf16.mxu1 (!%p188_p10), %v3685_v0  ;;  %v3691_v5 = vld [vmem:[%s4651_s1 + $0xa4] ss:$8 sps:$4 sm:$0xff] (!%p188_p10)   ;;  %v3693_v6 = vld [vmem:[%s4651_s1 + $0xa0] ss:$8 sps:$4 sm:$0xff] (!%p188_p10)   ;;  %v3694_v7 = vld [vmem:[%s4651_s1 + $0xb4] ss:$8 sps:$4 sm:$0xff] (!%p188_p10)   ;;  %s216_s14 = sadd.s32 (!%p188_p10), %s3985_s18, %s2969_s9 }
  0x14   : > { %345 = vmatpush1.bf16.msra.mxu0 (!%p188_p10), %v3687_v1  ;;  %1678 = vmatpush1.bf16.msra.mxu1 (!%p188_p10), %v3687_v1  ;;  %v3696_v8 = vld [vmem:[%s4651_s1 + $0xb0] ss:$8 sps:$4 sm:$0xff] (!%p188_p10)   ;;  %v3697_v9 = vld [vmem:[%s4651_s1 + $0xc4] ss:$8 sps:$4 sm:$0xff] (!%p188_p10)   ;;  %v3699_v10 = vld [vmem:[%s4651_s1 + $0xc0] ss:$8 sps:$4 sm:$0xff] (!%p188_p10)  }
  0x15   : > { %346 = vmatprep.subr.bf16.mxu0 (!%p188_p10), %v3688_v3  ;;  %1679 = vmatprep.subr.bf16.mxu1 (!%p188_p10), %v3688_v3  ;;  %v3700_v11 = vld [vmem:[%s4651_s1 + $0xd4] ss:$8 sps:$4 sm:$0xff] (!%p188_p10)   ;;  %p217_p12 = scmp.lt.s32.totalorder (!%p188_p10), %s216_s14, 3  ;;  %v3702_v12 = vld [vmem:[%s4651_s1 + $0xd0] ss:$8 sps:$4 sm:$0xff] (!%p188_p10)   ;;  %s212_s12 = sand.u32 (!%p188_p10), 1, %s3977_s16  }
  0x16   : > { %v3703_v13 = vld [vmem:[%s4651_s1 + $0xe4] ss:$8 sps:$4 sm:$0xff] (!%p188_p10)   ;;  %v3705_v14 = vld [vmem:[%s4651_s1 + $0xe0] ss:$8 sps:$4 sm:$0xff] (!%p188_p10)   ;;  %v3706_v15 = vld [vmem:[%s4651_s1 + $0xf4] ss:$8 sps:$4 sm:$0xff] (!%p188_p10)  }
  0x17   : > { %v3708_v16 = vld [vmem:[%s4651_s1 + $0xf0] ss:$8 sps:$4 sm:$0xff] (!%p188_p10)   ;;  %v3711_v17 = vld [vmem:[%s4651_s1 + $0x4] ss:$8 sps:$4 sm:$0xff] (!%p188_p10)   ;;  %v3709_v18 = vld [vmem:[%s4651_s1] ss:$8 sps:$4 sm:$0xff] (!%p188_p10)  }
  0x18   : > { %347 = vmatpush1.bf16.msra.mxu0 %v3690_v4  ;;  %1680 = vmatpush1.bf16.msra.mxu1 %v3690_v4  ;;  %s4671_s14 = smov (!%p217_p12, %s216_s14), 3  ;;  %v3714_v21 = vld [vmem:[%s4651_s1 + $0x14] ss:$8 sps:$4 sm:$0xff]   ;;  %v3712_v22 = vld [vmem:[%s4651_s1 + $0x10] ss:$8 sps:$4 sm:$0xff]   ;;  %s2968_s24 = sshll.u32 %s212_s12, 4 }
  0x19   : > { %348 = vmatprep.subr.bf16.mxu0 %v3691_v5  ;;  %1681 = vmatprep.subr.bf16.mxu1 %v3691_v5  ;;  %s3610_s23 = smul.u32 48, %s4671_s14  ;;  %v3717_v23 = vld [vmem:[%s4651_s1 + $0x24] ss:$8 sps:$4 sm:$0xff]   ;;  %v3715_v24 = vld [vmem:[%s4651_s1 + $0x20] ss:$8 sps:$4 sm:$0xff]   ;;  %s3545_s27 = sshll.u32 %s3985_s18, 2 }
  0x1a   : > { %v3720_v25 = vld [vmem:[%s4651_s1 + $0x34] ss:$8 sps:$4 sm:$0xff]   ;;  %v3718_v26 = vld [vmem:[%s4651_s1 + $0x30] ss:$8 sps:$4 sm:$0xff]   ;;  %v3723_v27 = vld [vmem:[%s4651_s1 + $0x44] ss:$8 sps:$4 sm:$0xff]  }
  0x1b   : > { %s4161_s9 = scalar_lea.vmem %s4650_s0, %s3610_s23  ;;  %v3721_v28 = vld [vmem:[%s4651_s1 + $0x40] ss:$8 sps:$4 sm:$0xff]   ;;  %v3726_v29 = vld [vmem:[%s4651_s1 + $0x54] ss:$8 sps:$4 sm:$0xff]   ;;  %v3724_v30 = vld [vmem:[%s4651_s1 + $0x50] ss:$8 sps:$4 sm:$0xff]  }
  0x1c   : > { %349 = vmatpush1.bf16.msra.mxu0 %v3693_v6  ;;  %1682 = vmatpush1.bf16.msra.mxu1 %v3693_v6  ;;  %v2971_v19 = vld [vmem:[%s4161_s9 + $0xc] sm:$0x3]  ;;  %v3254_v20 = vld [vmem:[%s4161_s9 + $0x10] sm:$0x3]  ;;  %v3727_v32 = vld [vmem:[%s4651_s1 + $0x60] ss:$8 sps:$4 sm:$0xff]  }
  0x1d   : > { %350 = vmatprep.subr.bf16.mxu0 %v3694_v7  ;;  %1683 = vmatprep.subr.bf16.mxu1 %v3694_v7  ;;  %v3729_v31 = vld [vmem:[%s4651_s1 + $0x64] ss:$8 sps:$4 sm:$0xff]   ;;  %v3732_v33 = vld [vmem:[%s4651_s1 + $0x74] ss:$8 sps:$4 sm:$0xff]   ;;  %v3730_v34 = vld [vmem:[%s4651_s1 + $0x70] ss:$8 sps:$4 sm:$0xff]  }
  0x1e   : > { %v3735_v35 = vld [vmem:[%s4651_s1 + $0x104] ss:$8 sps:$4 sm:$0xff]   ;;  %v3733_v36 = vld [vmem:[%s4651_s1 + $0x100] ss:$8 sps:$4 sm:$0xff]   ;;  %v3738_v39 = vld [vmem:[%s4651_s1 + $0x114] ss:$8 sps:$4 sm:$0xff]  }
  0x1f   : > { %v228_v37 = vld [vmem:[%s4161_s9] sm:$0x3]  ;;  %v3253_v38 = vld [vmem:[%s4161_s9 + $0x4] sm:$0x3]  ;;  %v3736_v40 = vld [vmem:[%s4651_s1 + $0x110] ss:$8 sps:$4 sm:$0xff]  }
  0x20   : > { %351 = vmatpush1.bf16.msra.mxu0 %v3696_v8  ;;  %1684 = vmatpush1.bf16.msra.mxu1 %v3696_v8  ;;  %v3741_v41 = vld [vmem:[%s4651_s1 + $0x124] ss:$8 sps:$4 sm:$0xff]   ;;  %v3739_v42 = vld [vmem:[%s4651_s1 + $0x120] ss:$8 sps:$4 sm:$0xff]   ;;  %v3744_v43 = vld [vmem:[%s4651_s1 + $0x134] ss:$8 sps:$4 sm:$0xff]  }
  0x21   : > { %352 = vmatprep.subr.bf16.mxu0 %v3697_v9  ;;  %1685 = vmatprep.subr.bf16.mxu1 %v3697_v9  ;;  %v3742_v44 = vld [vmem:[%s4651_s1 + $0x130] ss:$8 sps:$4 sm:$0xff]   ;;  %v3747_v45 = vld [vmem:[%s4651_s1 + $0x144] ss:$8 sps:$4 sm:$0xff]   ;;  %v3745_v46 = vld [vmem:[%s4651_s1 + $0x140] ss:$8 sps:$4 sm:$0xff]  }
  0x22   : > { %v3750_v47 = vld [vmem:[%s4651_s1 + $0x154] ss:$8 sps:$4 sm:$0xff]   ;;  %v3760_v48 = vld [vmem:[%s4161_s9] ss:$0 sps:$4 sm:$0x77]   ;;  %s3541_s30 = sshll.u32 %s3989_s19, 3 }
  0x23   : > { %v3761_v49 = vld [vmem:[%s4161_s9 + $0x4] ss:$0 sps:$4 sm:$0x77]   ;;  %v3748_v50 = vld [vmem:[%s4651_s1 + $0x150] ss:$8 sps:$4 sm:$0xff]   ;;  %v530_v52 = vshll.u32 %v3760_v48, 16  ;;  %s2882_s5 = sadd.s32 %s3545_s27, %s3541_s30 }
  0x24   : > { %353 = vmatpush1.bf16.msra.mxu0 %v3699_v10  ;;  %1686 = vmatpush1.bf16.msra.mxu1 %v3699_v10  ;;  %v3753_v51 = vld [vmem:[%s4651_s1 + $0x164] ss:$8 sps:$4 sm:$0xff]   ;;  %v1862_v53 = vshll.u32 %v3761_v49, 16  ;;  %v3751_v54 = vld [vmem:[%s4651_s1 + $0x160] ss:$8 sps:$4 sm:$0xff]   ;;  %v528_v56 = vshrl.u32 %v3760_v48, 16 }
  0x25   : > { %354 = vmatprep.subr.bf16.mxu0 %v3700_v11  ;;  %1687 = vmatprep.subr.bf16.mxu1 %v3700_v11  ;;  %v3756_v55 = vld [vmem:[%s4651_s1 + $0x174] ss:$8 sps:$4 sm:$0xff]   ;;  %v1860_v57 = vshrl.u32 %v3761_v49, 16  ;;  %v532_v58 = vrot.slane %v530_v52, 1  ;;  %v3754_v60 = vld [vmem:[%s4651_s1 + $0x170] ss:$8 sps:$4 sm:$0xff]  }
  0x26   : > { %v1864_v59 = vrot.slane %v1862_v53, 1  ;;  %v3759_v61 = vld [vmem:[%s4651_s1 + $0x184] ss:$8 sps:$4 sm:$0xff]   ;;  %v3757_v0 = vld [vmem:[%s4651_s1 + $0x180] ss:$8 sps:$4 sm:$0xff]   ;;  %s214_s18 = scalar_lea.vmem [#allocation2], %s2968_s24 }
  0x27   : > { %v533_v62 = vor.u32 %v532_v58, %v528_v56  ;;  %v3764_v1 = vld [vmem:[%s4651_s1 + $0x194] ss:$8 sps:$4 sm:$0xff]   ;;  %v3762_v3 = vld [vmem:[%s4651_s1 + $0x190] ss:$8 sps:$4 sm:$0xff]   ;;  %v3767_v4 = vld [vmem:[%s4651_s1 + $0x1a4] ss:$8 sps:$4 sm:$0xff]  }
  0x28   : > { %355 = vmatpush1.bf16.msra.mxu0 %v3702_v12  ;;  %1688 = vmatpush1.bf16.msra.mxu1 %v3702_v12  ;;  %v1865_v63 = vor.u32 %v1864_v59, %v1860_v57  ;;  %v3765_v5 = vld [vmem:[%s4651_s1 + $0x1a0] ss:$8 sps:$4 sm:$0xff]   ;;  %v3770_v6 = vld [vmem:[%s4651_s1 + $0x1b4] ss:$8 sps:$4 sm:$0xff]   ;;  %v3768_v7 = vld [vmem:[%s4651_s1 + $0x1b0] ss:$8 sps:$4 sm:$0xff]  }
  0x29   : > { %356 = vmatprep.subr.bf16.mxu0 %v3703_v13  ;;  %1689 = vmatprep.subr.bf16.mxu1 %v3703_v13  ;;  %v3773_v8 = vld [vmem:[%s4651_s1 + $0x1c4] ss:$8 sps:$4 sm:$0xff]   ;;  %v3771_v9 = vld [vmem:[%s4651_s1 + $0x1c0] ss:$8 sps:$4 sm:$0xff]   ;;  %v3776_v10 = vld [vmem:[%s4651_s1 + $0x1d4] ss:$8 sps:$4 sm:$0xff]  }
  0x2a   : > { %v3774_v11 = vld [vmem:[%s4651_s1 + $0x1d0] ss:$8 sps:$4 sm:$0xff]   ;;  %v3779_v12 = vld [vmem:[%s4651_s1 + $0x1e4] ss:$8 sps:$4 sm:$0xff]   ;;  %v3777_v13 = vld [vmem:[%s4651_s1 + $0x1e0] ss:$8 sps:$4 sm:$0xff]  }
  0x2b   : > { %v3835_v48 = vld [vmem:[%s4161_s9 + $0x1c] ss:$0 sps:$4 sm:$0x77]   ;;  %v3822_v49 = vld [vmem:[%s4651_s1 + $0x2d0] ss:$8 sps:$4 sm:$0xff]   ;;  %s2885_s19 = sshll.u32 %s214_s18, 4  ;;  %s4594_s19 = int_to_ptr.vmem [resolvable:$true] %s2885_s19 }
  0x2c   : > { %357 = vmatpush1.bf16.msra.mxu0 %v3705_v14  ;;  %1690 = vmatpush1.bf16.msra.mxu1 %v3705_v14  ;;  %v3782_v14 = vld [vmem:[%s4651_s1 + $0x1f4] ss:$8 sps:$4 sm:$0xff]   ;;  %v2295_v52 = vshll.u32 %v3835_v48, 16  ;;  %v3825_v53 = vld [vmem:[%s4651_s1 + $0x2e0] ss:$8 sps:$4 sm:$0xff]   ;;  %v2293_v57 = vshrl.u32 %v3835_v48, 16 }
  0x2d   : > { %358 = vmatprep.subr.bf16.mxu0 %v3706_v15  ;;  %1691 = vmatprep.subr.bf16.mxu1 %v3706_v15  ;;  %v3780_v15 = vld [vmem:[%s4651_s1 + $0x1f0] ss:$8 sps:$4 sm:$0xff]   ;;  %v3901_v48 = vld [vmem:[%s4651_s1 + $0x464] ss:$8 sps:$4 sm:$0xff]   ;;  %s4598_s11 = scalar_lea.sflag [#allocation3], %s212_s12  ;;  %s3907_s14 = scalar_lea.vmem %s4594_s19, 256 }
  0x2e   : > { %v2297_v58 = vrot.slane %v2295_v52, 1  ;;  %v3828_v59 = vld [vmem:[%s4651_s1 + $0x2f0] ss:$8 sps:$4 sm:$0xff]   ;;  %v3904_v52 = vld [vmem:[%s4651_s1 + $0x474] ss:$8 sps:$4 sm:$0xff]   ;;  %p3908_p13 = scmp.ne.s32.totalorder %s4594_s19, %s3907_s14  ;;  %s4004_s13 = smov [#allocation2]  }
  0x2f   : > { %s3911_s23 = sshll.u32 %s4004_s13, 4  ;;  %s3912_s23 = int_to_ptr.vmem [resolvable:$false] %s3911_s23 }
  0x30   : > { %359 = vmatpush1.bf16.msra.mxu0 %v3708_v16  ;;  %1692 = vmatpush1.bf16.msra.mxu1 %v3708_v16  ;;  %v3785_v16 = vld [vmem:[%s4651_s1 + $0x204] ss:$8 sps:$4 sm:$0xff]   ;;  %p3909_p0 = pnand %p3908_p13, %p4083_p3  ;;  %s3913_s24 = scalar_lea.vmem %s3912_s23, 512 }
  0x31   : > { %465 = vmatprep.subr.bf16.mxu0 %v3711_v17  ;;  %1798 = vmatprep.subr.bf16.mxu1 %v3711_v17  ;;  %v3783_v17 = vld [vmem:[%s4651_s1 + $0x200] ss:$8 sps:$4 sm:$0xff]   ;;  %p3914_p2 = scmp.lt.s32.totalorder %s4594_s19, %s3912_s23  ;;  %p3915_p4 = scmp.lt.s32.totalorder %s3913_s24, %s3907_s14 }
  0x32   : > { %p3910_p1 = pneg %p3909_p0 }
  0x33   : > { %377 = vmatmul.mubr.bf16.vlgmr.msra.gmra.mrb[0].mxu0 %v2971_v19  ;;  %1710 = vmatmul.mubr.bf16.vlgmr.msra.gmra.mrb[0].mxu1 %v3254_v20  ;;  %v3337_v19 = vld [vmem:[%s4161_s9 + $0x1c] sm:$0x3]  ;;  %p3916_p5 = por %p3915_p4, %p3914_p2 }
  0x34   : > { %466 = vmatpush1.bf16.msra.mxu0 %v3709_v18  ;;  %1799 = vmatpush1.bf16.msra.mxu1 %v3709_v18  ;;  %v3053_v18 = vld [vmem:[%s4161_s9 + $0x18] sm:$0x3]  ;;  %v3788_v20 = vld [vmem:[%s4651_s1 + $0x214] ss:$8 sps:$4 sm:$0xff]  }
  0x35   : > { %467 = vmatprep.subr.bf16.mxu0 %v3714_v21  ;;  %1800 = vmatprep.subr.bf16.mxu1 %v3714_v21  ;;  %v3786_v21 = vld [vmem:[%s4651_s1 + $0x210] ss:$8 sps:$4 sm:$0xff]   ;;  %p3917_p6 = pnand %p3916_p5, %p3910_p1 }
  0x36   : > { %497 = vmatprep.mubr.bf16.mxu0 %v4003_v2  ;;  %1830 = vmatprep.mubr.bf16.mxu1 %v4003_v2 }
  0x38   : > { %468 = vmatpush1.bf16.msra.mxu0 %v3712_v22  ;;  %1801 = vmatpush1.bf16.msra.mxu1 %v3712_v22  ;;  %v3791_v22 = vld [vmem:[%s4651_s1 + $0x224] ss:$8 sps:$4 sm:$0xff]  }
  0x39   : > { %469 = vmatprep.subr.bf16.mxu0 %v3717_v23  ;;  %1802 = vmatprep.subr.bf16.mxu1 %v3717_v23  ;;  %v3789_v23 = vld [vmem:[%s4651_s1 + $0x220] ss:$8 sps:$4 sm:$0xff]  }
  0x3c   : > { %470 = vmatpush1.bf16.msra.mxu0 %v3715_v24  ;;  %1803 = vmatpush1.bf16.msra.mxu1 %v3715_v24  ;;  %v3794_v24 = vld [vmem:[%s4651_s1 + $0x234] ss:$8 sps:$4 sm:$0xff]  }
  0x3d   : > { %471 = vmatprep.subr.bf16.mxu0 %v3720_v25  ;;  %1804 = vmatprep.subr.bf16.mxu1 %v3720_v25  ;;  %v3792_v25 = vld [vmem:[%s4651_s1 + $0x230] ss:$8 sps:$4 sm:$0xff]  }
  0x40   : > { %472 = vmatpush1.bf16.msra.mxu0 %v3718_v26  ;;  %1805 = vmatpush1.bf16.msra.mxu1 %v3718_v26  ;;  %v3797_v26 = vld [vmem:[%s4651_s1 + $0x244] ss:$8 sps:$4 sm:$0xff]  }
  0x41   : > { %473 = vmatprep.subr.bf16.mxu0 %v3723_v27  ;;  %1806 = vmatprep.subr.bf16.mxu1 %v3723_v27  ;;  %v3795_v27 = vld [vmem:[%s4651_s1 + $0x240] ss:$8 sps:$4 sm:$0xff]  }
  0x44   : > { %474 = vmatpush1.bf16.msra.mxu0 %v3721_v28  ;;  %1807 = vmatpush1.bf16.msra.mxu1 %v3721_v28  ;;  %v3800_v28 = vld [vmem:[%s4651_s1 + $0x254] ss:$8 sps:$4 sm:$0xff]  }
  0x45   : > { %475 = vmatprep.subr.bf16.mxu0 %v3726_v29  ;;  %1808 = vmatprep.subr.bf16.mxu1 %v3726_v29  ;;  %v3798_v29 = vld [vmem:[%s4651_s1 + $0x250] ss:$8 sps:$4 sm:$0xff]  }
  0x48   : > { %476 = vmatpush1.bf16.msra.mxu0 %v3724_v30  ;;  %1809 = vmatpush1.bf16.msra.mxu1 %v3724_v30  ;;  %v3803_v30 = vld [vmem:[%s4651_s1 + $0x264] ss:$8 sps:$4 sm:$0xff]  }
  0x49   : > { %477 = vmatprep.subr.bf16.mxu0 %v3729_v31  ;;  %1810 = vmatprep.subr.bf16.mxu1 %v3729_v31  ;;  %v3801_v31 = vld [vmem:[%s4651_s1 + $0x260] ss:$8 sps:$4 sm:$0xff]  }
  0x4c   : > { %478 = vmatpush1.bf16.msra.mxu0 %v3727_v32  ;;  %1811 = vmatpush1.bf16.msra.mxu1 %v3727_v32  ;;  %v3806_v32 = vld [vmem:[%s4651_s1 + $0x274] ss:$8 sps:$4 sm:$0xff]  }
  0x4d   : > { %479 = vmatprep.subr.bf16.mxu0 %v3732_v33  ;;  %1812 = vmatprep.subr.bf16.mxu1 %v3732_v33  ;;  %v3804_v33 = vld [vmem:[%s4651_s1 + $0x270] ss:$8 sps:$4 sm:$0xff]  }
  0x50   : > { %480 = vmatpush1.bf16.msra.mxu0 %v3730_v34  ;;  %1813 = vmatpush1.bf16.msra.mxu1 %v3730_v34  ;;  %v3809_v34 = vld [vmem:[%s4651_s1 + $0x284] ss:$8 sps:$4 sm:$0xff]  }
  0x51   : > { %615 = vmatprep.subr.bf16.mxu0 %v3735_v35  ;;  %1947 = vmatprep.subr.bf16.mxu1 %v3735_v35  ;;  %v3807_v35 = vld [vmem:[%s4651_s1 + $0x280] ss:$8 sps:$4 sm:$0xff]  }
  0x53   : > { %498 = vmatmul.mubr.bf16.vlgmr.msra.gmra.mrb[0].mxu0 %v228_v37  ;;  %1831 = vmatmul.mubr.bf16.vlgmr.msra.gmra.mrb[0].mxu1 %v3253_v38  ;;  %v3370_v37 = vld [vmem:[%s4161_s9 + $0x28] sm:$0x3]  ;;  %v3812_v38 = vld [vmem:[%s4651_s1 + $0x294] ss:$8 sps:$4 sm:$0xff]  }
  0x54   : > { %616 = vmatpush1.bf16.msra.mxu0 %v3733_v36  ;;  %1948 = vmatpush1.bf16.msra.mxu1 %v3733_v36  ;;  %v3086_v36 = vld [vmem:[%s4161_s9 + $0x24] sm:$0x3] }
  0x55   : > { %617 = vmatprep.subr.bf16.mxu0 %v3738_v39  ;;  %1949 = vmatprep.subr.bf16.mxu1 %v3738_v39  ;;  %v3810_v39 = vld [vmem:[%s4651_s1 + $0x290] ss:$8 sps:$4 sm:$0xff]  }
  0x56   : > { %647 = vmatprep.mubr.bf16.mxu0 %v4003_v2  ;;  %1979 = vmatprep.mubr.bf16.mxu1 %v4003_v2 }
  0x58   : > { %618 = vmatpush1.bf16.msra.mxu0 %v3736_v40  ;;  %1950 = vmatpush1.bf16.msra.mxu1 %v3736_v40  ;;  %v3815_v40 = vld [vmem:[%s4651_s1 + $0x2a4] ss:$8 sps:$4 sm:$0xff]  }
  0x59   : > { %619 = vmatprep.subr.bf16.mxu0 %v3741_v41  ;;  %1951 = vmatprep.subr.bf16.mxu1 %v3741_v41  ;;  %v3813_v41 = vld [vmem:[%s4651_s1 + $0x2a0] ss:$8 sps:$4 sm:$0xff]  }
  0x5c   : > { %620 = vmatpush1.bf16.msra.mxu0 %v3739_v42  ;;  %1952 = vmatpush1.bf16.msra.mxu1 %v3739_v42  ;;  %v3818_v42 = vld [vmem:[%s4651_s1 + $0x2b4] ss:$8 sps:$4 sm:$0xff]  }
  0x5d   : > { %621 = vmatprep.subr.bf16.mxu0 %v3744_v43  ;;  %1953 = vmatprep.subr.bf16.mxu1 %v3744_v43  ;;  %v3816_v43 = vld [vmem:[%s4651_s1 + $0x2b0] ss:$8 sps:$4 sm:$0xff]  }
  0x60   : > { %622 = vmatpush1.bf16.msra.mxu0 %v3742_v44  ;;  %1954 = vmatpush1.bf16.msra.mxu1 %v3742_v44  ;;  %v3821_v44 = vld [vmem:[%s4651_s1 + $0x2c4] ss:$8 sps:$4 sm:$0xff]  }
  0x61   : > { %623 = vmatprep.subr.bf16.mxu0 %v3747_v45  ;;  %1955 = vmatprep.subr.bf16.mxu1 %v3747_v45  ;;  %v3819_v45 = vld [vmem:[%s4651_s1 + $0x2c0] ss:$8 sps:$4 sm:$0xff]  }
  0x64   : > { %624 = vmatpush1.bf16.msra.mxu0 %v3745_v46  ;;  %1956 = vmatpush1.bf16.msra.mxu1 %v3745_v46  ;;  %v3824_v46 = vld [vmem:[%s4651_s1 + $0x2d4] ss:$8 sps:$4 sm:$0xff]  }
  0x65   : > { %625 = vmatprep.subr.bf16.mxu0 %v3750_v47  ;;  %1957 = vmatprep.subr.bf16.mxu1 %v3750_v47  ;;  %v3834_v47 = vld [vmem:[%s4161_s9 + $0x18] ss:$0 sps:$4 sm:$0x77]  }
  0x68   : > { %626 = vmatpush1.bf16.msra.mxu0 %v3748_v50  ;;  %1958 = vmatpush1.bf16.msra.mxu1 %v3748_v50  ;;  %v3827_v50 = vld [vmem:[%s4651_s1 + $0x2e4] ss:$8 sps:$4 sm:$0xff]  }
  0x69   : > { %627 = vmatprep.subr.bf16.mxu0 %v3753_v51  ;;  %1959 = vmatprep.subr.bf16.mxu1 %v3753_v51  ;;  %v966_v51 = vshll.u32 %v3834_v47, 16 }
  0x6b   : > { %v968_v56 = vrot.slane %v966_v51, 1  ;;  %v3899_v51 = vld [vmem:[%s4651_s1 + $0x460] ss:$8 sps:$4 sm:$0xff]  }
  0x6c   : > { %628 = vmatpush1.bf16.msra.mxu0 %v3751_v54  ;;  %1960 = vmatpush1.bf16.msra.mxu1 %v3751_v54  ;;  %v3830_v54 = vld [vmem:[%s4651_s1 + $0x2f4] ss:$8 sps:$4 sm:$0xff]  }
  0x6d   : > { %629 = vmatprep.subr.bf16.mxu0 %v3756_v55  ;;  %1961 = vmatprep.subr.bf16.mxu1 %v3756_v55  ;;  %v964_v55 = vshrl.u32 %v3834_v47, 16  ;;  %v3896_v47 = vld [vmem:[%s4651_s1 + $0x450] ss:$8 sps:$4 sm:$0xff]  }
  0x70   : > { %630 = vmatpush1.bf16.msra.mxu0 %v3754_v60  ;;  %1962 = vmatpush1.bf16.msra.mxu1 %v3754_v60  ;;  %v3833_v60 = vld [vmem:[%s4651_s1 + $0x304] ss:$8 sps:$4 sm:$0xff]  }
  0x71   : > { %757 = vmatprep.subr.bf16.mxu0 %v3759_v61  ;;  %2088 = vmatprep.subr.bf16.mxu1 %v3759_v61  ;;  %v969_v61 = vor.u32 %v968_v56, %v964_v55 }
  0x73   : > { %648 = vmatmul.mubr.bf16.vlgmr.msra.gmra.mrb[0].mxu0 %v533_v62  ;;  %1980 = vmatmul.mubr.bf16.vlgmr.msra.gmra.mrb[0].mxu1 %v1865_v63  ;;  %v2298_v62 = vor.u32 %v2297_v58, %v2293_v57  ;;  %v3831_v63 = vld [vmem:[%s4651_s1 + $0x300] ss:$8 sps:$4 sm:$0xff]   ;;  %v3902_v57 = vld [vmem:[%s4651_s1 + $0x470] ss:$8 sps:$4 sm:$0xff]  }
  0x74   : > { %758 = vmatpush1.bf16.msra.mxu0 %v3757_v0  ;;  %2089 = vmatpush1.bf16.msra.mxu1 %v3757_v0  ;;  %v3838_v0 = vld [vmem:[%s4651_s1 + $0x314] ss:$8 sps:$4 sm:$0xff]  }
  0x75   : > { %759 = vmatprep.subr.bf16.mxu0 %v3764_v1  ;;  %2090 = vmatprep.subr.bf16.mxu1 %v3764_v1  ;;  %v3836_v1 = vld [vmem:[%s4651_s1 + $0x310] ss:$8 sps:$4 sm:$0xff]  }
  0x76   : > { %789 = vmatprep.mubr.bf16.mxu0 %v4003_v2  ;;  %2120 = vmatprep.mubr.bf16.mxu1 %v4003_v2 }
  0x78   : > { %760 = vmatpush1.bf16.msra.mxu0 %v3762_v3  ;;  %2091 = vmatpush1.bf16.msra.mxu1 %v3762_v3  ;;  %v3841_v3 = vld [vmem:[%s4651_s1 + $0x324] ss:$8 sps:$4 sm:$0xff]  }
  0x79   : > { %761 = vmatprep.subr.bf16.mxu0 %v3767_v4  ;;  %2092 = vmatprep.subr.bf16.mxu1 %v3767_v4  ;;  %v3839_v4 = vld [vmem:[%s4651_s1 + $0x320] ss:$8 sps:$4 sm:$0xff]  }
  0x7c   : > { %762 = vmatpush1.bf16.msra.mxu0 %v3765_v5  ;;  %2093 = vmatpush1.bf16.msra.mxu1 %v3765_v5  ;;  %v3844_v5 = vld [vmem:[%s4651_s1 + $0x334] ss:$8 sps:$4 sm:$0xff]  }
  0x7d   : > { %763 = vmatprep.subr.bf16.mxu0 %v3770_v6  ;;  %2094 = vmatprep.subr.bf16.mxu1 %v3770_v6  ;;  %v3842_v6 = vld [vmem:[%s4651_s1 + $0x330] ss:$8 sps:$4 sm:$0xff]  }
  0x80   : > { %764 = vmatpush1.bf16.msra.mxu0 %v3768_v7  ;;  %2095 = vmatpush1.bf16.msra.mxu1 %v3768_v7  ;;  %v3847_v7 = vld [vmem:[%s4651_s1 + $0x344] ss:$8 sps:$4 sm:$0xff]  }
  0x81   : > { %765 = vmatprep.subr.bf16.mxu0 %v3773_v8  ;;  %2096 = vmatprep.subr.bf16.mxu1 %v3773_v8  ;;  %v3845_v8 = vld [vmem:[%s4651_s1 + $0x340] ss:$8 sps:$4 sm:$0xff]  }
  0x84   : > { %766 = vmatpush1.bf16.msra.mxu0 %v3771_v9  ;;  %2097 = vmatpush1.bf16.msra.mxu1 %v3771_v9  ;;  %v3850_v9 = vld [vmem:[%s4651_s1 + $0x354] ss:$8 sps:$4 sm:$0xff]  }
  0x85   : > { %767 = vmatprep.subr.bf16.mxu0 %v3776_v10  ;;  %2098 = vmatprep.subr.bf16.mxu1 %v3776_v10  ;;  %v3848_v10 = vld [vmem:[%s4651_s1 + $0x350] ss:$8 sps:$4 sm:$0xff]  }
  0x88   : > { %768 = vmatpush1.bf16.msra.mxu0 %v3774_v11  ;;  %2099 = vmatpush1.bf16.msra.mxu1 %v3774_v11  ;;  %v3853_v11 = vld [vmem:[%s4651_s1 + $0x364] ss:$8 sps:$4 sm:$0xff]  }
  0x89   : > { %769 = vmatprep.subr.bf16.mxu0 %v3779_v12  ;;  %2100 = vmatprep.subr.bf16.mxu1 %v3779_v12  ;;  %v3851_v12 = vld [vmem:[%s4651_s1 + $0x360] ss:$8 sps:$4 sm:$0xff]  }
  0x8c   : > { %770 = vmatpush1.bf16.msra.mxu0 %v3777_v13  ;;  %2101 = vmatpush1.bf16.msra.mxu1 %v3777_v13  ;;  %v3856_v13 = vld [vmem:[%s4651_s1 + $0x374] ss:$8 sps:$4 sm:$0xff]  }
  0x8d   : > { %771 = vmatprep.subr.bf16.mxu0 %v3782_v14  ;;  %2102 = vmatprep.subr.bf16.mxu1 %v3782_v14  ;;  %v3854_v14 = vld [vmem:[%s4651_s1 + $0x370] ss:$8 sps:$4 sm:$0xff]  }
  0x90   : > { %772 = vmatpush1.bf16.msra.mxu0 %v3780_v15  ;;  %2103 = vmatpush1.bf16.msra.mxu1 %v3780_v15  ;;  %v3859_v15 = vld [vmem:[%s4651_s1 + $0x384] ss:$8 sps:$4 sm:$0xff]  }
  0x91   : > { %899 = vmatprep.subr.bf16.mxu0 %v3785_v16  ;;  %2229 = vmatprep.subr.bf16.mxu1 %v3785_v16  ;;  %v3857_v16 = vld [vmem:[%s4651_s1 + $0x380] ss:$8 sps:$4 sm:$0xff]  }
  0x93   : > { %790 = vmatmul.mubr.bf16.vlgmr.msra.gmra.mrb[0].mxu0 %v3053_v18  ;;  %2121 = vmatmul.mubr.bf16.vlgmr.msra.gmra.mrb[0].mxu1 %v3337_v19  ;;  %v3437_v18 = vld [vmem:[%s4161_s9 + $0x8] sm:$0x3]  ;;  %v3862_v19 = vld [vmem:[%s4651_s1 + $0x394] ss:$8 sps:$4 sm:$0xff]  }
  0x94   : > { %900 = vmatpush1.bf16.msra.mxu0 %v3783_v17  ;;  %2230 = vmatpush1.bf16.msra.mxu1 %v3783_v17  ;;  %v3153_v17 = vld [vmem:[%s4161_s9 + $0x4] sm:$0x3] }
  0x95   : > { %901 = vmatprep.subr.bf16.mxu0 %v3788_v20  ;;  %2231 = vmatprep.subr.bf16.mxu1 %v3788_v20  ;;  %v3860_v20 = vld [vmem:[%s4651_s1 + $0x390] ss:$8 sps:$4 sm:$0xff]  }
  0x96   : > { %931 = vmatprep.mubr.bf16.mxu0 %v4003_v2  ;;  %2261 = vmatprep.mubr.bf16.mxu1 %v4003_v2 }
  0x98   : > { %902 = vmatpush1.bf16.msra.mxu0 %v3786_v21  ;;  %2232 = vmatpush1.bf16.msra.mxu1 %v3786_v21  ;;  %v3865_v21 = vld [vmem:[%s4651_s1 + $0x3a4] ss:$8 sps:$4 sm:$0xff]  }
  0x99   : > { %903 = vmatprep.subr.bf16.mxu0 %v3791_v22  ;;  %2233 = vmatprep.subr.bf16.mxu1 %v3791_v22  ;;  %v3863_v22 = vld [vmem:[%s4651_s1 + $0x3a0] ss:$8 sps:$4 sm:$0xff]  }
  0x9c   : > { %904 = vmatpush1.bf16.msra.mxu0 %v3789_v23  ;;  %2234 = vmatpush1.bf16.msra.mxu1 %v3789_v23  ;;  %v3868_v23 = vld [vmem:[%s4651_s1 + $0x3b4] ss:$8 sps:$4 sm:$0xff]  }
  0x9d   : > { %905 = vmatprep.subr.bf16.mxu0 %v3794_v24  ;;  %2235 = vmatprep.subr.bf16.mxu1 %v3794_v24  ;;  %v3866_v24 = vld [vmem:[%s4651_s1 + $0x3b0] ss:$8 sps:$4 sm:$0xff]  }
  0xa0   : > { %906 = vmatpush1.bf16.msra.mxu0 %v3792_v25  ;;  %2236 = vmatpush1.bf16.msra.mxu1 %v3792_v25  ;;  %v3871_v25 = vld [vmem:[%s4651_s1 + $0x3c4] ss:$8 sps:$4 sm:$0xff]  }
  0xa1   : > { %907 = vmatprep.subr.bf16.mxu0 %v3797_v26  ;;  %2237 = vmatprep.subr.bf16.mxu1 %v3797_v26  ;;  %v3869_v26 = vld [vmem:[%s4651_s1 + $0x3c0] ss:$8 sps:$4 sm:$0xff]  }
  0xa4   : > { %908 = vmatpush1.bf16.msra.mxu0 %v3795_v27  ;;  %2238 = vmatpush1.bf16.msra.mxu1 %v3795_v27  ;;  %v3874_v27 = vld [vmem:[%s4651_s1 + $0x3d4] ss:$8 sps:$4 sm:$0xff]  }
  0xa5   : > { %909 = vmatprep.subr.bf16.mxu0 %v3800_v28  ;;  %2239 = vmatprep.subr.bf16.mxu1 %v3800_v28  ;;  %v3872_v28 = vld [vmem:[%s4651_s1 + $0x3d0] ss:$8 sps:$4 sm:$0xff]  }
  0xa8   : > { %910 = vmatpush1.bf16.msra.mxu0 %v3798_v29  ;;  %2240 = vmatpush1.bf16.msra.mxu1 %v3798_v29  ;;  %v3877_v29 = vld [vmem:[%s4651_s1 + $0x3e4] ss:$8 sps:$4 sm:$0xff]  }
  0xa9   : > { %911 = vmatprep.subr.bf16.mxu0 %v3803_v30  ;;  %2241 = vmatprep.subr.bf16.mxu1 %v3803_v30  ;;  %v3875_v30 = vld [vmem:[%s4651_s1 + $0x3e0] ss:$8 sps:$4 sm:$0xff]  }
  0xac   : > { %912 = vmatpush1.bf16.msra.mxu0 %v3801_v31  ;;  %2242 = vmatpush1.bf16.msra.mxu1 %v3801_v31  ;;  %v3880_v31 = vld [vmem:[%s4651_s1 + $0x3f4] ss:$8 sps:$4 sm:$0xff]  }
  0xad   : > { %913 = vmatprep.subr.bf16.mxu0 %v3806_v32  ;;  %2243 = vmatprep.subr.bf16.mxu1 %v3806_v32  ;;  %v3878_v32 = vld [vmem:[%s4651_s1 + $0x3f0] ss:$8 sps:$4 sm:$0xff]  }
  0xb0   : > { %914 = vmatpush1.bf16.msra.mxu0 %v3804_v33  ;;  %2244 = vmatpush1.bf16.msra.mxu1 %v3804_v33  ;;  %v3883_v33 = vld [vmem:[%s4651_s1 + $0x404] ss:$8 sps:$4 sm:$0xff]  }
  0xb1   : > { %1051 = vmatprep.subr.bf16.mxu0 %v3809_v34  ;;  %2380 = vmatprep.subr.bf16.mxu1 %v3809_v34  ;;  %v3881_v34 = vld [vmem:[%s4651_s1 + $0x400] ss:$8 sps:$4 sm:$0xff]  }
  0xb3   : > { %932 = vmatmul.mubr.bf16.vlgmr.msra.gmra.mrb[0].mxu0 %v3086_v36  ;;  %2262 = vmatmul.mubr.bf16.vlgmr.msra.gmra.mrb[0].mxu1 %v3370_v37  ;;  %v3470_v36 = vld [vmem:[%s4161_s9 + $0x14] sm:$0x3] }
  0xb4   : > { %1052 = vmatpush1.bf16.msra.mxu0 %v3807_v35  ;;  %2381 = vmatpush1.bf16.msra.mxu1 %v3807_v35  ;;  %v3186_v35 = vld [vmem:[%s4161_s9 + $0x10] sm:$0x3]  ;;  %v3886_v37 = vld [vmem:[%s4651_s1 + $0x414] ss:$8 sps:$4 sm:$0xff]  }
  0xb5   : > { %1053 = vmatprep.subr.bf16.mxu0 %v3812_v38  ;;  %2382 = vmatprep.subr.bf16.mxu1 %v3812_v38  ;;  %v3884_v38 = vld [vmem:[%s4651_s1 + $0x410] ss:$8 sps:$4 sm:$0xff]  }
  0xb6   : > { %1083 = vmatprep.mubr.bf16.mxu0 %v4003_v2  ;;  %2412 = vmatprep.mubr.bf16.mxu1 %v4003_v2 }
  0xb8   : > { %1054 = vmatpush1.bf16.msra.mxu0 %v3810_v39  ;;  %2383 = vmatpush1.bf16.msra.mxu1 %v3810_v39  ;;  %v3889_v39 = vld [vmem:[%s4651_s1 + $0x424] ss:$8 sps:$4 sm:$0xff]  }
  0xb9   : > { %1055 = vmatprep.subr.bf16.mxu0 %v3815_v40  ;;  %2384 = vmatprep.subr.bf16.mxu1 %v3815_v40  ;;  %v3887_v40 = vld [vmem:[%s4651_s1 + $0x420] ss:$8 sps:$4 sm:$0xff]  }
  0xbc   : > { %1056 = vmatpush1.bf16.msra.mxu0 %v3813_v41  ;;  %2385 = vmatpush1.bf16.msra.mxu1 %v3813_v41  ;;  %v3892_v41 = vld [vmem:[%s4651_s1 + $0x434] ss:$8 sps:$4 sm:$0xff]  }
  0xbd   : > { %1057 = vmatprep.subr.bf16.mxu0 %v3818_v42  ;;  %2386 = vmatprep.subr.bf16.mxu1 %v3818_v42  ;;  %v3895_v42 = vld [vmem:[%s4651_s1 + $0x444] ss:$8 sps:$4 sm:$0xff]  }
  0xc0   : > { %1058 = vmatpush1.bf16.msra.mxu0 %v3816_v43  ;;  %2387 = vmatpush1.bf16.msra.mxu1 %v3816_v43  ;;  %v3893_v43 = vld [vmem:[%s4651_s1 + $0x440] ss:$8 sps:$4 sm:$0xff]  }
  0xc1   : > { %1059 = vmatprep.subr.bf16.mxu0 %v3821_v44  ;;  %2388 = vmatprep.subr.bf16.mxu1 %v3821_v44  ;;  %v3898_v44 = vld [vmem:[%s4651_s1 + $0x454] ss:$8 sps:$4 sm:$0xff]  }
  0xc4   : > { %1060 = vmatpush1.bf16.msra.mxu0 %v3819_v45  ;;  %2389 = vmatpush1.bf16.msra.mxu1 %v3819_v45  ;;  %v3905_v45 = vld [vmem:[%s4161_s9 + $0x4] ss:$0 sps:$4 sm:$0x77]  }
  0xc5   : > { %1061 = vmatprep.subr.bf16.mxu0 %v3824_v46  ;;  %2390 = vmatprep.subr.bf16.mxu1 %v3824_v46  ;;  %v3906_v46 = vld [vmem:[%s4161_s9 + $0x8] ss:$0 sps:$4 sm:$0x77]   ;;  %s3542_s9 = sshll.u32 %s2882_s5, 6 }
  0xc6   : > { %v2726_v55 = vshrl.u32 %v3906_v46, 16  ;;  %s4592_s10 = scalar_lea.hbm %s4654_s4, %s3542_s9 }
  0xc8   : > { %1062 = vmatpush1.bf16.msra.mxu0 %v3822_v49  ;;  %2391 = vmatpush1.bf16.msra.mxu1 %v3822_v49  ;;  %v1402_v49 = vshll.u32 %v3905_v45, 16 }
  0xc9   : > { %1063 = vmatprep.subr.bf16.mxu0 %v3827_v50  ;;  %2392 = vmatprep.subr.bf16.mxu1 %v3827_v50  ;;  %v2728_v50 = vshll.u32 %v3906_v46, 16 }
  0xcb   : > { %v2730_v56 = vrot.slane %v2728_v50, 1 }
  0xcc   : > { %1064 = vmatpush1.bf16.msra.mxu0 %v3825_v53  ;;  %2393 = vmatpush1.bf16.msra.mxu1 %v3825_v53  ;;  %v1400_v53 = vshrl.u32 %v3905_v45, 16 }
  0xcd   : > { %1065 = vmatprep.subr.bf16.mxu0 %v3830_v54  ;;  %2394 = vmatprep.subr.bf16.mxu1 %v3830_v54  ;;  %v1404_v54 = vrot.slane %v1402_v49, 1 }
  0xcf   : > { %v1405_v58 = vor.u32 %v1404_v54, %v1400_v53 }
  0xd0   : > { %1066 = vmatpush1.bf16.msra.mxu0 %v3828_v59  ;;  %2395 = vmatpush1.bf16.msra.mxu1 %v3828_v59  ;;  %v2731_v59 = vor.u32 %v2730_v56, %v2726_v55 }
  0xd1   : > { %1193 = vmatprep.subr.bf16.mxu0 %v3833_v60  ;;  %2521 = vmatprep.subr.bf16.mxu1 %v3833_v60  ;;  %v1531_v60 = vlaneseq }
  0xd3   : > { %1084 = vmatmul.mubr.bf16.vlgmr.msra.gmra.mrb[0].mxu0 %v969_v61  ;;  %2413 = vmatmul.mubr.bf16.vlgmr.msra.gmra.mrb[0].mxu1 %v2298_v62  ;;  %v1532_v61 = vshrl.u32 %v1531_v60, 7 }
  0xd4   : > { %1194 = vmatpush1.bf16.msra.mxu0 %v3831_v63  ;;  %2522 = vmatpush1.bf16.msra.mxu1 %v3831_v63  ;;  %v226_v63 = vld [vmem:[%s4652_s2] sm:$0x3] }
  0xd5   : > { %1195 = vmatprep.subr.bf16.mxu0 %v3838_v0  ;;  %2523 = vmatprep.subr.bf16.mxu1 %v3838_v0  ;;  %v1533_v62 = vsub.s32 0, %v1532_v61  ;;  %v1537_v0 = vsub.s32 1, %v1532_v61 }
  0xd6   : > { %1225 = vmatprep.mubr.bf16.mxu0 %v4003_v2  ;;  %2553 = vmatprep.mubr.bf16.mxu1 %v4003_v2 }
  0xd8   : > { %1196 = vmatpush1.bf16.msra.mxu0 %v3836_v1  ;;  %2524 = vmatpush1.bf16.msra.mxu1 %v3836_v1  ;;  %v227_v1 = vld [vmem:[%s4653_s3] sm:$0x3] }
  0xd9   : > { %1197 = vmatprep.subr.bf16.mxu0 %v3841_v3  ;;  %2525 = vmatprep.subr.bf16.mxu1 %v3841_v3  ;;  %v1534_v3 = vrot.slane %v226_v63, %v1533_v62 }
  0xdc   : > { %1198 = vmatpush1.bf16.msra.mxu0 %v3839_v4  ;;  %2526 = vmatpush1.bf16.msra.mxu1 %v3839_v4  ;;  %v1538_v4 = vrot.slane %v226_v63, %v1537_v0 }
  0xdd   : > { %1199 = vmatprep.subr.bf16.mxu0 %v3844_v5  ;;  %2527 = vmatprep.subr.bf16.mxu1 %v3844_v5  ;;  %v1547_v5 = vrot.slane %v227_v1, %v1533_v62 }
  0xe0   : > { %1200 = vmatpush1.bf16.msra.mxu0 %v3842_v6  ;;  %2528 = vmatpush1.bf16.msra.mxu1 %v3842_v6 }
  0xe1   : > { %1201 = vmatprep.subr.bf16.mxu0 %v3847_v7  ;;  %2529 = vmatprep.subr.bf16.mxu1 %v3847_v7 }
  0xe4   : > { %1202 = vmatpush1.bf16.msra.mxu0 %v3845_v8  ;;  %2530 = vmatpush1.bf16.msra.mxu1 %v3845_v8  ;;  %v1551_v8 = vrot.slane %v227_v1, %v1537_v0 }
  0xe5   : > { %1203 = vmatprep.subr.bf16.mxu0 %v3850_v9  ;;  %2531 = vmatprep.subr.bf16.mxu1 %v3850_v9 }
  0xe8   : > { %1204 = vmatpush1.bf16.msra.mxu0 %v3848_v10  ;;  %2532 = vmatpush1.bf16.msra.mxu1 %v3848_v10 }
  0xe9   : > { %1205 = vmatprep.subr.bf16.mxu0 %v3853_v11  ;;  %2533 = vmatprep.subr.bf16.mxu1 %v3853_v11 }
  0xec   : > { %1206 = vmatpush1.bf16.msra.mxu0 %v3851_v12  ;;  %2534 = vmatpush1.bf16.msra.mxu1 %v3851_v12 }
  0xed   : > { %1207 = vmatprep.subr.bf16.mxu0 %v3856_v13  ;;  %2535 = vmatprep.subr.bf16.mxu1 %v3856_v13 }
  0xf0   : > { %1208 = vmatpush1.bf16.msra.mxu0 %v3854_v14  ;;  %2536 = vmatpush1.bf16.msra.mxu1 %v3854_v14 }
  0xf1   : > { %1335 = vmatprep.subr.bf16.mxu0 %v3859_v15  ;;  %2662 = vmatprep.subr.bf16.mxu1 %v3859_v15 }
  0xf3   : > { %1226 = vmatmul.mubr.bf16.vlgmr.msra.gmra.mrb[0].mxu0 %v3153_v17  ;;  %2554 = vmatmul.mubr.bf16.vlgmr.msra.gmra.mrb[0].mxu1 %v3437_v18 }
  0xf4   : > { %1336 = vmatpush1.bf16.msra.mxu0 %v3857_v16  ;;  %2663 = vmatpush1.bf16.msra.mxu1 %v3857_v16 }
  0xf5   : > { %1337 = vmatprep.subr.bf16.mxu0 %v3862_v19  ;;  %2664 = vmatprep.subr.bf16.mxu1 %v3862_v19 }
  0xf6   : > { %1367 = vmatprep.mubr.bf16.mxu0 %v4003_v2  ;;  %2694 = vmatprep.mubr.bf16.mxu1 %v4003_v2 }
  0xf8   : > { %1338 = vmatpush1.bf16.msra.mxu0 %v3860_v20  ;;  %2665 = vmatpush1.bf16.msra.mxu1 %v3860_v20 }
  0xf9   : > { %1339 = vmatprep.subr.bf16.mxu0 %v3865_v21  ;;  %2666 = vmatprep.subr.bf16.mxu1 %v3865_v21 }
  0xfc   : > { %1340 = vmatpush1.bf16.msra.mxu0 %v3863_v22  ;;  %2667 = vmatpush1.bf16.msra.mxu1 %v3863_v22 }
  0xfd   : > { %1341 = vmatprep.subr.bf16.mxu0 %v3868_v23  ;;  %2668 = vmatprep.subr.bf16.mxu1 %v3868_v23 }
 0x100   : > { %1342 = vmatpush1.bf16.msra.mxu0 %v3866_v24  ;;  %2669 = vmatpush1.bf16.msra.mxu1 %v3866_v24 }
 0x101   : > { %1343 = vmatprep.subr.bf16.mxu0 %v3871_v25  ;;  %2670 = vmatprep.subr.bf16.mxu1 %v3871_v25 }
 0x104   : > { %1344 = vmatpush1.bf16.msra.mxu0 %v3869_v26  ;;  %2671 = vmatpush1.bf16.msra.mxu1 %v3869_v26 }
 0x105   : > { %1345 = vmatprep.subr.bf16.mxu0 %v3874_v27  ;;  %2672 = vmatprep.subr.bf16.mxu1 %v3874_v27 }
 0x108   : > { %1346 = vmatpush1.bf16.msra.mxu0 %v3872_v28  ;;  %2673 = vmatpush1.bf16.msra.mxu1 %v3872_v28 }
 0x109   : > { %1347 = vmatprep.subr.bf16.mxu0 %v3877_v29  ;;  %2674 = vmatprep.subr.bf16.mxu1 %v3877_v29 }
 0x10c   : > { %1348 = vmatpush1.bf16.msra.mxu0 %v3875_v30  ;;  %2675 = vmatpush1.bf16.msra.mxu1 %v3875_v30 }
 0x10d   : > { %1349 = vmatprep.subr.bf16.mxu0 %v3880_v31  ;;  %2676 = vmatprep.subr.bf16.mxu1 %v3880_v31 }
 0x110   : > { %1350 = vmatpush1.bf16.msra.mxu0 %v3878_v32  ;;  %2677 = vmatpush1.bf16.msra.mxu1 %v3878_v32 }
 0x111   : > { %1487 = vmatprep.subr.bf16.mxu0 %v3883_v33  ;;  %2813 = vmatprep.subr.bf16.mxu1 %v3883_v33 }
 0x113   : > { %1368 = vmatmul.mubr.bf16.vlgmr.msra.gmra.mrb[0].mxu0 %v3186_v35  ;;  %2695 = vmatmul.mubr.bf16.vlgmr.msra.gmra.mrb[0].mxu1 %v3470_v36 }
 0x114   : > { %1488 = vmatpush1.bf16.msra.mxu0 %v3881_v34  ;;  %2814 = vmatpush1.bf16.msra.mxu1 %v3881_v34 }
 0x115   : > { %1489 = vmatprep.subr.bf16.mxu0 %v3886_v37  ;;  %2815 = vmatprep.subr.bf16.mxu1 %v3886_v37 }
 0x116   : > { %1519 = vmatprep.mubr.bf16.mxu0 %v4003_v2  ;;  %2845 = vmatprep.mubr.bf16.mxu1 %v4003_v2  ;;  %v3890_v2 = vld [vmem:[%s4651_s1 + $0x430] ss:$8 sps:$4 sm:$0xff]  }
 0x118   : > { %1490 = vmatpush1.bf16.msra.mxu0 %v3884_v38  ;;  %2816 = vmatpush1.bf16.msra.mxu1 %v3884_v38 }
 0x119   : > { %1491 = vmatprep.subr.bf16.mxu0 %v3889_v39  ;;  %2817 = vmatprep.subr.bf16.mxu1 %v3889_v39 }
 0x11c   : > { %1492 = vmatpush1.bf16.msra.mxu0 %v3887_v40  ;;  %2818 = vmatpush1.bf16.msra.mxu1 %v3887_v40 }
 0x11d   : > { %1493 = vmatprep.subr.bf16.mxu0 %v3892_v41  ;;  %2819 = vmatprep.subr.bf16.mxu1 %v3892_v41 }
 0x120   : > { %1494 = vmatpush1.bf16.msra.mxu0 %v3890_v2  ;;  %2820 = vmatpush1.bf16.msra.mxu1 %v3890_v2 }
 0x121   : > { %1495 = vmatprep.subr.bf16.mxu0 %v3895_v42  ;;  %2821 = vmatprep.subr.bf16.mxu1 %v3895_v42 }
 0x124   : > { %1496 = vmatpush1.bf16.msra.mxu0 %v3893_v43  ;;  %2822 = vmatpush1.bf16.msra.mxu1 %v3893_v43 }
 0x125   : > { %1497 = vmatprep.subr.bf16.mxu0 %v3898_v44  ;;  %2823 = vmatprep.subr.bf16.mxu1 %v3898_v44 }
 0x128   : > { %1498 = vmatpush1.bf16.msra.mxu0 %v3896_v47  ;;  %2824 = vmatpush1.bf16.msra.mxu1 %v3896_v47 }
 0x129   : > { %1499 = vmatprep.subr.bf16.mxu0 %v3901_v48  ;;  %2825 = vmatprep.subr.bf16.mxu1 %v3901_v48 }
 0x12c   : > { %1500 = vmatpush1.bf16.msra.mxu0 %v3899_v51  ;;  %2826 = vmatpush1.bf16.msra.mxu1 %v3899_v51 }
 0x12d   : > { %1501 = vmatprep.subr.bf16.mxu0 %v3904_v52  ;;  %2827 = vmatprep.subr.bf16.mxu1 %v3904_v52 }
 0x130   : > { %1502 = vmatpush1.bf16.msra.mxu0 %v3902_v57  ;;  %2828 = vmatpush1.bf16.msra.mxu1 %v3902_v57 }
 0x133   : > { %1520 = vmatmul.mubr.bf16.vlgmr.msra.gmra.mrb[0].mxu0 %v1405_v58  ;;  %2846 = vmatmul.mubr.bf16.vlgmr.msra.gmra.mrb[0].mxu1 %v2731_v59 }
 0x206   : > { %v1521_v6 = vpop.f32.mrb[0].mxu0  ;;  %v2847_v7 = vpop.f32.mrb[0].mxu1 }
 0x207   : > { %v1541_v9 = vmul.f32 %v1534_v3, %v1521_v6  ;;  %v2856_v10 = vmul.f32 %v2847_v7, %v1534_v3  ;;  %v1523_v11 = vpop.f32.mrb[1].mxu0  ;;  %v2849_v12 = vpop.f32.mrb[1].mxu1 }
 0x208   : > { %v1542_v13 = vmul.f32 %v1538_v4, %v1523_v11  ;;  %v2857_v14 = vmul.f32 %v2849_v12, %v1538_v4  ;;  %v1525_v15 = vpop.f32.mrb[2].mxu0  ;;  %v2851_v16 = vpop.f32.mrb[2].mxu1 }
 0x209   : > { %v1554_v17 = vadd.f32 %v1547_v5, %v1541_v9  ;;  %v2858_v18 = vadd.f32 %v2856_v10, %v1547_v5  ;;  %v1526_v19 = vpop.f32.mrb[3].mxu0  ;;  %v2852_v20 = vpop.f32.mrb[3].mxu1 }
 0x20a   : > { %v1555_v21 = vadd.f32 %v1551_v8, %v1542_v13  ;;  %v2859_v22 = vadd.f32 %v2857_v14, %v1551_v8 }
 0x20b   : > { %v1556_v23 = vmax.f32 %v1554_v17, 0.0  ;;  %v2860_v24 = vmax.f32 %v2858_v18, 0.0 }
 0x20c   : > { %v1557_v25 = vmax.f32 %v1555_v21, 0.0  ;;  %v2861_v26 = vmax.f32 %v2859_v22, 0.0 }
 0x20e   : > { %v1560_v27 = vcombine.low %v1556_v23, %v1557_v25  ;;  %v2864_v28 = vcombine.low %v2860_v24, %v2861_v26 }
 0x210   : > { %1562 = vst [vmem:[%s214_s18] sm:$0xff] %v1560_v27  ;;  %3537 = vst [vmem:[%s214_s18 + $0x8] sm:$0xff] %v2864_v28 }
 0x211   : > { %3920 = shalt.err (!%p3917_p6)
}
 0x212   : > { %s3921_s12 = scalar_lea.hbm %s4592_s10, 256  ;;  %s3925_s5 = scalar_lea.hbm %s4654_s4, 1024 }
 0x213   : > { %p3922_p7 = scmp.ne.s32.totalorder %s4592_s10, %s3921_s12  ;;  %p3926_p11 = scmp.lt.u32.totalorder %s4592_s10, %s4654_s4 }
 0x214   : > { %p3927_p12 = scmp.lt.u32.totalorder %s3925_s5, %s3921_s12  ;;  %p3929_p0 = scmp.lt.u32.totalorder %s3921_s12, %s4592_s10 }
 0x215   : > { %p3923_p9 = pnand %p3922_p7, %p4083_p3 }
 0x216   : > { %p3928_p13 = por %p3927_p12, %p3926_p11 }
 0x217   : > { %p3924_p10 = pneg %p3923_p9 }
 0x218   : > { %p3930_p1 = por %p3929_p0, %p3928_p13 }
 0x21a   : > { %p3931_p2 = pnand %p3930_p1, %p3924_p10 }
 0x21c   : > { %3934 = shalt.err (!%p3931_p2)
}
 0x21d   : > { %s4005_s6 = smov 128   ;;  %s4006_s8 = smov 8  }
 0x21e   : > { %3611 = dma.vmem_to_hbm [thread:$0]  (%p4083_p3), %s4594_s19, 256, %s4592_s10, %s4598_s11, %s4005_s6, %s4005_s6, %s4006_s8  }
 0x21f PF: > { %p3617_p4 = scmp.ge.s32.totalorder %s4001_s22, 2  ;;  %s2900_s14 = sand.u32 1, %s3973_s15  }
 0x220   : > { %s2901_s13 = scalar_lea.sflag [#allocation3], %s2900_s14 }
 0x221   : > { %p3614_p5 = pnand %p3617_p4, %p4092_p8 }
 0x223   : > { %3968 = dma.done.wait (!%p3614_p5), %s2901_s13, 256  }
 0x224   : > { %3970 = vsyncadd (!%p3614_p5), %s2901_s13, 4294967040  ;;  %s17_s22 = sadd.s32 1, %s4001_s22   ;;  %s4657_s15 = smov %s3977_s16 }
 0x225   : > { %p14_p6 = scmp.ge.s32.totalorder %s17_s22, 6   ;;  %s4658_s16 = smov %s3981_s17 }
 0x226   : > { %s4659_s17 = smov %s4101_s7  ;;  %s4660_s18 = smov %s3993_s20 }
 0x227   : > { %s4661_s19 = smov %s3997_s21  ;;  %s4662_s20 = smov %s4665_s25 }
 0x228   : > { %s4663_s21 = smov %s4669_s26  ;;  %16 = sbr.rel (!%p14_p6) target bundleno = 5 (0x5), region = 89 }
 0x22f   :  { %2906 = vsyncpa [#allocation3], 1 }
 0x230   :  { %2908 = vsyncpa [#allocation3 + $0x1], 1 }

</bundles_post_ra>
